<compile_context>
chip_gen: v5e
topology: v5e:2x2
jax: 0.10.0
libtpu: 0.0.40
codegen_flags: <defaults>
</compile_context>

<pallas_src>
import functools
import math

import jax
import jax.numpy as jnp
from jax.experimental import pallas as pl
from jax.experimental.pallas import tpu as pltpu

# ---------------- small synthetic BERT config ----------------
INPUT_DIMS = 16
OUTPUT_DIMS = 16
HIDDEN_T_DIM = 8
HIDDEN = 32
NUM_HEADS = 4
HEAD_DIM = HIDDEN // NUM_HEADS
INTERMEDIATE = 64
NUM_LAYERS = 2
MAX_POS = 64
LN_EPS = 1e-12

BATCH = 2
SEQ = 8

LANES = 128
OUT_PAD = max(LANES, OUTPUT_DIMS)   # lane-dense output width


# ---------------- fused whole-model kernel (single invocation) ----------------
def _bert_fused_kernel(
    # embedding-path inputs
    t_sin_ref, x_ref,
    tw1_ref, tb1_ref, tw2_ref, tb2_ref,
    uw1_ref, ub1_ref, uw2_ref, ub2_ref,
    pos_ref, eg_ref, eb_ref,
    # stacked per-layer encoder weights (leading dims: [layer] or [layer, head])
    wq_ref, wk_ref, wv_ref, bq_ref, bk_ref, bv_ref,
    wo_ref, vec_ref, wi_ref, bi_ref, wf_ref,
    # output projection (down_w2 / down_b2 pre-padded to OUT_PAD lanes)
    dw1_ref, db1_ref, dw2_ref, db2_ref,
    # lane-dense output slab
    out_ref,
    *, batch, seq, hidden, num_heads, head_dim, num_layers, eps,
):
    f32 = jnp.float32

    def dot(a, b):
        return jnp.dot(a, b, preferred_element_type=f32)

    def ln(x, g, b):
        mu = jnp.mean(x, axis=-1, keepdims=True)
        xc = x - mu
        var = jnp.mean(xc * xc, axis=-1, keepdims=True)
        return xc * jax.lax.rsqrt(var + eps) * g + b

    def gelu(y):
        # TODO(synk): HF BERT's default "gelu" is the exact erf form; the tanh
        # approximation is used here for guaranteed Mosaic lowering.
        c = 0.7978845608028654  # sqrt(2/pi)
        return 0.5 * y * (1.0 + jnp.tanh(c * (y + 0.044715 * y * y * y)))

    def silu(y):
        return y * (1.0 / (1.0 + jnp.exp(-y)))

    # ---- time_embed: Linear -> SiLU -> Linear ----
    h_t = silu(dot(t_sin_ref[...], tw1_ref[...]) + tb1_ref[...])
    emb_t = dot(h_t, tw2_ref[...]) + tb2_ref[...]                     # (B, H)

    # ---- input_up_proj: Linear -> Tanh -> Linear ----
    h0 = jnp.tanh(dot(x_ref[...], uw1_ref[...]) + ub1_ref[...])
    emb_x = dot(h0, uw2_ref[...]) + ub2_ref[...]                      # (B*S, H)

    # ---- + position emb + broadcast time emb, then LayerNorm (dropout p=0) ----
    # broadcast adds on a (B, S, H) leading-dim view: no concatenates.
    emb3 = (emb_x.reshape(batch, seq, hidden)
            + pos_ref[...][None, :, :]
            + emb_t[:, None, :])
    hid = ln(emb3.reshape(batch * seq, hidden), eg_ref[...], eb_ref[...])

    scale = 1.0 / math.sqrt(head_dim)

    # ---- BERT encoder: fully unrolled, hidden state stays in registers/VMEM ----
    for l in range(num_layers):
        bo = vec_ref[l, 0]
        ln1_g, ln1_b = vec_ref[l, 1], vec_ref[l, 2]
        bf = vec_ref[l, 3]
        ln2_g, ln2_b = vec_ref[l, 4], vec_ref[l, 5]

        # Self-attention with per-head weight slabs: head split lives in the
        # weight layout (leading [head] axis), so there is no intra-vreg lane
        # extraction of Q/K/V and no head/batch concatenation; each head's
        # output-dense contribution is accumulated directly into attn_out.
        attn_out = None
        for h in range(num_heads):
            q = (dot(hid, wq_ref[l, h]) + bq_ref[l, h]) * scale       # (B*S, Dh)
            k = dot(hid, wk_ref[l, h]) + bk_ref[l, h]
            v = dot(hid, wv_ref[l, h]) + bv_ref[l, h]
            q3 = q.reshape(batch, seq, head_dim)
            k3 = k.reshape(batch, seq, head_dim)
            v3 = v.reshape(batch, seq, head_dim)
            # batched over the batch dim: one dot_general per head for scores
            # and one for PV instead of per-(batch, head) matmuls.
            s = jnp.einsum('bqd,bkd->bqk', q3, k3,
                           preferred_element_type=f32)                # (B, S, S)
            s = s - jnp.max(s, axis=-1, keepdims=True)
            p = jnp.exp(s)
            p = p / jnp.sum(p, axis=-1, keepdims=True)                # exact softmax
            ctx = jnp.einsum('bqk,bkd->bqd', p, v3,
                             preferred_element_type=f32)              # (B, S, Dh)
            contrib = dot(ctx.reshape(batch * seq, head_dim), wo_ref[l, h])
            attn_out = contrib if attn_out is None else attn_out + contrib

        hid = ln(attn_out + bo + hid, ln1_g, ln1_b)                   # Add & LN

        # GELU FFN + Add & LN
        inter = gelu(dot(hid, wi_ref[l]) + bi_ref[l])
        ffn = dot(inter, wf_ref[l]) + bf
        hid = ln(ffn + hid, ln2_g, ln2_b)

    # ---- output_down_proj: Linear -> Tanh -> Linear; padded to a full
    # 128-lane slab so the single HBM writeback is an unmasked lane-dense store.
    d = jnp.tanh(dot(hid, dw1_ref[...]) + db1_ref[...])
    out_ref[...] = (dot(d, dw2_ref[...]) + db2_ref[...]).astype(out_ref.dtype)


# ---------------- glue (plain JAX) ----------------
def timestep_embedding(timesteps, dim, max_period=10000):
    half = dim // 2
    freqs = jnp.exp(
        -math.log(max_period) * jnp.arange(half, dtype=jnp.float32) / half
    )
    args = timesteps.astype(jnp.float32)[:, None] * freqs[None, :]
    emb = jnp.concatenate([jnp.cos(args), jnp.sin(args)], axis=-1)
    if dim % 2:
        emb = jnp.concatenate([emb, jnp.zeros_like(emb[:, :1])], axis=-1)
    return emb


def init_params(key):
    keys = iter(jax.random.split(key, 64))

    def w(shape):
        return jax.random.normal(next(keys), shape, jnp.float32) * 0.02

    z = lambda shape: jnp.zeros(shape, jnp.float32)
    o = lambda shape: jnp.ones(shape, jnp.float32)
    L, NH, DH = NUM_LAYERS, NUM_HEADS, HEAD_DIM

    # per-layer H-wide vectors packed into one slab (fewer tiny DMAs):
    #   0: attn-out bias, 1: ln1 gamma, 2: ln1 beta,
    #   3: ffn-out bias,  4: ln2 gamma, 5: ln2 beta
    layer_vecs = jnp.concatenate([
        z((L, 1, 1, HIDDEN)),   # bo
        o((L, 1, 1, HIDDEN)),   # ln1_g
        z((L, 1, 1, HIDDEN)),   # ln1_b
        z((L, 1, 1, HIDDEN)),   # bf
        o((L, 1, 1, HIDDEN)),   # ln2_g
        z((L, 1, 1, HIDDEN)),   # ln2_b
    ], axis=1)

    return {
        # time_embed: Linear(ht, 4ht) -> SiLU -> Linear(4ht, H)
        "time_w1": w((HIDDEN_T_DIM, 4 * HIDDEN_T_DIM)), "time_b1": z((1, 4 * HIDDEN_T_DIM)),
        "time_w2": w((4 * HIDDEN_T_DIM, HIDDEN)), "time_b2": z((1, HIDDEN)),
        # input_up_proj: Linear(in, H) -> Tanh -> Linear(H, H)
        "up_w1": w((INPUT_DIMS, HIDDEN)), "up_b1": z((1, HIDDEN)),
        "up_w2": w((HIDDEN, HIDDEN)), "up_b2": z((1, HIDDEN)),
        "pos_emb": w((MAX_POS, HIDDEN)),
        "emb_ln_g": o((1, HIDDEN)), "emb_ln_b": z((1, HIDDEN)),
        # per-layer, per-head attention weights (leading [layer, head] axes)
        "wq": w((L, NH, HIDDEN, DH)), "wk": w((L, NH, HIDDEN, DH)), "wv": w((L, NH, HIDDEN, DH)),
        "bq": z((L, NH, 1, DH)), "bk": z((L, NH, 1, DH)), "bv": z((L, NH, 1, DH)),
        "wo": w((L, NH, DH, HIDDEN)),
        "layer_vecs": layer_vecs,
        "wi": w((L, HIDDEN, INTERMEDIATE)), "bi": z((L, 1, INTERMEDIATE)),
        "wf": w((L, INTERMEDIATE, HIDDEN)),
        # output_down_proj: Linear(H, H) -> Tanh -> Linear(H, out)
        "down_w1": w((HIDDEN, HIDDEN)), "down_b1": z((1, HIDDEN)),
        "down_w2": w((HIDDEN, OUTPUT_DIMS)), "down_b2": z((1, OUTPUT_DIMS)),
    }


def bert_forward(params, x, timesteps):
    B, S, _ = x.shape

    t_sin = timestep_embedding(timesteps, HIDDEN_T_DIM)          # (B, ht) trivial XLA op
    x_flat = x.reshape(B * S, INPUT_DIMS).astype(jnp.float32)
    pos = params["pos_emb"][:S, :]                               # position_ids[:, :S]

    # lane-dense output: zero-pad the last projection so the kernel's only HBM
    # store is a full-128-lane unmasked vst; real columns sliced back below.
    pad = OUT_PAD - OUTPUT_DIMS
    down_w2 = jnp.pad(params["down_w2"], ((0, 0), (0, pad)))
    down_b2 = jnp.pad(params["down_b2"], ((0, 0), (0, pad)))

    kernel = functools.partial(
        _bert_fused_kernel,
        batch=B, seq=S, hidden=HIDDEN, num_heads=NUM_HEADS,
        head_dim=HEAD_DIM, num_layers=NUM_LAYERS, eps=LN_EPS)

    args = (
        t_sin, x_flat,
        params["time_w1"], params["time_b1"], params["time_w2"], params["time_b2"],
        params["up_w1"], params["up_b1"], params["up_w2"], params["up_b2"],
        pos, params["emb_ln_g"], params["emb_ln_b"],
        params["wq"], params["wk"], params["wv"],
        params["bq"], params["bk"], params["bv"],
        params["wo"], params["layer_vecs"],
        params["wi"], params["bi"], params["wf"],
        params["down_w1"], params["down_b1"], down_w2, down_b2,
    )

    # whole-array VMEM residency for every operand; single kernel invocation
    vmem_spec = pl.BlockSpec(memory_space=pltpu.MemorySpace.VMEM)
    out = pl.pallas_call(
        kernel,
        out_shape=jax.ShapeDtypeStruct((B * S, OUT_PAD), x.dtype),
        in_specs=[vmem_spec] * len(args),
        out_specs=vmem_spec,
        compiler_params=pltpu.CompilerParams(vmem_limit_bytes=32 * 1024 * 1024),
    )(*args)

    return out[:, :OUTPUT_DIMS].reshape(B, S, OUTPUT_DIMS)


if __name__ == "__main__":
    key = jax.random.PRNGKey(0)
    k_param, k_x, k_t = jax.random.split(key, 3)

    params = init_params(k_param)
    x = jax.random.normal(k_x, (BATCH, SEQ, INPUT_DIMS), jnp.float32)
    timesteps = jax.random.randint(k_t, (BATCH,), 0, 1000).astype(jnp.float32)

    fwd = jax.jit(bert_forward)
    out = jax.block_until_ready(fwd(params, x, timesteps))

    assert out.shape == (BATCH, SEQ, OUTPUT_DIMS), out.shape
    assert out.dtype == x.dtype
    assert bool(jnp.all(jnp.isfinite(out)))
    print("KERNEL_OK")
</pallas_src>

<mosaic_0001>
module attributes {stable_mosaic.version = 11 : i64} {
  func.func @_bert_fused_kernel(%arg0: memref<2x8xf32, #tpu.memory_space<vmem>>, %arg1: memref<16x16xf32, #tpu.memory_space<vmem>>, %arg2: memref<8x32xf32, #tpu.memory_space<vmem>>, %arg3: memref<1x32xf32, #tpu.memory_space<vmem>>, %arg4: memref<32x32xf32, #tpu.memory_space<vmem>>, %arg5: memref<1x32xf32, #tpu.memory_space<vmem>>, %arg6: memref<16x32xf32, #tpu.memory_space<vmem>>, %arg7: memref<1x32xf32, #tpu.memory_space<vmem>>, %arg8: memref<32x32xf32, #tpu.memory_space<vmem>>, %arg9: memref<1x32xf32, #tpu.memory_space<vmem>>, %arg10: memref<8x32xf32, #tpu.memory_space<vmem>>, %arg11: memref<1x32xf32, #tpu.memory_space<vmem>>, %arg12: memref<1x32xf32, #tpu.memory_space<vmem>>, %arg13: memref<2x4x32x8xf32, #tpu.memory_space<vmem>>, %arg14: memref<2x4x32x8xf32, #tpu.memory_space<vmem>>, %arg15: memref<2x4x32x8xf32, #tpu.memory_space<vmem>>, %arg16: memref<2x4x1x8xf32, #tpu.memory_space<vmem>>, %arg17: memref<2x4x1x8xf32, #tpu.memory_space<vmem>>, %arg18: memref<2x4x1x8xf32, #tpu.memory_space<vmem>>, %arg19: memref<2x4x8x32xf32, #tpu.memory_space<vmem>>, %arg20: memref<2x6x1x32xf32, #tpu.memory_space<vmem>>, %arg21: memref<2x32x64xf32, #tpu.memory_space<vmem>>, %arg22: memref<2x1x64xf32, #tpu.memory_space<vmem>>, %arg23: memref<2x64x32xf32, #tpu.memory_space<vmem>>, %arg24: memref<32x32xf32, #tpu.memory_space<vmem>>, %arg25: memref<1x32xf32, #tpu.memory_space<vmem>>, %arg26: memref<32x128xf32, #tpu.memory_space<vmem>>, %arg27: memref<1x128xf32, #tpu.memory_space<vmem>>, %arg28: memref<16x128xf32, #tpu.memory_space<vmem>>) attributes {dimension_semantics = [], scalar_prefetch = 0 : i64, scratch_operands = 0 : i64, tpu.core_type = #tpu.core_type<tc>} {
    %c0 = arith.constant 0 : index
    %c0_0 = arith.constant 0 : index
    %0 = vector.load %arg0[%c0, %c0_0] : memref<2x8xf32, #tpu.memory_space<vmem>>, vector<2x8xf32>
    %c0_1 = arith.constant 0 : index
    %c0_2 = arith.constant 0 : index
    %1 = vector.load %arg2[%c0_1, %c0_2] : memref<8x32xf32, #tpu.memory_space<vmem>>, vector<8x32xf32>
    %cst = arith.constant dense<0.000000e+00> : vector<2x32xf32>
    %2 = tpu.matmul %0, %1, %cst {dimension_numbers = #tpu.dot_dimension_numbers<[1], [0], [0], [1], [0, 0, 1, 1], [], []>} : vector<2x8xf32>, vector<8x32xf32>, vector<2x32xf32> -> vector<2x32xf32>
    %c0_3 = arith.constant 0 : index
    %c0_4 = arith.constant 0 : index
    %3 = vector.load %arg3[%c0_3, %c0_4] : memref<1x32xf32, #tpu.memory_space<vmem>>, vector<1x32xf32>
    %4 = vector.broadcast %3 : vector<1x32xf32> to vector<2x32xf32>
    %5 = arith.addf %2, %4 : vector<2x32xf32>
    %cst_5 = arith.constant 0.000000e+00 : f32
    %6 = vector.broadcast %cst_5 : f32 to vector<2x32xf32>
    %7 = arith.subf %6, %5 : vector<2x32xf32>
    %8 = math.exp %7 : vector<2x32xf32>
    %cst_6 = arith.constant 1.000000e+00 : f32
    %9 = vector.broadcast %cst_6 : f32 to vector<2x32xf32>
    %10 = arith.addf %9, %8 : vector<2x32xf32>
    %cst_7 = arith.constant 1.000000e+00 : f32
    %11 = vector.broadcast %cst_7 : f32 to vector<2x32xf32>
    %12 = arith.divf %11, %10 : vector<2x32xf32>
    %13 = arith.mulf %5, %12 : vector<2x32xf32>
    %c0_8 = arith.constant 0 : index
    %c0_9 = arith.constant 0 : index
    %14 = vector.load %arg4[%c0_8, %c0_9] : memref<32x32xf32, #tpu.memory_space<vmem>>, vector<32x32xf32>
    %cst_10 = arith.constant dense<0.000000e+00> : vector<2x32xf32>
    %15 = tpu.matmul %13, %14, %cst_10 {dimension_numbers = #tpu.dot_dimension_numbers<[1], [0], [0], [1], [0, 0, 1, 1], [], []>} : vector<2x32xf32>, vector<32x32xf32>, vector<2x32xf32> -> vector<2x32xf32>
    %c0_11 = arith.constant 0 : index
    %c0_12 = arith.constant 0 : index
    %16 = vector.load %arg5[%c0_11, %c0_12] : memref<1x32xf32, #tpu.memory_space<vmem>>, vector<1x32xf32>
    %17 = vector.broadcast %16 : vector<1x32xf32> to vector<2x32xf32>
    %18 = arith.addf %15, %17 : vector<2x32xf32>
    %c0_13 = arith.constant 0 : index
    %c0_14 = arith.constant 0 : index
    %19 = vector.load %arg1[%c0_13, %c0_14] : memref<16x16xf32, #tpu.memory_space<vmem>>, vector<16x16xf32>
    %c0_15 = arith.constant 0 : index
    %c0_16 = arith.constant 0 : index
    %20 = vector.load %arg6[%c0_15, %c0_16] : memref<16x32xf32, #tpu.memory_space<vmem>>, vector<16x32xf32>
    %cst_17 = arith.constant dense<0.000000e+00> : vector<16x32xf32>
    %21 = tpu.matmul %19, %20, %cst_17 {dimension_numbers = #tpu.dot_dimension_numbers<[1], [0], [0], [1], [0, 0, 1, 1], [], []>} : vector<16x16xf32>, vector<16x32xf32>, vector<16x32xf32> -> vector<16x32xf32>
    %c0_18 = arith.constant 0 : index
    %c0_19 = arith.constant 0 : index
    %22 = vector.load %arg7[%c0_18, %c0_19] : memref<1x32xf32, #tpu.memory_space<vmem>>, vector<1x32xf32>
    %23 = vector.broadcast %22 : vector<1x32xf32> to vector<16x32xf32>
    %24 = arith.addf %21, %23 : vector<16x32xf32>
    %25 = math.tanh %24 : vector<16x32xf32>
    %c0_20 = arith.constant 0 : index
    %c0_21 = arith.constant 0 : index
    %26 = vector.load %arg8[%c0_20, %c0_21] : memref<32x32xf32, #tpu.memory_space<vmem>>, vector<32x32xf32>
    %cst_22 = arith.constant dense<0.000000e+00> : vector<16x32xf32>
    %27 = tpu.matmul %25, %26, %cst_22 {dimension_numbers = #tpu.dot_dimension_numbers<[1], [0], [0], [1], [0, 0, 1, 1], [], []>} : vector<16x32xf32>, vector<32x32xf32>, vector<16x32xf32> -> vector<16x32xf32>
    %c0_23 = arith.constant 0 : index
    %c0_24 = arith.constant 0 : index
    %28 = vector.load %arg9[%c0_23, %c0_24] : memref<1x32xf32, #tpu.memory_space<vmem>>, vector<1x32xf32>
    %29 = vector.broadcast %28 : vector<1x32xf32> to vector<16x32xf32>
    %30 = arith.addf %27, %29 : vector<16x32xf32>
    %31 = vector.shape_cast %30 : vector<16x32xf32> to vector<2x8x32xf32>
    %c0_25 = arith.constant 0 : index
    %c0_26 = arith.constant 0 : index
    %32 = vector.load %arg10[%c0_25, %c0_26] : memref<8x32xf32, #tpu.memory_space<vmem>>, vector<8x32xf32>
    %33 = vector.shape_cast %32 : vector<8x32xf32> to vector<1x8x32xf32>
    %34 = vector.broadcast %33 : vector<1x8x32xf32> to vector<2x8x32xf32>
    %35 = arith.addf %31, %34 : vector<2x8x32xf32>
    %36 = vector.shape_cast %18 : vector<2x32xf32> to vector<2x1x32xf32>
    %37 = vector.broadcast %36 : vector<2x1x32xf32> to vector<2x8x32xf32>
    %38 = arith.addf %35, %37 : vector<2x8x32xf32>
    %39 = vector.shape_cast %38 : vector<2x8x32xf32> to vector<16x32xf32>
    %c0_27 = arith.constant 0 : index
    %c0_28 = arith.constant 0 : index
    %40 = vector.load %arg11[%c0_27, %c0_28] : memref<1x32xf32, #tpu.memory_space<vmem>>, vector<1x32xf32>
    %c0_29 = arith.constant 0 : index
    %c0_30 = arith.constant 0 : index
    %41 = vector.load %arg12[%c0_29, %c0_30] : memref<1x32xf32, #tpu.memory_space<vmem>>, vector<1x32xf32>
    %cst_31 = arith.constant dense<0.000000e+00> : vector<16xf32>
    %42 = vector.multi_reduction <add>, %39, %cst_31 [1] : vector<16x32xf32> to vector<16xf32>
    %43 = vector.shape_cast %42 : vector<16xf32> to vector<16x1xf32>
    %cst_32 = arith.constant 3.200000e+01 : f32
    %44 = vector.broadcast %cst_32 : f32 to vector<16x1xf32>
    %45 = arith.divf %43, %44 : vector<16x1xf32>
    %46 = vector.broadcast %45 : vector<16x1xf32> to vector<16x32xf32>
    %47 = arith.subf %39, %46 : vector<16x32xf32>
    %48 = arith.mulf %47, %47 : vector<16x32xf32>
    %cst_33 = arith.constant dense<0.000000e+00> : vector<16xf32>
    %49 = vector.multi_reduction <add>, %48, %cst_33 [1] : vector<16x32xf32> to vector<16xf32>
    %50 = vector.shape_cast %49 : vector<16xf32> to vector<16x1xf32>
    %cst_34 = arith.constant 3.200000e+01 : f32
    %51 = vector.broadcast %cst_34 : f32 to vector<16x1xf32>
    %52 = arith.divf %50, %51 : vector<16x1xf32>
    %cst_35 = arith.constant 9.99999996E-13 : f32
    %53 = vector.broadcast %cst_35 : f32 to vector<16x1xf32>
    %54 = arith.addf %52, %53 : vector<16x1xf32>
    %55 = math.rsqrt %54 : vector<16x1xf32>
    %56 = vector.broadcast %55 : vector<16x1xf32> to vector<16x32xf32>
    %57 = arith.mulf %47, %56 : vector<16x32xf32>
    %58 = vector.broadcast %40 : vector<1x32xf32> to vector<16x32xf32>
    %59 = arith.mulf %57, %58 : vector<16x32xf32>
    %60 = vector.broadcast %41 : vector<1x32xf32> to vector<16x32xf32>
    %61 = arith.addf %59, %60 : vector<16x32xf32>
    %c0_36 = arith.constant 0 : index
    %c0_37 = arith.constant 0 : index
    %c0_38 = arith.constant 0 : index
    %c0_39 = arith.constant 0 : index
    %62 = vector.load %arg20[%c0_36, %c0_37, %c0_38, %c0_39] : memref<2x6x1x32xf32, #tpu.memory_space<vmem>>, vector<1x1x1x32xf32>
    %63 = vector.shape_cast %62 : vector<1x1x1x32xf32> to vector<1x32xf32>
    %c0_40 = arith.constant 0 : index
    %c1 = arith.constant 1 : index
    %c0_41 = arith.constant 0 : index
    %c0_42 = arith.constant 0 : index
    %64 = vector.load %arg20[%c0_40, %c1, %c0_41, %c0_42] : memref<2x6x1x32xf32, #tpu.memory_space<vmem>>, vector<1x1x1x32xf32>
    %65 = vector.shape_cast %64 : vector<1x1x1x32xf32> to vector<1x32xf32>
    %c0_43 = arith.constant 0 : index
    %c2 = arith.constant 2 : index
    %c0_44 = arith.constant 0 : index
    %c0_45 = arith.constant 0 : index
    %66 = vector.load %arg20[%c0_43, %c2, %c0_44, %c0_45] : memref<2x6x1x32xf32, #tpu.memory_space<vmem>>, vector<1x1x1x32xf32>
    %67 = vector.shape_cast %66 : vector<1x1x1x32xf32> to vector<1x32xf32>
    %c0_46 = arith.constant 0 : index
    %c3 = arith.constant 3 : index
    %c0_47 = arith.constant 0 : index
    %c0_48 = arith.constant 0 : index
    %68 = vector.load %arg20[%c0_46, %c3, %c0_47, %c0_48] : memref<2x6x1x32xf32, #tpu.memory_space<vmem>>, vector<1x1x1x32xf32>
    %69 = vector.shape_cast %68 : vector<1x1x1x32xf32> to vector<1x32xf32>
    %c0_49 = arith.constant 0 : index
    %c4 = arith.constant 4 : index
    %c0_50 = arith.constant 0 : index
    %c0_51 = arith.constant 0 : index
    %70 = vector.load %arg20[%c0_49, %c4, %c0_50, %c0_51] : memref<2x6x1x32xf32, #tpu.memory_space<vmem>>, vector<1x1x1x32xf32>
    %71 = vector.shape_cast %70 : vector<1x1x1x32xf32> to vector<1x32xf32>
    %c0_52 = arith.constant 0 : index
    %c5 = arith.constant 5 : index
    %c0_53 = arith.constant 0 : index
    %c0_54 = arith.constant 0 : index
    %72 = vector.load %arg20[%c0_52, %c5, %c0_53, %c0_54] : memref<2x6x1x32xf32, #tpu.memory_space<vmem>>, vector<1x1x1x32xf32>
    %73 = vector.shape_cast %72 : vector<1x1x1x32xf32> to vector<1x32xf32>
    %c0_55 = arith.constant 0 : index
    %c0_56 = arith.constant 0 : index
    %c0_57 = arith.constant 0 : index
    %c0_58 = arith.constant 0 : index
    %74 = vector.load %arg13[%c0_55, %c0_56, %c0_57, %c0_58] : memref<2x4x32x8xf32, #tpu.memory_space<vmem>>, vector<1x1x32x8xf32>
    %75 = vector.shape_cast %74 : vector<1x1x32x8xf32> to vector<32x8xf32>
    %cst_59 = arith.constant dense<0.000000e+00> : vector<16x8xf32>
    %76 = tpu.matmul %61, %75, %cst_59 {dimension_numbers = #tpu.dot_dimension_numbers<[1], [0], [0], [1], [0, 0, 1, 1], [], []>} : vector<16x32xf32>, vector<32x8xf32>, vector<16x8xf32> -> vector<16x8xf32>
    %c0_60 = arith.constant 0 : index
    %c0_61 = arith.constant 0 : index
    %c0_62 = arith.constant 0 : index
    %c0_63 = arith.constant 0 : index
    %77 = vector.load %arg16[%c0_60, %c0_61, %c0_62, %c0_63] : memref<2x4x1x8xf32, #tpu.memory_space<vmem>>, vector<1x1x1x8xf32>
    %78 = vector.shape_cast %77 : vector<1x1x1x8xf32> to vector<1x8xf32>
    %79 = vector.broadcast %78 : vector<1x8xf32> to vector<16x8xf32>
    %80 = arith.addf %76, %79 : vector<16x8xf32>
    %cst_64 = arith.constant 0.353553385 : f32
    %81 = vector.broadcast %cst_64 : f32 to vector<16x8xf32>
    %82 = arith.mulf %80, %81 : vector<16x8xf32>
    %c0_65 = arith.constant 0 : index
    %c0_66 = arith.constant 0 : index
    %c0_67 = arith.constant 0 : index
    %c0_68 = arith.constant 0 : index
    %83 = vector.load %arg14[%c0_65, %c0_66, %c0_67, %c0_68] : memref<2x4x32x8xf32, #tpu.memory_space<vmem>>, vector<1x1x32x8xf32>
    %84 = vector.shape_cast %83 : vector<1x1x32x8xf32> to vector<32x8xf32>
    %cst_69 = arith.constant dense<0.000000e+00> : vector<16x8xf32>
    %85 = tpu.matmul %61, %84, %cst_69 {dimension_numbers = #tpu.dot_dimension_numbers<[1], [0], [0], [1], [0, 0, 1, 1], [], []>} : vector<16x32xf32>, vector<32x8xf32>, vector<16x8xf32> -> vector<16x8xf32>
    %c0_70 = arith.constant 0 : index
    %c0_71 = arith.constant 0 : index
    %c0_72 = arith.constant 0 : index
    %c0_73 = arith.constant 0 : index
    %86 = vector.load %arg17[%c0_70, %c0_71, %c0_72, %c0_73] : memref<2x4x1x8xf32, #tpu.memory_space<vmem>>, vector<1x1x1x8xf32>
    %87 = vector.shape_cast %86 : vector<1x1x1x8xf32> to vector<1x8xf32>
    %88 = vector.broadcast %87 : vector<1x8xf32> to vector<16x8xf32>
    %89 = arith.addf %85, %88 : vector<16x8xf32>
    %c0_74 = arith.constant 0 : index
    %c0_75 = arith.constant 0 : index
    %c0_76 = arith.constant 0 : index
    %c0_77 = arith.constant 0 : index
    %90 = vector.load %arg15[%c0_74, %c0_75, %c0_76, %c0_77] : memref<2x4x32x8xf32, #tpu.memory_space<vmem>>, vector<1x1x32x8xf32>
    %91 = vector.shape_cast %90 : vector<1x1x32x8xf32> to vector<32x8xf32>
    %cst_78 = arith.constant dense<0.000000e+00> : vector<16x8xf32>
    %92 = tpu.matmul %61, %91, %cst_78 {dimension_numbers = #tpu.dot_dimension_numbers<[1], [0], [0], [1], [0, 0, 1, 1], [], []>} : vector<16x32xf32>, vector<32x8xf32>, vector<16x8xf32> -> vector<16x8xf32>
    %c0_79 = arith.constant 0 : index
    %c0_80 = arith.constant 0 : index
    %c0_81 = arith.constant 0 : index
    %c0_82 = arith.constant 0 : index
    %93 = vector.load %arg18[%c0_79, %c0_80, %c0_81, %c0_82] : memref<2x4x1x8xf32, #tpu.memory_space<vmem>>, vector<1x1x1x8xf32>
    %94 = vector.shape_cast %93 : vector<1x1x1x8xf32> to vector<1x8xf32>
    %95 = vector.broadcast %94 : vector<1x8xf32> to vector<16x8xf32>
    %96 = arith.addf %92, %95 : vector<16x8xf32>
    %97 = vector.shape_cast %82 : vector<16x8xf32> to vector<2x8x8xf32>
    %98 = vector.shape_cast %89 : vector<16x8xf32> to vector<2x8x8xf32>
    %99 = vector.shape_cast %96 : vector<16x8xf32> to vector<2x8x8xf32>
    "tpu.trace_start"() <{level = 10 : i32, message = "bqd,bkd->bqk"}> : () -> ()
    %cst_83 = arith.constant dense<0.000000e+00> : vector<2x8x8xf32>
    %100 = tpu.matmul %97, %98, %cst_83 {dimension_numbers = #tpu.dot_dimension_numbers<[2], [2], [1], [1], [0, 0, 0, 1, 1, 1], [0], [0]>} : vector<2x8x8xf32>, vector<2x8x8xf32>, vector<2x8x8xf32> -> vector<2x8x8xf32>
    "tpu.trace_stop"() : () -> ()
    %cst_84 = arith.constant dense<0xFF800000> : vector<2x8xf32>
    %101 = vector.multi_reduction <maximumf>, %100, %cst_84 [2] : vector<2x8x8xf32> to vector<2x8xf32>
    %102 = vector.shape_cast %101 : vector<2x8xf32> to vector<2x8x1xf32>
    %103 = vector.broadcast %102 : vector<2x8x1xf32> to vector<2x8x8xf32>
    %104 = arith.subf %100, %103 : vector<2x8x8xf32>
    %105 = math.exp %104 : vector<2x8x8xf32>
    %cst_85 = arith.constant dense<0.000000e+00> : vector<2x8xf32>
    %106 = vector.multi_reduction <add>, %105, %cst_85 [2] : vector<2x8x8xf32> to vector<2x8xf32>
    %107 = vector.shape_cast %106 : vector<2x8xf32> to vector<2x8x1xf32>
    %108 = vector.broadcast %107 : vector<2x8x1xf32> to vector<2x8x8xf32>
    %109 = arith.divf %105, %108 : vector<2x8x8xf32>
    "tpu.trace_start"() <{level = 10 : i32, message = "bqk,bkd->bqd"}> : () -> ()
    %cst_86 = arith.constant dense<0.000000e+00> : vector<2x8x8xf32>
    %110 = tpu.matmul %109, %99, %cst_86 {dimension_numbers = #tpu.dot_dimension_numbers<[2], [1], [1], [2], [0, 0, 0, 1, 1, 2], [0], [0]>} : vector<2x8x8xf32>, vector<2x8x8xf32>, vector<2x8x8xf32> -> vector<2x8x8xf32>
    "tpu.trace_stop"() : () -> ()
    %111 = vector.shape_cast %110 : vector<2x8x8xf32> to vector<16x8xf32>
    %c0_87 = arith.constant 0 : index
    %c0_88 = arith.constant 0 : index
    %c0_89 = arith.constant 0 : index
    %c0_90 = arith.constant 0 : index
    %112 = vector.load %arg19[%c0_87, %c0_88, %c0_89, %c0_90] : memref<2x4x8x32xf32, #tpu.memory_space<vmem>>, vector<1x1x8x32xf32>
    %113 = vector.shape_cast %112 : vector<1x1x8x32xf32> to vector<8x32xf32>
    %cst_91 = arith.constant dense<0.000000e+00> : vector<16x32xf32>
    %114 = tpu.matmul %111, %113, %cst_91 {dimension_numbers = #tpu.dot_dimension_numbers<[1], [0], [0], [1], [0, 0, 1, 1], [], []>} : vector<16x8xf32>, vector<8x32xf32>, vector<16x32xf32> -> vector<16x32xf32>
    %c0_92 = arith.constant 0 : index
    %c1_93 = arith.constant 1 : index
    %c0_94 = arith.constant 0 : index
    %c0_95 = arith.constant 0 : index
    %115 = vector.load %arg13[%c0_92, %c1_93, %c0_94, %c0_95] : memref<2x4x32x8xf32, #tpu.memory_space<vmem>>, vector<1x1x32x8xf32>
    %116 = vector.shape_cast %115 : vector<1x1x32x8xf32> to vector<32x8xf32>
    %cst_96 = arith.constant dense<0.000000e+00> : vector<16x8xf32>
    %117 = tpu.matmul %61, %116, %cst_96 {dimension_numbers = #tpu.dot_dimension_numbers<[1], [0], [0], [1], [0, 0, 1, 1], [], []>} : vector<16x32xf32>, vector<32x8xf32>, vector<16x8xf32> -> vector<16x8xf32>
    %c0_97 = arith.constant 0 : index
    %c1_98 = arith.constant 1 : index
    %c0_99 = arith.constant 0 : index
    %c0_100 = arith.constant 0 : index
    %118 = vector.load %arg16[%c0_97, %c1_98, %c0_99, %c0_100] : memref<2x4x1x8xf32, #tpu.memory_space<vmem>>, vector<1x1x1x8xf32>
    %119 = vector.shape_cast %118 : vector<1x1x1x8xf32> to vector<1x8xf32>
    %120 = vector.broadcast %119 : vector<1x8xf32> to vector<16x8xf32>
    %121 = arith.addf %117, %120 : vector<16x8xf32>
    %cst_101 = arith.constant 0.353553385 : f32
    %122 = vector.broadcast %cst_101 : f32 to vector<16x8xf32>
    %123 = arith.mulf %121, %122 : vector<16x8xf32>
    %c0_102 = arith.constant 0 : index
    %c1_103 = arith.constant 1 : index
    %c0_104 = arith.constant 0 : index
    %c0_105 = arith.constant 0 : index
    %124 = vector.load %arg14[%c0_102, %c1_103, %c0_104, %c0_105] : memref<2x4x32x8xf32, #tpu.memory_space<vmem>>, vector<1x1x32x8xf32>
    %125 = vector.shape_cast %124 : vector<1x1x32x8xf32> to vector<32x8xf32>
    %cst_106 = arith.constant dense<0.000000e+00> : vector<16x8xf32>
    %126 = tpu.matmul %61, %125, %cst_106 {dimension_numbers = #tpu.dot_dimension_numbers<[1], [0], [0], [1], [0, 0, 1, 1], [], []>} : vector<16x32xf32>, vector<32x8xf32>, vector<16x8xf32> -> vector<16x8xf32>
    %c0_107 = arith.constant 0 : index
    %c1_108 = arith.constant 1 : index
    %c0_109 = arith.constant 0 : index
    %c0_110 = arith.constant 0 : index
    %127 = vector.load %arg17[%c0_107, %c1_108, %c0_109, %c0_110] : memref<2x4x1x8xf32, #tpu.memory_space<vmem>>, vector<1x1x1x8xf32>
    %128 = vector.shape_cast %127 : vector<1x1x1x8xf32> to vector<1x8xf32>
    %129 = vector.broadcast %128 : vector<1x8xf32> to vector<16x8xf32>
    %130 = arith.addf %126, %129 : vector<16x8xf32>
    %c0_111 = arith.constant 0 : index
    %c1_112 = arith.constant 1 : index
    %c0_113 = arith.constant 0 : index
    %c0_114 = arith.constant 0 : index
    %131 = vector.load %arg15[%c0_111, %c1_112, %c0_113, %c0_114] : memref<2x4x32x8xf32, #tpu.memory_space<vmem>>, vector<1x1x32x8xf32>
    %132 = vector.shape_cast %131 : vector<1x1x32x8xf32> to vector<32x8xf32>
    %cst_115 = arith.constant dense<0.000000e+00> : vector<16x8xf32>
    %133 = tpu.matmul %61, %132, %cst_115 {dimension_numbers = #tpu.dot_dimension_numbers<[1], [0], [0], [1], [0, 0, 1, 1], [], []>} : vector<16x32xf32>, vector<32x8xf32>, vector<16x8xf32> -> vector<16x8xf32>
    %c0_116 = arith.constant 0 : index
    %c1_117 = arith.constant 1 : index
    %c0_118 = arith.constant 0 : index
    %c0_119 = arith.constant 0 : index
    %134 = vector.load %arg18[%c0_116, %c1_117, %c0_118, %c0_119] : memref<2x4x1x8xf32, #tpu.memory_space<vmem>>, vector<1x1x1x8xf32>
    %135 = vector.shape_cast %134 : vector<1x1x1x8xf32> to vector<1x8xf32>
    %136 = vector.broadcast %135 : vector<1x8xf32> to vector<16x8xf32>
    %137 = arith.addf %133, %136 : vector<16x8xf32>
    %138 = vector.shape_cast %123 : vector<16x8xf32> to vector<2x8x8xf32>
    %139 = vector.shape_cast %130 : vector<16x8xf32> to vector<2x8x8xf32>
    %140 = vector.shape_cast %137 : vector<16x8xf32> to vector<2x8x8xf32>
    "tpu.trace_start"() <{level = 10 : i32, message = "bqd,bkd->bqk"}> : () -> ()
    %cst_120 = arith.constant dense<0.000000e+00> : vector<2x8x8xf32>
    %141 = tpu.matmul %138, %139, %cst_120 {dimension_numbers = #tpu.dot_dimension_numbers<[2], [2], [1], [1], [0, 0, 0, 1, 1, 1], [0], [0]>} : vector<2x8x8xf32>, vector<2x8x8xf32>, vector<2x8x8xf32> -> vector<2x8x8xf32>
    "tpu.trace_stop"() : () -> ()
    %cst_121 = arith.constant dense<0xFF800000> : vector<2x8xf32>
    %142 = vector.multi_reduction <maximumf>, %141, %cst_121 [2] : vector<2x8x8xf32> to vector<2x8xf32>
    %143 = vector.shape_cast %142 : vector<2x8xf32> to vector<2x8x1xf32>
    %144 = vector.broadcast %143 : vector<2x8x1xf32> to vector<2x8x8xf32>
    %145 = arith.subf %141, %144 : vector<2x8x8xf32>
    %146 = math.exp %145 : vector<2x8x8xf32>
    %cst_122 = arith.constant dense<0.000000e+00> : vector<2x8xf32>
    %147 = vector.multi_reduction <add>, %146, %cst_122 [2] : vector<2x8x8xf32> to vector<2x8xf32>
    %148 = vector.shape_cast %147 : vector<2x8xf32> to vector<2x8x1xf32>
    %149 = vector.broadcast %148 : vector<2x8x1xf32> to vector<2x8x8xf32>
    %150 = arith.divf %146, %149 : vector<2x8x8xf32>
    "tpu.trace_start"() <{level = 10 : i32, message = "bqk,bkd->bqd"}> : () -> ()
    %cst_123 = arith.constant dense<0.000000e+00> : vector<2x8x8xf32>
    %151 = tpu.matmul %150, %140, %cst_123 {dimension_numbers = #tpu.dot_dimension_numbers<[2], [1], [1], [2], [0, 0, 0, 1, 1, 2], [0], [0]>} : vector<2x8x8xf32>, vector<2x8x8xf32>, vector<2x8x8xf32> -> vector<2x8x8xf32>
    "tpu.trace_stop"() : () -> ()
    %152 = vector.shape_cast %151 : vector<2x8x8xf32> to vector<16x8xf32>
    %c0_124 = arith.constant 0 : index
    %c1_125 = arith.constant 1 : index
    %c0_126 = arith.constant 0 : index
    %c0_127 = arith.constant 0 : index
    %153 = vector.load %arg19[%c0_124, %c1_125, %c0_126, %c0_127] : memref<2x4x8x32xf32, #tpu.memory_space<vmem>>, vector<1x1x8x32xf32>
    %154 = vector.shape_cast %153 : vector<1x1x8x32xf32> to vector<8x32xf32>
    %cst_128 = arith.constant dense<0.000000e+00> : vector<16x32xf32>
    %155 = tpu.matmul %152, %154, %cst_128 {dimension_numbers = #tpu.dot_dimension_numbers<[1], [0], [0], [1], [0, 0, 1, 1], [], []>} : vector<16x8xf32>, vector<8x32xf32>, vector<16x32xf32> -> vector<16x32xf32>
    %156 = arith.addf %114, %155 : vector<16x32xf32>
    %c0_129 = arith.constant 0 : index
    %c2_130 = arith.constant 2 : index
    %c0_131 = arith.constant 0 : index
    %c0_132 = arith.constant 0 : index
    %157 = vector.load %arg13[%c0_129, %c2_130, %c0_131, %c0_132] : memref<2x4x32x8xf32, #tpu.memory_space<vmem>>, vector<1x1x32x8xf32>
    %158 = vector.shape_cast %157 : vector<1x1x32x8xf32> to vector<32x8xf32>
    %cst_133 = arith.constant dense<0.000000e+00> : vector<16x8xf32>
    %159 = tpu.matmul %61, %158, %cst_133 {dimension_numbers = #tpu.dot_dimension_numbers<[1], [0], [0], [1], [0, 0, 1, 1], [], []>} : vector<16x32xf32>, vector<32x8xf32>, vector<16x8xf32> -> vector<16x8xf32>
    %c0_134 = arith.constant 0 : index
    %c2_135 = arith.constant 2 : index
    %c0_136 = arith.constant 0 : index
    %c0_137 = arith.constant 0 : index
    %160 = vector.load %arg16[%c0_134, %c2_135, %c0_136, %c0_137] : memref<2x4x1x8xf32, #tpu.memory_space<vmem>>, vector<1x1x1x8xf32>
    %161 = vector.shape_cast %160 : vector<1x1x1x8xf32> to vector<1x8xf32>
    %162 = vector.broadcast %161 : vector<1x8xf32> to vector<16x8xf32>
    %163 = arith.addf %159, %162 : vector<16x8xf32>
    %cst_138 = arith.constant 0.353553385 : f32
    %164 = vector.broadcast %cst_138 : f32 to vector<16x8xf32>
    %165 = arith.mulf %163, %164 : vector<16x8xf32>
    %c0_139 = arith.constant 0 : index
    %c2_140 = arith.constant 2 : index
    %c0_141 = arith.constant 0 : index
    %c0_142 = arith.constant 0 : index
    %166 = vector.load %arg14[%c0_139, %c2_140, %c0_141, %c0_142] : memref<2x4x32x8xf32, #tpu.memory_space<vmem>>, vector<1x1x32x8xf32>
    %167 = vector.shape_cast %166 : vector<1x1x32x8xf32> to vector<32x8xf32>
    %cst_143 = arith.constant dense<0.000000e+00> : vector<16x8xf32>
    %168 = tpu.matmul %61, %167, %cst_143 {dimension_numbers = #tpu.dot_dimension_numbers<[1], [0], [0], [1], [0, 0, 1, 1], [], []>} : vector<16x32xf32>, vector<32x8xf32>, vector<16x8xf32> -> vector<16x8xf32>
    %c0_144 = arith.constant 0 : index
    %c2_145 = arith.constant 2 : index
    %c0_146 = arith.constant 0 : index
    %c0_147 = arith.constant 0 : index
    %169 = vector.load %arg17[%c0_144, %c2_145, %c0_146, %c0_147] : memref<2x4x1x8xf32, #tpu.memory_space<vmem>>, vector<1x1x1x8xf32>
    %170 = vector.shape_cast %169 : vector<1x1x1x8xf32> to vector<1x8xf32>
    %171 = vector.broadcast %170 : vector<1x8xf32> to vector<16x8xf32>
    %172 = arith.addf %168, %171 : vector<16x8xf32>
    %c0_148 = arith.constant 0 : index
    %c2_149 = arith.constant 2 : index
    %c0_150 = arith.constant 0 : index
    %c0_151 = arith.constant 0 : index
    %173 = vector.load %arg15[%c0_148, %c2_149, %c0_150, %c0_151] : memref<2x4x32x8xf32, #tpu.memory_space<vmem>>, vector<1x1x32x8xf32>
    %174 = vector.shape_cast %173 : vector<1x1x32x8xf32> to vector<32x8xf32>
    %cst_152 = arith.constant dense<0.000000e+00> : vector<16x8xf32>
    %175 = tpu.matmul %61, %174, %cst_152 {dimension_numbers = #tpu.dot_dimension_numbers<[1], [0], [0], [1], [0, 0, 1, 1], [], []>} : vector<16x32xf32>, vector<32x8xf32>, vector<16x8xf32> -> vector<16x8xf32>
    %c0_153 = arith.constant 0 : index
    %c2_154 = arith.constant 2 : index
    %c0_155 = arith.constant 0 : index
    %c0_156 = arith.constant 0 : index
    %176 = vector.load %arg18[%c0_153, %c2_154, %c0_155, %c0_156] : memref<2x4x1x8xf32, #tpu.memory_space<vmem>>, vector<1x1x1x8xf32>
    %177 = vector.shape_cast %176 : vector<1x1x1x8xf32> to vector<1x8xf32>
    %178 = vector.broadcast %177 : vector<1x8xf32> to vector<16x8xf32>
    %179 = arith.addf %175, %178 : vector<16x8xf32>
    %180 = vector.shape_cast %165 : vector<16x8xf32> to vector<2x8x8xf32>
    %181 = vector.shape_cast %172 : vector<16x8xf32> to vector<2x8x8xf32>
    %182 = vector.shape_cast %179 : vector<16x8xf32> to vector<2x8x8xf32>
    "tpu.trace_start"() <{level = 10 : i32, message = "bqd,bkd->bqk"}> : () -> ()
    %cst_157 = arith.constant dense<0.000000e+00> : vector<2x8x8xf32>
    %183 = tpu.matmul %180, %181, %cst_157 {dimension_numbers = #tpu.dot_dimension_numbers<[2], [2], [1], [1], [0, 0, 0, 1, 1, 1], [0], [0]>} : vector<2x8x8xf32>, vector<2x8x8xf32>, vector<2x8x8xf32> -> vector<2x8x8xf32>
    "tpu.trace_stop"() : () -> ()
    %cst_158 = arith.constant dense<0xFF800000> : vector<2x8xf32>
    %184 = vector.multi_reduction <maximumf>, %183, %cst_158 [2] : vector<2x8x8xf32> to vector<2x8xf32>
    %185 = vector.shape_cast %184 : vector<2x8xf32> to vector<2x8x1xf32>
    %186 = vector.broadcast %185 : vector<2x8x1xf32> to vector<2x8x8xf32>
    %187 = arith.subf %183, %186 : vector<2x8x8xf32>
    %188 = math.exp %187 : vector<2x8x8xf32>
    %cst_159 = arith.constant dense<0.000000e+00> : vector<2x8xf32>
    %189 = vector.multi_reduction <add>, %188, %cst_159 [2] : vector<2x8x8xf32> to vector<2x8xf32>
    %190 = vector.shape_cast %189 : vector<2x8xf32> to vector<2x8x1xf32>
    %191 = vector.broadcast %190 : vector<2x8x1xf32> to vector<2x8x8xf32>
    %192 = arith.divf %188, %191 : vector<2x8x8xf32>
    "tpu.trace_start"() <{level = 10 : i32, message = "bqk,bkd->bqd"}> : () -> ()
    %cst_160 = arith.constant dense<0.000000e+00> : vector<2x8x8xf32>
    %193 = tpu.matmul %192, %182, %cst_160 {dimension_numbers = #tpu.dot_dimension_numbers<[2], [1], [1], [2], [0, 0, 0, 1, 1, 2], [0], [0]>} : vector<2x8x8xf32>, vector<2x8x8xf32>, vector<2x8x8xf32> -> vector<2x8x8xf32>
    "tpu.trace_stop"() : () -> ()
    %194 = vector.shape_cast %193 : vector<2x8x8xf32> to vector<16x8xf32>
    %c0_161 = arith.constant 0 : index
    %c2_162 = arith.constant 2 : index
    %c0_163 = arith.constant 0 : index
    %c0_164 = arith.constant 0 : index
    %195 = vector.load %arg19[%c0_161, %c2_162, %c0_163, %c0_164] : memref<2x4x8x32xf32, #tpu.memory_space<vmem>>, vector<1x1x8x32xf32>
    %196 = vector.shape_cast %195 : vector<1x1x8x32xf32> to vector<8x32xf32>
    %cst_165 = arith.constant dense<0.000000e+00> : vector<16x32xf32>
    %197 = tpu.matmul %194, %196, %cst_165 {dimension_numbers = #tpu.dot_dimension_numbers<[1], [0], [0], [1], [0, 0, 1, 1], [], []>} : vector<16x8xf32>, vector<8x32xf32>, vector<16x32xf32> -> vector<16x32xf32>
    %198 = arith.addf %156, %197 : vector<16x32xf32>
    %c0_166 = arith.constant 0 : index
    %c3_167 = arith.constant 3 : index
    %c0_168 = arith.constant 0 : index
    %c0_169 = arith.constant 0 : index
    %199 = vector.load %arg13[%c0_166, %c3_167, %c0_168, %c0_169] : memref<2x4x32x8xf32, #tpu.memory_space<vmem>>, vector<1x1x32x8xf32>
    %200 = vector.shape_cast %199 : vector<1x1x32x8xf32> to vector<32x8xf32>
    %cst_170 = arith.constant dense<0.000000e+00> : vector<16x8xf32>
    %201 = tpu.matmul %61, %200, %cst_170 {dimension_numbers = #tpu.dot_dimension_numbers<[1], [0], [0], [1], [0, 0, 1, 1], [], []>} : vector<16x32xf32>, vector<32x8xf32>, vector<16x8xf32> -> vector<16x8xf32>
    %c0_171 = arith.constant 0 : index
    %c3_172 = arith.constant 3 : index
    %c0_173 = arith.constant 0 : index
    %c0_174 = arith.constant 0 : index
    %202 = vector.load %arg16[%c0_171, %c3_172, %c0_173, %c0_174] : memref<2x4x1x8xf32, #tpu.memory_space<vmem>>, vector<1x1x1x8xf32>
    %203 = vector.shape_cast %202 : vector<1x1x1x8xf32> to vector<1x8xf32>
    %204 = vector.broadcast %203 : vector<1x8xf32> to vector<16x8xf32>
    %205 = arith.addf %201, %204 : vector<16x8xf32>
    %cst_175 = arith.constant 0.353553385 : f32
    %206 = vector.broadcast %cst_175 : f32 to vector<16x8xf32>
    %207 = arith.mulf %205, %206 : vector<16x8xf32>
    %c0_176 = arith.constant 0 : index
    %c3_177 = arith.constant 3 : index
    %c0_178 = arith.constant 0 : index
    %c0_179 = arith.constant 0 : index
    %208 = vector.load %arg14[%c0_176, %c3_177, %c0_178, %c0_179] : memref<2x4x32x8xf32, #tpu.memory_space<vmem>>, vector<1x1x32x8xf32>
    %209 = vector.shape_cast %208 : vector<1x1x32x8xf32> to vector<32x8xf32>
    %cst_180 = arith.constant dense<0.000000e+00> : vector<16x8xf32>
    %210 = tpu.matmul %61, %209, %cst_180 {dimension_numbers = #tpu.dot_dimension_numbers<[1], [0], [0], [1], [0, 0, 1, 1], [], []>} : vector<16x32xf32>, vector<32x8xf32>, vector<16x8xf32> -> vector<16x8xf32>
    %c0_181 = arith.constant 0 : index
    %c3_182 = arith.constant 3 : index
    %c0_183 = arith.constant 0 : index
    %c0_184 = arith.constant 0 : index
    %211 = vector.load %arg17[%c0_181, %c3_182, %c0_183, %c0_184] : memref<2x4x1x8xf32, #tpu.memory_space<vmem>>, vector<1x1x1x8xf32>
    %212 = vector.shape_cast %211 : vector<1x1x1x8xf32> to vector<1x8xf32>
    %213 = vector.broadcast %212 : vector<1x8xf32> to vector<16x8xf32>
    %214 = arith.addf %210, %213 : vector<16x8xf32>
    %c0_185 = arith.constant 0 : index
    %c3_186 = arith.constant 3 : index
    %c0_187 = arith.constant 0 : index
    %c0_188 = arith.constant 0 : index
    %215 = vector.load %arg15[%c0_185, %c3_186, %c0_187, %c0_188] : memref<2x4x32x8xf32, #tpu.memory_space<vmem>>, vector<1x1x32x8xf32>
    %216 = vector.shape_cast %215 : vector<1x1x32x8xf32> to vector<32x8xf32>
    %cst_189 = arith.constant dense<0.000000e+00> : vector<16x8xf32>
    %217 = tpu.matmul %61, %216, %cst_189 {dimension_numbers = #tpu.dot_dimension_numbers<[1], [0], [0], [1], [0, 0, 1, 1], [], []>} : vector<16x32xf32>, vector<32x8xf32>, vector<16x8xf32> -> vector<16x8xf32>
    %c0_190 = arith.constant 0 : index
    %c3_191 = arith.constant 3 : index
    %c0_192 = arith.constant 0 : index
    %c0_193 = arith.constant 0 : index
    %218 = vector.load %arg18[%c0_190, %c3_191, %c0_192, %c0_193] : memref<2x4x1x8xf32, #tpu.memory_space<vmem>>, vector<1x1x1x8xf32>
    %219 = vector.shape_cast %218 : vector<1x1x1x8xf32> to vector<1x8xf32>
    %220 = vector.broadcast %219 : vector<1x8xf32> to vector<16x8xf32>
    %221 = arith.addf %217, %220 : vector<16x8xf32>
    %222 = vector.shape_cast %207 : vector<16x8xf32> to vector<2x8x8xf32>
    %223 = vector.shape_cast %214 : vector<16x8xf32> to vector<2x8x8xf32>
    %224 = vector.shape_cast %221 : vector<16x8xf32> to vector<2x8x8xf32>
    "tpu.trace_start"() <{level = 10 : i32, message = "bqd,bkd->bqk"}> : () -> ()
    %cst_194 = arith.constant dense<0.000000e+00> : vector<2x8x8xf32>
    %225 = tpu.matmul %222, %223, %cst_194 {dimension_numbers = #tpu.dot_dimension_numbers<[2], [2], [1], [1], [0, 0, 0, 1, 1, 1], [0], [0]>} : vector<2x8x8xf32>, vector<2x8x8xf32>, vector<2x8x8xf32> -> vector<2x8x8xf32>
    "tpu.trace_stop"() : () -> ()
    %cst_195 = arith.constant dense<0xFF800000> : vector<2x8xf32>
    %226 = vector.multi_reduction <maximumf>, %225, %cst_195 [2] : vector<2x8x8xf32> to vector<2x8xf32>
    %227 = vector.shape_cast %226 : vector<2x8xf32> to vector<2x8x1xf32>
    %228 = vector.broadcast %227 : vector<2x8x1xf32> to vector<2x8x8xf32>
    %229 = arith.subf %225, %228 : vector<2x8x8xf32>
    %230 = math.exp %229 : vector<2x8x8xf32>
    %cst_196 = arith.constant dense<0.000000e+00> : vector<2x8xf32>
    %231 = vector.multi_reduction <add>, %230, %cst_196 [2] : vector<2x8x8xf32> to vector<2x8xf32>
    %232 = vector.shape_cast %231 : vector<2x8xf32> to vector<2x8x1xf32>
    %233 = vector.broadcast %232 : vector<2x8x1xf32> to vector<2x8x8xf32>
    %234 = arith.divf %230, %233 : vector<2x8x8xf32>
    "tpu.trace_start"() <{level = 10 : i32, message = "bqk,bkd->bqd"}> : () -> ()
    %cst_197 = arith.constant dense<0.000000e+00> : vector<2x8x8xf32>
    %235 = tpu.matmul %234, %224, %cst_197 {dimension_numbers = #tpu.dot_dimension_numbers<[2], [1], [1], [2], [0, 0, 0, 1, 1, 2], [0], [0]>} : vector<2x8x8xf32>, vector<2x8x8xf32>, vector<2x8x8xf32> -> vector<2x8x8xf32>
    "tpu.trace_stop"() : () -> ()
    %236 = vector.shape_cast %235 : vector<2x8x8xf32> to vector<16x8xf32>
    %c0_198 = arith.constant 0 : index
    %c3_199 = arith.constant 3 : index
    %c0_200 = arith.constant 0 : index
    %c0_201 = arith.constant 0 : index
    %237 = vector.load %arg19[%c0_198, %c3_199, %c0_200, %c0_201] : memref<2x4x8x32xf32, #tpu.memory_space<vmem>>, vector<1x1x8x32xf32>
    %238 = vector.shape_cast %237 : vector<1x1x8x32xf32> to vector<8x32xf32>
    %cst_202 = arith.constant dense<0.000000e+00> : vector<16x32xf32>
    %239 = tpu.matmul %236, %238, %cst_202 {dimension_numbers = #tpu.dot_dimension_numbers<[1], [0], [0], [1], [0, 0, 1, 1], [], []>} : vector<16x8xf32>, vector<8x32xf32>, vector<16x32xf32> -> vector<16x32xf32>
    %240 = arith.addf %198, %239 : vector<16x32xf32>
    %241 = vector.broadcast %63 : vector<1x32xf32> to vector<16x32xf32>
    %242 = arith.addf %240, %241 : vector<16x32xf32>
    %243 = arith.addf %242, %61 : vector<16x32xf32>
    %cst_203 = arith.constant dense<0.000000e+00> : vector<16xf32>
    %244 = vector.multi_reduction <add>, %243, %cst_203 [1] : vector<16x32xf32> to vector<16xf32>
    %245 = vector.shape_cast %244 : vector<16xf32> to vector<16x1xf32>
    %cst_204 = arith.constant 3.200000e+01 : f32
    %246 = vector.broadcast %cst_204 : f32 to vector<16x1xf32>
    %247 = arith.divf %245, %246 : vector<16x1xf32>
    %248 = vector.broadcast %247 : vector<16x1xf32> to vector<16x32xf32>
    %249 = arith.subf %243, %248 : vector<16x32xf32>
    %250 = arith.mulf %249, %249 : vector<16x32xf32>
    %cst_205 = arith.constant dense<0.000000e+00> : vector<16xf32>
    %251 = vector.multi_reduction <add>, %250, %cst_205 [1] : vector<16x32xf32> to vector<16xf32>
    %252 = vector.shape_cast %251 : vector<16xf32> to vector<16x1xf32>
    %cst_206 = arith.constant 3.200000e+01 : f32
    %253 = vector.broadcast %cst_206 : f32 to vector<16x1xf32>
    %254 = arith.divf %252, %253 : vector<16x1xf32>
    %cst_207 = arith.constant 9.99999996E-13 : f32
    %255 = vector.broadcast %cst_207 : f32 to vector<16x1xf32>
    %256 = arith.addf %254, %255 : vector<16x1xf32>
    %257 = math.rsqrt %256 : vector<16x1xf32>
    %258 = vector.broadcast %257 : vector<16x1xf32> to vector<16x32xf32>
    %259 = arith.mulf %249, %258 : vector<16x32xf32>
    %260 = vector.broadcast %65 : vector<1x32xf32> to vector<16x32xf32>
    %261 = arith.mulf %259, %260 : vector<16x32xf32>
    %262 = vector.broadcast %67 : vector<1x32xf32> to vector<16x32xf32>
    %263 = arith.addf %261, %262 : vector<16x32xf32>
    %c0_208 = arith.constant 0 : index
    %c0_209 = arith.constant 0 : index
    %c0_210 = arith.constant 0 : index
    %264 = vector.load %arg21[%c0_208, %c0_209, %c0_210] : memref<2x32x64xf32, #tpu.memory_space<vmem>>, vector<1x32x64xf32>
    %265 = vector.shape_cast %264 : vector<1x32x64xf32> to vector<32x64xf32>
    %cst_211 = arith.constant dense<0.000000e+00> : vector<16x64xf32>
    %266 = tpu.matmul %263, %265, %cst_211 {dimension_numbers = #tpu.dot_dimension_numbers<[1], [0], [0], [1], [0, 0, 1, 1], [], []>} : vector<16x32xf32>, vector<32x64xf32>, vector<16x64xf32> -> vector<16x64xf32>
    %c0_212 = arith.constant 0 : index
    %c0_213 = arith.constant 0 : index
    %c0_214 = arith.constant 0 : index
    %267 = vector.load %arg22[%c0_212, %c0_213, %c0_214] : memref<2x1x64xf32, #tpu.memory_space<vmem>>, vector<1x1x64xf32>
    %268 = vector.shape_cast %267 : vector<1x1x64xf32> to vector<1x64xf32>
    %269 = vector.broadcast %268 : vector<1x64xf32> to vector<16x64xf32>
    %270 = arith.addf %266, %269 : vector<16x64xf32>
    %cst_215 = arith.constant 5.000000e-01 : f32
    %271 = vector.broadcast %cst_215 : f32 to vector<16x64xf32>
    %272 = arith.mulf %271, %270 : vector<16x64xf32>
    %cst_216 = arith.constant 4.471500e-02 : f32
    %273 = vector.broadcast %cst_216 : f32 to vector<16x64xf32>
    %274 = arith.mulf %273, %270 : vector<16x64xf32>
    %275 = arith.mulf %274, %270 : vector<16x64xf32>
    %276 = arith.mulf %275, %270 : vector<16x64xf32>
    %277 = arith.addf %270, %276 : vector<16x64xf32>
    %cst_217 = arith.constant 0.797884583 : f32
    %278 = vector.broadcast %cst_217 : f32 to vector<16x64xf32>
    %279 = arith.mulf %278, %277 : vector<16x64xf32>
    %280 = math.tanh %279 : vector<16x64xf32>
    %cst_218 = arith.constant 1.000000e+00 : f32
    %281 = vector.broadcast %cst_218 : f32 to vector<16x64xf32>
    %282 = arith.addf %281, %280 : vector<16x64xf32>
    %283 = arith.mulf %272, %282 : vector<16x64xf32>
    %c0_219 = arith.constant 0 : index
    %c0_220 = arith.constant 0 : index
    %c0_221 = arith.constant 0 : index
    %284 = vector.load %arg23[%c0_219, %c0_220, %c0_221] : memref<2x64x32xf32, #tpu.memory_space<vmem>>, vector<1x64x32xf32>
    %285 = vector.shape_cast %284 : vector<1x64x32xf32> to vector<64x32xf32>
    %cst_222 = arith.constant dense<0.000000e+00> : vector<16x32xf32>
    %286 = tpu.matmul %283, %285, %cst_222 {dimension_numbers = #tpu.dot_dimension_numbers<[1], [0], [0], [1], [0, 0, 1, 1], [], []>} : vector<16x64xf32>, vector<64x32xf32>, vector<16x32xf32> -> vector<16x32xf32>
    %287 = vector.broadcast %69 : vector<1x32xf32> to vector<16x32xf32>
    %288 = arith.addf %286, %287 : vector<16x32xf32>
    %289 = arith.addf %288, %263 : vector<16x32xf32>
    %cst_223 = arith.constant dense<0.000000e+00> : vector<16xf32>
    %290 = vector.multi_reduction <add>, %289, %cst_223 [1] : vector<16x32xf32> to vector<16xf32>
    %291 = vector.shape_cast %290 : vector<16xf32> to vector<16x1xf32>
    %cst_224 = arith.constant 3.200000e+01 : f32
    %292 = vector.broadcast %cst_224 : f32 to vector<16x1xf32>
    %293 = arith.divf %291, %292 : vector<16x1xf32>
    %294 = vector.broadcast %293 : vector<16x1xf32> to vector<16x32xf32>
    %295 = arith.subf %289, %294 : vector<16x32xf32>
    %296 = arith.mulf %295, %295 : vector<16x32xf32>
    %cst_225 = arith.constant dense<0.000000e+00> : vector<16xf32>
    %297 = vector.multi_reduction <add>, %296, %cst_225 [1] : vector<16x32xf32> to vector<16xf32>
    %298 = vector.shape_cast %297 : vector<16xf32> to vector<16x1xf32>
    %cst_226 = arith.constant 3.200000e+01 : f32
    %299 = vector.broadcast %cst_226 : f32 to vector<16x1xf32>
    %300 = arith.divf %298, %299 : vector<16x1xf32>
    %cst_227 = arith.constant 9.99999996E-13 : f32
    %301 = vector.broadcast %cst_227 : f32 to vector<16x1xf32>
    %302 = arith.addf %300, %301 : vector<16x1xf32>
    %303 = math.rsqrt %302 : vector<16x1xf32>
    %304 = vector.broadcast %303 : vector<16x1xf32> to vector<16x32xf32>
    %305 = arith.mulf %295, %304 : vector<16x32xf32>
    %306 = vector.broadcast %71 : vector<1x32xf32> to vector<16x32xf32>
    %307 = arith.mulf %305, %306 : vector<16x32xf32>
    %308 = vector.broadcast %73 : vector<1x32xf32> to vector<16x32xf32>
    %309 = arith.addf %307, %308 : vector<16x32xf32>
    %c1_228 = arith.constant 1 : index
    %c0_229 = arith.constant 0 : index
    %c0_230 = arith.constant 0 : index
    %c0_231 = arith.constant 0 : index
    %310 = vector.load %arg20[%c1_228, %c0_229, %c0_230, %c0_231] : memref<2x6x1x32xf32, #tpu.memory_space<vmem>>, vector<1x1x1x32xf32>
    %311 = vector.shape_cast %310 : vector<1x1x1x32xf32> to vector<1x32xf32>
    %c1_232 = arith.constant 1 : index
    %c1_233 = arith.constant 1 : index
    %c0_234 = arith.constant 0 : index
    %c0_235 = arith.constant 0 : index
    %312 = vector.load %arg20[%c1_232, %c1_233, %c0_234, %c0_235] : memref<2x6x1x32xf32, #tpu.memory_space<vmem>>, vector<1x1x1x32xf32>
    %313 = vector.shape_cast %312 : vector<1x1x1x32xf32> to vector<1x32xf32>
    %c1_236 = arith.constant 1 : index
    %c2_237 = arith.constant 2 : index
    %c0_238 = arith.constant 0 : index
    %c0_239 = arith.constant 0 : index
    %314 = vector.load %arg20[%c1_236, %c2_237, %c0_238, %c0_239] : memref<2x6x1x32xf32, #tpu.memory_space<vmem>>, vector<1x1x1x32xf32>
    %315 = vector.shape_cast %314 : vector<1x1x1x32xf32> to vector<1x32xf32>
    %c1_240 = arith.constant 1 : index
    %c3_241 = arith.constant 3 : index
    %c0_242 = arith.constant 0 : index
    %c0_243 = arith.constant 0 : index
    %316 = vector.load %arg20[%c1_240, %c3_241, %c0_242, %c0_243] : memref<2x6x1x32xf32, #tpu.memory_space<vmem>>, vector<1x1x1x32xf32>
    %317 = vector.shape_cast %316 : vector<1x1x1x32xf32> to vector<1x32xf32>
    %c1_244 = arith.constant 1 : index
    %c4_245 = arith.constant 4 : index
    %c0_246 = arith.constant 0 : index
    %c0_247 = arith.constant 0 : index
    %318 = vector.load %arg20[%c1_244, %c4_245, %c0_246, %c0_247] : memref<2x6x1x32xf32, #tpu.memory_space<vmem>>, vector<1x1x1x32xf32>
    %319 = vector.shape_cast %318 : vector<1x1x1x32xf32> to vector<1x32xf32>
    %c1_248 = arith.constant 1 : index
    %c5_249 = arith.constant 5 : index
    %c0_250 = arith.constant 0 : index
    %c0_251 = arith.constant 0 : index
    %320 = vector.load %arg20[%c1_248, %c5_249, %c0_250, %c0_251] : memref<2x6x1x32xf32, #tpu.memory_space<vmem>>, vector<1x1x1x32xf32>
    %321 = vector.shape_cast %320 : vector<1x1x1x32xf32> to vector<1x32xf32>
    %c1_252 = arith.constant 1 : index
    %c0_253 = arith.constant 0 : index
    %c0_254 = arith.constant 0 : index
    %c0_255 = arith.constant 0 : index
    %322 = vector.load %arg13[%c1_252, %c0_253, %c0_254, %c0_255] : memref<2x4x32x8xf32, #tpu.memory_space<vmem>>, vector<1x1x32x8xf32>
    %323 = vector.shape_cast %322 : vector<1x1x32x8xf32> to vector<32x8xf32>
    %cst_256 = arith.constant dense<0.000000e+00> : vector<16x8xf32>
    %324 = tpu.matmul %309, %323, %cst_256 {dimension_numbers = #tpu.dot_dimension_numbers<[1], [0], [0], [1], [0, 0, 1, 1], [], []>} : vector<16x32xf32>, vector<32x8xf32>, vector<16x8xf32> -> vector<16x8xf32>
    %c1_257 = arith.constant 1 : index
    %c0_258 = arith.constant 0 : index
    %c0_259 = arith.constant 0 : index
    %c0_260 = arith.constant 0 : index
    %325 = vector.load %arg16[%c1_257, %c0_258, %c0_259, %c0_260] : memref<2x4x1x8xf32, #tpu.memory_space<vmem>>, vector<1x1x1x8xf32>
    %326 = vector.shape_cast %325 : vector<1x1x1x8xf32> to vector<1x8xf32>
    %327 = vector.broadcast %326 : vector<1x8xf32> to vector<16x8xf32>
    %328 = arith.addf %324, %327 : vector<16x8xf32>
    %cst_261 = arith.constant 0.353553385 : f32
    %329 = vector.broadcast %cst_261 : f32 to vector<16x8xf32>
    %330 = arith.mulf %328, %329 : vector<16x8xf32>
    %c1_262 = arith.constant 1 : index
    %c0_263 = arith.constant 0 : index
    %c0_264 = arith.constant 0 : index
    %c0_265 = arith.constant 0 : index
    %331 = vector.load %arg14[%c1_262, %c0_263, %c0_264, %c0_265] : memref<2x4x32x8xf32, #tpu.memory_space<vmem>>, vector<1x1x32x8xf32>
    %332 = vector.shape_cast %331 : vector<1x1x32x8xf32> to vector<32x8xf32>
    %cst_266 = arith.constant dense<0.000000e+00> : vector<16x8xf32>
    %333 = tpu.matmul %309, %332, %cst_266 {dimension_numbers = #tpu.dot_dimension_numbers<[1], [0], [0], [1], [0, 0, 1, 1], [], []>} : vector<16x32xf32>, vector<32x8xf32>, vector<16x8xf32> -> vector<16x8xf32>
    %c1_267 = arith.constant 1 : index
    %c0_268 = arith.constant 0 : index
    %c0_269 = arith.constant 0 : index
    %c0_270 = arith.constant 0 : index
    %334 = vector.load %arg17[%c1_267, %c0_268, %c0_269, %c0_270] : memref<2x4x1x8xf32, #tpu.memory_space<vmem>>, vector<1x1x1x8xf32>
    %335 = vector.shape_cast %334 : vector<1x1x1x8xf32> to vector<1x8xf32>
    %336 = vector.broadcast %335 : vector<1x8xf32> to vector<16x8xf32>
    %337 = arith.addf %333, %336 : vector<16x8xf32>
    %c1_271 = arith.constant 1 : index
    %c0_272 = arith.constant 0 : index
    %c0_273 = arith.constant 0 : index
    %c0_274 = arith.constant 0 : index
    %338 = vector.load %arg15[%c1_271, %c0_272, %c0_273, %c0_274] : memref<2x4x32x8xf32, #tpu.memory_space<vmem>>, vector<1x1x32x8xf32>
    %339 = vector.shape_cast %338 : vector<1x1x32x8xf32> to vector<32x8xf32>
    %cst_275 = arith.constant dense<0.000000e+00> : vector<16x8xf32>
    %340 = tpu.matmul %309, %339, %cst_275 {dimension_numbers = #tpu.dot_dimension_numbers<[1], [0], [0], [1], [0, 0, 1, 1], [], []>} : vector<16x32xf32>, vector<32x8xf32>, vector<16x8xf32> -> vector<16x8xf32>
    %c1_276 = arith.constant 1 : index
    %c0_277 = arith.constant 0 : index
    %c0_278 = arith.constant 0 : index
    %c0_279 = arith.constant 0 : index
    %341 = vector.load %arg18[%c1_276, %c0_277, %c0_278, %c0_279] : memref<2x4x1x8xf32, #tpu.memory_space<vmem>>, vector<1x1x1x8xf32>
    %342 = vector.shape_cast %341 : vector<1x1x1x8xf32> to vector<1x8xf32>
    %343 = vector.broadcast %342 : vector<1x8xf32> to vector<16x8xf32>
    %344 = arith.addf %340, %343 : vector<16x8xf32>
    %345 = vector.shape_cast %330 : vector<16x8xf32> to vector<2x8x8xf32>
    %346 = vector.shape_cast %337 : vector<16x8xf32> to vector<2x8x8xf32>
    %347 = vector.shape_cast %344 : vector<16x8xf32> to vector<2x8x8xf32>
    "tpu.trace_start"() <{level = 10 : i32, message = "bqd,bkd->bqk"}> : () -> ()
    %cst_280 = arith.constant dense<0.000000e+00> : vector<2x8x8xf32>
    %348 = tpu.matmul %345, %346, %cst_280 {dimension_numbers = #tpu.dot_dimension_numbers<[2], [2], [1], [1], [0, 0, 0, 1, 1, 1], [0], [0]>} : vector<2x8x8xf32>, vector<2x8x8xf32>, vector<2x8x8xf32> -> vector<2x8x8xf32>
    "tpu.trace_stop"() : () -> ()
    %cst_281 = arith.constant dense<0xFF800000> : vector<2x8xf32>
    %349 = vector.multi_reduction <maximumf>, %348, %cst_281 [2] : vector<2x8x8xf32> to vector<2x8xf32>
    %350 = vector.shape_cast %349 : vector<2x8xf32> to vector<2x8x1xf32>
    %351 = vector.broadcast %350 : vector<2x8x1xf32> to vector<2x8x8xf32>
    %352 = arith.subf %348, %351 : vector<2x8x8xf32>
    %353 = math.exp %352 : vector<2x8x8xf32>
    %cst_282 = arith.constant dense<0.000000e+00> : vector<2x8xf32>
    %354 = vector.multi_reduction <add>, %353, %cst_282 [2] : vector<2x8x8xf32> to vector<2x8xf32>
    %355 = vector.shape_cast %354 : vector<2x8xf32> to vector<2x8x1xf32>
    %356 = vector.broadcast %355 : vector<2x8x1xf32> to vector<2x8x8xf32>
    %357 = arith.divf %353, %356 : vector<2x8x8xf32>
    "tpu.trace_start"() <{level = 10 : i32, message = "bqk,bkd->bqd"}> : () -> ()
    %cst_283 = arith.constant dense<0.000000e+00> : vector<2x8x8xf32>
    %358 = tpu.matmul %357, %347, %cst_283 {dimension_numbers = #tpu.dot_dimension_numbers<[2], [1], [1], [2], [0, 0, 0, 1, 1, 2], [0], [0]>} : vector<2x8x8xf32>, vector<2x8x8xf32>, vector<2x8x8xf32> -> vector<2x8x8xf32>
    "tpu.trace_stop"() : () -> ()
    %359 = vector.shape_cast %358 : vector<2x8x8xf32> to vector<16x8xf32>
    %c1_284 = arith.constant 1 : index
    %c0_285 = arith.constant 0 : index
    %c0_286 = arith.constant 0 : index
    %c0_287 = arith.constant 0 : index
    %360 = vector.load %arg19[%c1_284, %c0_285, %c0_286, %c0_287] : memref<2x4x8x32xf32, #tpu.memory_space<vmem>>, vector<1x1x8x32xf32>
    %361 = vector.shape_cast %360 : vector<1x1x8x32xf32> to vector<8x32xf32>
    %cst_288 = arith.constant dense<0.000000e+00> : vector<16x32xf32>
    %362 = tpu.matmul %359, %361, %cst_288 {dimension_numbers = #tpu.dot_dimension_numbers<[1], [0], [0], [1], [0, 0, 1, 1], [], []>} : vector<16x8xf32>, vector<8x32xf32>, vector<16x32xf32> -> vector<16x32xf32>
    %c1_289 = arith.constant 1 : index
    %c1_290 = arith.constant 1 : index
    %c0_291 = arith.constant 0 : index
    %c0_292 = arith.constant 0 : index
    %363 = vector.load %arg13[%c1_289, %c1_290, %c0_291, %c0_292] : memref<2x4x32x8xf32, #tpu.memory_space<vmem>>, vector<1x1x32x8xf32>
    %364 = vector.shape_cast %363 : vector<1x1x32x8xf32> to vector<32x8xf32>
    %cst_293 = arith.constant dense<0.000000e+00> : vector<16x8xf32>
    %365 = tpu.matmul %309, %364, %cst_293 {dimension_numbers = #tpu.dot_dimension_numbers<[1], [0], [0], [1], [0, 0, 1, 1], [], []>} : vector<16x32xf32>, vector<32x8xf32>, vector<16x8xf32> -> vector<16x8xf32>
    %c1_294 = arith.constant 1 : index
    %c1_295 = arith.constant 1 : index
    %c0_296 = arith.constant 0 : index
    %c0_297 = arith.constant 0 : index
    %366 = vector.load %arg16[%c1_294, %c1_295, %c0_296, %c0_297] : memref<2x4x1x8xf32, #tpu.memory_space<vmem>>, vector<1x1x1x8xf32>
    %367 = vector.shape_cast %366 : vector<1x1x1x8xf32> to vector<1x8xf32>
    %368 = vector.broadcast %367 : vector<1x8xf32> to vector<16x8xf32>
    %369 = arith.addf %365, %368 : vector<16x8xf32>
    %cst_298 = arith.constant 0.353553385 : f32
    %370 = vector.broadcast %cst_298 : f32 to vector<16x8xf32>
    %371 = arith.mulf %369, %370 : vector<16x8xf32>
    %c1_299 = arith.constant 1 : index
    %c1_300 = arith.constant 1 : index
    %c0_301 = arith.constant 0 : index
    %c0_302 = arith.constant 0 : index
    %372 = vector.load %arg14[%c1_299, %c1_300, %c0_301, %c0_302] : memref<2x4x32x8xf32, #tpu.memory_space<vmem>>, vector<1x1x32x8xf32>
    %373 = vector.shape_cast %372 : vector<1x1x32x8xf32> to vector<32x8xf32>
    %cst_303 = arith.constant dense<0.000000e+00> : vector<16x8xf32>
    %374 = tpu.matmul %309, %373, %cst_303 {dimension_numbers = #tpu.dot_dimension_numbers<[1], [0], [0], [1], [0, 0, 1, 1], [], []>} : vector<16x32xf32>, vector<32x8xf32>, vector<16x8xf32> -> vector<16x8xf32>
    %c1_304 = arith.constant 1 : index
    %c1_305 = arith.constant 1 : index
    %c0_306 = arith.constant 0 : index
    %c0_307 = arith.constant 0 : index
    %375 = vector.load %arg17[%c1_304, %c1_305, %c0_306, %c0_307] : memref<2x4x1x8xf32, #tpu.memory_space<vmem>>, vector<1x1x1x8xf32>
    %376 = vector.shape_cast %375 : vector<1x1x1x8xf32> to vector<1x8xf32>
    %377 = vector.broadcast %376 : vector<1x8xf32> to vector<16x8xf32>
    %378 = arith.addf %374, %377 : vector<16x8xf32>
    %c1_308 = arith.constant 1 : index
    %c1_309 = arith.constant 1 : index
    %c0_310 = arith.constant 0 : index
    %c0_311 = arith.constant 0 : index
    %379 = vector.load %arg15[%c1_308, %c1_309, %c0_310, %c0_311] : memref<2x4x32x8xf32, #tpu.memory_space<vmem>>, vector<1x1x32x8xf32>
    %380 = vector.shape_cast %379 : vector<1x1x32x8xf32> to vector<32x8xf32>
    %cst_312 = arith.constant dense<0.000000e+00> : vector<16x8xf32>
    %381 = tpu.matmul %309, %380, %cst_312 {dimension_numbers = #tpu.dot_dimension_numbers<[1], [0], [0], [1], [0, 0, 1, 1], [], []>} : vector<16x32xf32>, vector<32x8xf32>, vector<16x8xf32> -> vector<16x8xf32>
    %c1_313 = arith.constant 1 : index
    %c1_314 = arith.constant 1 : index
    %c0_315 = arith.constant 0 : index
    %c0_316 = arith.constant 0 : index
    %382 = vector.load %arg18[%c1_313, %c1_314, %c0_315, %c0_316] : memref<2x4x1x8xf32, #tpu.memory_space<vmem>>, vector<1x1x1x8xf32>
    %383 = vector.shape_cast %382 : vector<1x1x1x8xf32> to vector<1x8xf32>
    %384 = vector.broadcast %383 : vector<1x8xf32> to vector<16x8xf32>
    %385 = arith.addf %381, %384 : vector<16x8xf32>
    %386 = vector.shape_cast %371 : vector<16x8xf32> to vector<2x8x8xf32>
    %387 = vector.shape_cast %378 : vector<16x8xf32> to vector<2x8x8xf32>
    %388 = vector.shape_cast %385 : vector<16x8xf32> to vector<2x8x8xf32>
    "tpu.trace_start"() <{level = 10 : i32, message = "bqd,bkd->bqk"}> : () -> ()
    %cst_317 = arith.constant dense<0.000000e+00> : vector<2x8x8xf32>
    %389 = tpu.matmul %386, %387, %cst_317 {dimension_numbers = #tpu.dot_dimension_numbers<[2], [2], [1], [1], [0, 0, 0, 1, 1, 1], [0], [0]>} : vector<2x8x8xf32>, vector<2x8x8xf32>, vector<2x8x8xf32> -> vector<2x8x8xf32>
    "tpu.trace_stop"() : () -> ()
    %cst_318 = arith.constant dense<0xFF800000> : vector<2x8xf32>
    %390 = vector.multi_reduction <maximumf>, %389, %cst_318 [2] : vector<2x8x8xf32> to vector<2x8xf32>
    %391 = vector.shape_cast %390 : vector<2x8xf32> to vector<2x8x1xf32>
    %392 = vector.broadcast %391 : vector<2x8x1xf32> to vector<2x8x8xf32>
    %393 = arith.subf %389, %392 : vector<2x8x8xf32>
    %394 = math.exp %393 : vector<2x8x8xf32>
    %cst_319 = arith.constant dense<0.000000e+00> : vector<2x8xf32>
    %395 = vector.multi_reduction <add>, %394, %cst_319 [2] : vector<2x8x8xf32> to vector<2x8xf32>
    %396 = vector.shape_cast %395 : vector<2x8xf32> to vector<2x8x1xf32>
    %397 = vector.broadcast %396 : vector<2x8x1xf32> to vector<2x8x8xf32>
    %398 = arith.divf %394, %397 : vector<2x8x8xf32>
    "tpu.trace_start"() <{level = 10 : i32, message = "bqk,bkd->bqd"}> : () -> ()
    %cst_320 = arith.constant dense<0.000000e+00> : vector<2x8x8xf32>
    %399 = tpu.matmul %398, %388, %cst_320 {dimension_numbers = #tpu.dot_dimension_numbers<[2], [1], [1], [2], [0, 0, 0, 1, 1, 2], [0], [0]>} : vector<2x8x8xf32>, vector<2x8x8xf32>, vector<2x8x8xf32> -> vector<2x8x8xf32>
    "tpu.trace_stop"() : () -> ()
    %400 = vector.shape_cast %399 : vector<2x8x8xf32> to vector<16x8xf32>
    %c1_321 = arith.constant 1 : index
    %c1_322 = arith.constant 1 : index
    %c0_323 = arith.constant 0 : index
    %c0_324 = arith.constant 0 : index
    %401 = vector.load %arg19[%c1_321, %c1_322, %c0_323, %c0_324] : memref<2x4x8x32xf32, #tpu.memory_space<vmem>>, vector<1x1x8x32xf32>
    %402 = vector.shape_cast %401 : vector<1x1x8x32xf32> to vector<8x32xf32>
    %cst_325 = arith.constant dense<0.000000e+00> : vector<16x32xf32>
    %403 = tpu.matmul %400, %402, %cst_325 {dimension_numbers = #tpu.dot_dimension_numbers<[1], [0], [0], [1], [0, 0, 1, 1], [], []>} : vector<16x8xf32>, vector<8x32xf32>, vector<16x32xf32> -> vector<16x32xf32>
    %404 = arith.addf %362, %403 : vector<16x32xf32>
    %c1_326 = arith.constant 1 : index
    %c2_327 = arith.constant 2 : index
    %c0_328 = arith.constant 0 : index
    %c0_329 = arith.constant 0 : index
    %405 = vector.load %arg13[%c1_326, %c2_327, %c0_328, %c0_329] : memref<2x4x32x8xf32, #tpu.memory_space<vmem>>, vector<1x1x32x8xf32>
    %406 = vector.shape_cast %405 : vector<1x1x32x8xf32> to vector<32x8xf32>
    %cst_330 = arith.constant dense<0.000000e+00> : vector<16x8xf32>
    %407 = tpu.matmul %309, %406, %cst_330 {dimension_numbers = #tpu.dot_dimension_numbers<[1], [0], [0], [1], [0, 0, 1, 1], [], []>} : vector<16x32xf32>, vector<32x8xf32>, vector<16x8xf32> -> vector<16x8xf32>
    %c1_331 = arith.constant 1 : index
    %c2_332 = arith.constant 2 : index
    %c0_333 = arith.constant 0 : index
    %c0_334 = arith.constant 0 : index
    %408 = vector.load %arg16[%c1_331, %c2_332, %c0_333, %c0_334] : memref<2x4x1x8xf32, #tpu.memory_space<vmem>>, vector<1x1x1x8xf32>
    %409 = vector.shape_cast %408 : vector<1x1x1x8xf32> to vector<1x8xf32>
    %410 = vector.broadcast %409 : vector<1x8xf32> to vector<16x8xf32>
    %411 = arith.addf %407, %410 : vector<16x8xf32>
    %cst_335 = arith.constant 0.353553385 : f32
    %412 = vector.broadcast %cst_335 : f32 to vector<16x8xf32>
    %413 = arith.mulf %411, %412 : vector<16x8xf32>
    %c1_336 = arith.constant 1 : index
    %c2_337 = arith.constant 2 : index
    %c0_338 = arith.constant 0 : index
    %c0_339 = arith.constant 0 : index
    %414 = vector.load %arg14[%c1_336, %c2_337, %c0_338, %c0_339] : memref<2x4x32x8xf32, #tpu.memory_space<vmem>>, vector<1x1x32x8xf32>
    %415 = vector.shape_cast %414 : vector<1x1x32x8xf32> to vector<32x8xf32>
    %cst_340 = arith.constant dense<0.000000e+00> : vector<16x8xf32>
    %416 = tpu.matmul %309, %415, %cst_340 {dimension_numbers = #tpu.dot_dimension_numbers<[1], [0], [0], [1], [0, 0, 1, 1], [], []>} : vector<16x32xf32>, vector<32x8xf32>, vector<16x8xf32> -> vector<16x8xf32>
    %c1_341 = arith.constant 1 : index
    %c2_342 = arith.constant 2 : index
    %c0_343 = arith.constant 0 : index
    %c0_344 = arith.constant 0 : index
    %417 = vector.load %arg17[%c1_341, %c2_342, %c0_343, %c0_344] : memref<2x4x1x8xf32, #tpu.memory_space<vmem>>, vector<1x1x1x8xf32>
    %418 = vector.shape_cast %417 : vector<1x1x1x8xf32> to vector<1x8xf32>
    %419 = vector.broadcast %418 : vector<1x8xf32> to vector<16x8xf32>
    %420 = arith.addf %416, %419 : vector<16x8xf32>
    %c1_345 = arith.constant 1 : index
    %c2_346 = arith.constant 2 : index
    %c0_347 = arith.constant 0 : index
    %c0_348 = arith.constant 0 : index
    %421 = vector.load %arg15[%c1_345, %c2_346, %c0_347, %c0_348] : memref<2x4x32x8xf32, #tpu.memory_space<vmem>>, vector<1x1x32x8xf32>
    %422 = vector.shape_cast %421 : vector<1x1x32x8xf32> to vector<32x8xf32>
    %cst_349 = arith.constant dense<0.000000e+00> : vector<16x8xf32>
    %423 = tpu.matmul %309, %422, %cst_349 {dimension_numbers = #tpu.dot_dimension_numbers<[1], [0], [0], [1], [0, 0, 1, 1], [], []>} : vector<16x32xf32>, vector<32x8xf32>, vector<16x8xf32> -> vector<16x8xf32>
    %c1_350 = arith.constant 1 : index
    %c2_351 = arith.constant 2 : index
    %c0_352 = arith.constant 0 : index
    %c0_353 = arith.constant 0 : index
    %424 = vector.load %arg18[%c1_350, %c2_351, %c0_352, %c0_353] : memref<2x4x1x8xf32, #tpu.memory_space<vmem>>, vector<1x1x1x8xf32>
    %425 = vector.shape_cast %424 : vector<1x1x1x8xf32> to vector<1x8xf32>
    %426 = vector.broadcast %425 : vector<1x8xf32> to vector<16x8xf32>
    %427 = arith.addf %423, %426 : vector<16x8xf32>
    %428 = vector.shape_cast %413 : vector<16x8xf32> to vector<2x8x8xf32>
    %429 = vector.shape_cast %420 : vector<16x8xf32> to vector<2x8x8xf32>
    %430 = vector.shape_cast %427 : vector<16x8xf32> to vector<2x8x8xf32>
    "tpu.trace_start"() <{level = 10 : i32, message = "bqd,bkd->bqk"}> : () -> ()
    %cst_354 = arith.constant dense<0.000000e+00> : vector<2x8x8xf32>
    %431 = tpu.matmul %428, %429, %cst_354 {dimension_numbers = #tpu.dot_dimension_numbers<[2], [2], [1], [1], [0, 0, 0, 1, 1, 1], [0], [0]>} : vector<2x8x8xf32>, vector<2x8x8xf32>, vector<2x8x8xf32> -> vector<2x8x8xf32>
    "tpu.trace_stop"() : () -> ()
    %cst_355 = arith.constant dense<0xFF800000> : vector<2x8xf32>
    %432 = vector.multi_reduction <maximumf>, %431, %cst_355 [2] : vector<2x8x8xf32> to vector<2x8xf32>
    %433 = vector.shape_cast %432 : vector<2x8xf32> to vector<2x8x1xf32>
    %434 = vector.broadcast %433 : vector<2x8x1xf32> to vector<2x8x8xf32>
    %435 = arith.subf %431, %434 : vector<2x8x8xf32>
    %436 = math.exp %435 : vector<2x8x8xf32>
    %cst_356 = arith.constant dense<0.000000e+00> : vector<2x8xf32>
    %437 = vector.multi_reduction <add>, %436, %cst_356 [2] : vector<2x8x8xf32> to vector<2x8xf32>
    %438 = vector.shape_cast %437 : vector<2x8xf32> to vector<2x8x1xf32>
    %439 = vector.broadcast %438 : vector<2x8x1xf32> to vector<2x8x8xf32>
    %440 = arith.divf %436, %439 : vector<2x8x8xf32>
    "tpu.trace_start"() <{level = 10 : i32, message = "bqk,bkd->bqd"}> : () -> ()
    %cst_357 = arith.constant dense<0.000000e+00> : vector<2x8x8xf32>
    %441 = tpu.matmul %440, %430, %cst_357 {dimension_numbers = #tpu.dot_dimension_numbers<[2], [1], [1], [2], [0, 0, 0, 1, 1, 2], [0], [0]>} : vector<2x8x8xf32>, vector<2x8x8xf32>, vector<2x8x8xf32> -> vector<2x8x8xf32>
    "tpu.trace_stop"() : () -> ()
    %442 = vector.shape_cast %441 : vector<2x8x8xf32> to vector<16x8xf32>
    %c1_358 = arith.constant 1 : index
    %c2_359 = arith.constant 2 : index
    %c0_360 = arith.constant 0 : index
    %c0_361 = arith.constant 0 : index
    %443 = vector.load %arg19[%c1_358, %c2_359, %c0_360, %c0_361] : memref<2x4x8x32xf32, #tpu.memory_space<vmem>>, vector<1x1x8x32xf32>
    %444 = vector.shape_cast %443 : vector<1x1x8x32xf32> to vector<8x32xf32>
    %cst_362 = arith.constant dense<0.000000e+00> : vector<16x32xf32>
    %445 = tpu.matmul %442, %444, %cst_362 {dimension_numbers = #tpu.dot_dimension_numbers<[1], [0], [0], [1], [0, 0, 1, 1], [], []>} : vector<16x8xf32>, vector<8x32xf32>, vector<16x32xf32> -> vector<16x32xf32>
    %446 = arith.addf %404, %445 : vector<16x32xf32>
    %c1_363 = arith.constant 1 : index
    %c3_364 = arith.constant 3 : index
    %c0_365 = arith.constant 0 : index
    %c0_366 = arith.constant 0 : index
    %447 = vector.load %arg13[%c1_363, %c3_364, %c0_365, %c0_366] : memref<2x4x32x8xf32, #tpu.memory_space<vmem>>, vector<1x1x32x8xf32>
    %448 = vector.shape_cast %447 : vector<1x1x32x8xf32> to vector<32x8xf32>
    %cst_367 = arith.constant dense<0.000000e+00> : vector<16x8xf32>
    %449 = tpu.matmul %309, %448, %cst_367 {dimension_numbers = #tpu.dot_dimension_numbers<[1], [0], [0], [1], [0, 0, 1, 1], [], []>} : vector<16x32xf32>, vector<32x8xf32>, vector<16x8xf32> -> vector<16x8xf32>
    %c1_368 = arith.constant 1 : index
    %c3_369 = arith.constant 3 : index
    %c0_370 = arith.constant 0 : index
    %c0_371 = arith.constant 0 : index
    %450 = vector.load %arg16[%c1_368, %c3_369, %c0_370, %c0_371] : memref<2x4x1x8xf32, #tpu.memory_space<vmem>>, vector<1x1x1x8xf32>
    %451 = vector.shape_cast %450 : vector<1x1x1x8xf32> to vector<1x8xf32>
    %452 = vector.broadcast %451 : vector<1x8xf32> to vector<16x8xf32>
    %453 = arith.addf %449, %452 : vector<16x8xf32>
    %cst_372 = arith.constant 0.353553385 : f32
    %454 = vector.broadcast %cst_372 : f32 to vector<16x8xf32>
    %455 = arith.mulf %453, %454 : vector<16x8xf32>
    %c1_373 = arith.constant 1 : index
    %c3_374 = arith.constant 3 : index
    %c0_375 = arith.constant 0 : index
    %c0_376 = arith.constant 0 : index
    %456 = vector.load %arg14[%c1_373, %c3_374, %c0_375, %c0_376] : memref<2x4x32x8xf32, #tpu.memory_space<vmem>>, vector<1x1x32x8xf32>
    %457 = vector.shape_cast %456 : vector<1x1x32x8xf32> to vector<32x8xf32>
    %cst_377 = arith.constant dense<0.000000e+00> : vector<16x8xf32>
    %458 = tpu.matmul %309, %457, %cst_377 {dimension_numbers = #tpu.dot_dimension_numbers<[1], [0], [0], [1], [0, 0, 1, 1], [], []>} : vector<16x32xf32>, vector<32x8xf32>, vector<16x8xf32> -> vector<16x8xf32>
    %c1_378 = arith.constant 1 : index
    %c3_379 = arith.constant 3 : index
    %c0_380 = arith.constant 0 : index
    %c0_381 = arith.constant 0 : index
    %459 = vector.load %arg17[%c1_378, %c3_379, %c0_380, %c0_381] : memref<2x4x1x8xf32, #tpu.memory_space<vmem>>, vector<1x1x1x8xf32>
    %460 = vector.shape_cast %459 : vector<1x1x1x8xf32> to vector<1x8xf32>
    %461 = vector.broadcast %460 : vector<1x8xf32> to vector<16x8xf32>
    %462 = arith.addf %458, %461 : vector<16x8xf32>
    %c1_382 = arith.constant 1 : index
    %c3_383 = arith.constant 3 : index
    %c0_384 = arith.constant 0 : index
    %c0_385 = arith.constant 0 : index
    %463 = vector.load %arg15[%c1_382, %c3_383, %c0_384, %c0_385] : memref<2x4x32x8xf32, #tpu.memory_space<vmem>>, vector<1x1x32x8xf32>
    %464 = vector.shape_cast %463 : vector<1x1x32x8xf32> to vector<32x8xf32>
    %cst_386 = arith.constant dense<0.000000e+00> : vector<16x8xf32>
    %465 = tpu.matmul %309, %464, %cst_386 {dimension_numbers = #tpu.dot_dimension_numbers<[1], [0], [0], [1], [0, 0, 1, 1], [], []>} : vector<16x32xf32>, vector<32x8xf32>, vector<16x8xf32> -> vector<16x8xf32>
    %c1_387 = arith.constant 1 : index
    %c3_388 = arith.constant 3 : index
    %c0_389 = arith.constant 0 : index
    %c0_390 = arith.constant 0 : index
    %466 = vector.load %arg18[%c1_387, %c3_388, %c0_389, %c0_390] : memref<2x4x1x8xf32, #tpu.memory_space<vmem>>, vector<1x1x1x8xf32>
    %467 = vector.shape_cast %466 : vector<1x1x1x8xf32> to vector<1x8xf32>
    %468 = vector.broadcast %467 : vector<1x8xf32> to vector<16x8xf32>
    %469 = arith.addf %465, %468 : vector<16x8xf32>
    %470 = vector.shape_cast %455 : vector<16x8xf32> to vector<2x8x8xf32>
    %471 = vector.shape_cast %462 : vector<16x8xf32> to vector<2x8x8xf32>
    %472 = vector.shape_cast %469 : vector<16x8xf32> to vector<2x8x8xf32>
    "tpu.trace_start"() <{level = 10 : i32, message = "bqd,bkd->bqk"}> : () -> ()
    %cst_391 = arith.constant dense<0.000000e+00> : vector<2x8x8xf32>
    %473 = tpu.matmul %470, %471, %cst_391 {dimension_numbers = #tpu.dot_dimension_numbers<[2], [2], [1], [1], [0, 0, 0, 1, 1, 1], [0], [0]>} : vector<2x8x8xf32>, vector<2x8x8xf32>, vector<2x8x8xf32> -> vector<2x8x8xf32>
    "tpu.trace_stop"() : () -> ()
    %cst_392 = arith.constant dense<0xFF800000> : vector<2x8xf32>
    %474 = vector.multi_reduction <maximumf>, %473, %cst_392 [2] : vector<2x8x8xf32> to vector<2x8xf32>
    %475 = vector.shape_cast %474 : vector<2x8xf32> to vector<2x8x1xf32>
    %476 = vector.broadcast %475 : vector<2x8x1xf32> to vector<2x8x8xf32>
    %477 = arith.subf %473, %476 : vector<2x8x8xf32>
    %478 = math.exp %477 : vector<2x8x8xf32>
    %cst_393 = arith.constant dense<0.000000e+00> : vector<2x8xf32>
    %479 = vector.multi_reduction <add>, %478, %cst_393 [2] : vector<2x8x8xf32> to vector<2x8xf32>
    %480 = vector.shape_cast %479 : vector<2x8xf32> to vector<2x8x1xf32>
    %481 = vector.broadcast %480 : vector<2x8x1xf32> to vector<2x8x8xf32>
    %482 = arith.divf %478, %481 : vector<2x8x8xf32>
    "tpu.trace_start"() <{level = 10 : i32, message = "bqk,bkd->bqd"}> : () -> ()
    %cst_394 = arith.constant dense<0.000000e+00> : vector<2x8x8xf32>
    %483 = tpu.matmul %482, %472, %cst_394 {dimension_numbers = #tpu.dot_dimension_numbers<[2], [1], [1], [2], [0, 0, 0, 1, 1, 2], [0], [0]>} : vector<2x8x8xf32>, vector<2x8x8xf32>, vector<2x8x8xf32> -> vector<2x8x8xf32>
    "tpu.trace_stop"() : () -> ()
    %484 = vector.shape_cast %483 : vector<2x8x8xf32> to vector<16x8xf32>
    %c1_395 = arith.constant 1 : index
    %c3_396 = arith.constant 3 : index
    %c0_397 = arith.constant 0 : index
    %c0_398 = arith.constant 0 : index
    %485 = vector.load %arg19[%c1_395, %c3_396, %c0_397, %c0_398] : memref<2x4x8x32xf32, #tpu.memory_space<vmem>>, vector<1x1x8x32xf32>
    %486 = vector.shape_cast %485 : vector<1x1x8x32xf32> to vector<8x32xf32>
    %cst_399 = arith.constant dense<0.000000e+00> : vector<16x32xf32>
    %487 = tpu.matmul %484, %486, %cst_399 {dimension_numbers = #tpu.dot_dimension_numbers<[1], [0], [0], [1], [0, 0, 1, 1], [], []>} : vector<16x8xf32>, vector<8x32xf32>, vector<16x32xf32> -> vector<16x32xf32>
    %488 = arith.addf %446, %487 : vector<16x32xf32>
    %489 = vector.broadcast %311 : vector<1x32xf32> to vector<16x32xf32>
    %490 = arith.addf %488, %489 : vector<16x32xf32>
    %491 = arith.addf %490, %309 : vector<16x32xf32>
    %cst_400 = arith.constant dense<0.000000e+00> : vector<16xf32>
    %492 = vector.multi_reduction <add>, %491, %cst_400 [1] : vector<16x32xf32> to vector<16xf32>
    %493 = vector.shape_cast %492 : vector<16xf32> to vector<16x1xf32>
    %cst_401 = arith.constant 3.200000e+01 : f32
    %494 = vector.broadcast %cst_401 : f32 to vector<16x1xf32>
    %495 = arith.divf %493, %494 : vector<16x1xf32>
    %496 = vector.broadcast %495 : vector<16x1xf32> to vector<16x32xf32>
    %497 = arith.subf %491, %496 : vector<16x32xf32>
    %498 = arith.mulf %497, %497 : vector<16x32xf32>
    %cst_402 = arith.constant dense<0.000000e+00> : vector<16xf32>
    %499 = vector.multi_reduction <add>, %498, %cst_402 [1] : vector<16x32xf32> to vector<16xf32>
    %500 = vector.shape_cast %499 : vector<16xf32> to vector<16x1xf32>
    %cst_403 = arith.constant 3.200000e+01 : f32
    %501 = vector.broadcast %cst_403 : f32 to vector<16x1xf32>
    %502 = arith.divf %500, %501 : vector<16x1xf32>
    %cst_404 = arith.constant 9.99999996E-13 : f32
    %503 = vector.broadcast %cst_404 : f32 to vector<16x1xf32>
    %504 = arith.addf %502, %503 : vector<16x1xf32>
    %505 = math.rsqrt %504 : vector<16x1xf32>
    %506 = vector.broadcast %505 : vector<16x1xf32> to vector<16x32xf32>
    %507 = arith.mulf %497, %506 : vector<16x32xf32>
    %508 = vector.broadcast %313 : vector<1x32xf32> to vector<16x32xf32>
    %509 = arith.mulf %507, %508 : vector<16x32xf32>
    %510 = vector.broadcast %315 : vector<1x32xf32> to vector<16x32xf32>
    %511 = arith.addf %509, %510 : vector<16x32xf32>
    %c1_405 = arith.constant 1 : index
    %c0_406 = arith.constant 0 : index
    %c0_407 = arith.constant 0 : index
    %512 = vector.load %arg21[%c1_405, %c0_406, %c0_407] : memref<2x32x64xf32, #tpu.memory_space<vmem>>, vector<1x32x64xf32>
    %513 = vector.shape_cast %512 : vector<1x32x64xf32> to vector<32x64xf32>
    %cst_408 = arith.constant dense<0.000000e+00> : vector<16x64xf32>
    %514 = tpu.matmul %511, %513, %cst_408 {dimension_numbers = #tpu.dot_dimension_numbers<[1], [0], [0], [1], [0, 0, 1, 1], [], []>} : vector<16x32xf32>, vector<32x64xf32>, vector<16x64xf32> -> vector<16x64xf32>
    %c1_409 = arith.constant 1 : index
    %c0_410 = arith.constant 0 : index
    %c0_411 = arith.constant 0 : index
    %515 = vector.load %arg22[%c1_409, %c0_410, %c0_411] : memref<2x1x64xf32, #tpu.memory_space<vmem>>, vector<1x1x64xf32>
    %516 = vector.shape_cast %515 : vector<1x1x64xf32> to vector<1x64xf32>
    %517 = vector.broadcast %516 : vector<1x64xf32> to vector<16x64xf32>
    %518 = arith.addf %514, %517 : vector<16x64xf32>
    %cst_412 = arith.constant 5.000000e-01 : f32
    %519 = vector.broadcast %cst_412 : f32 to vector<16x64xf32>
    %520 = arith.mulf %519, %518 : vector<16x64xf32>
    %cst_413 = arith.constant 4.471500e-02 : f32
    %521 = vector.broadcast %cst_413 : f32 to vector<16x64xf32>
    %522 = arith.mulf %521, %518 : vector<16x64xf32>
    %523 = arith.mulf %522, %518 : vector<16x64xf32>
    %524 = arith.mulf %523, %518 : vector<16x64xf32>
    %525 = arith.addf %518, %524 : vector<16x64xf32>
    %cst_414 = arith.constant 0.797884583 : f32
    %526 = vector.broadcast %cst_414 : f32 to vector<16x64xf32>
    %527 = arith.mulf %526, %525 : vector<16x64xf32>
    %528 = math.tanh %527 : vector<16x64xf32>
    %cst_415 = arith.constant 1.000000e+00 : f32
    %529 = vector.broadcast %cst_415 : f32 to vector<16x64xf32>
    %530 = arith.addf %529, %528 : vector<16x64xf32>
    %531 = arith.mulf %520, %530 : vector<16x64xf32>
    %c1_416 = arith.constant 1 : index
    %c0_417 = arith.constant 0 : index
    %c0_418 = arith.constant 0 : index
    %532 = vector.load %arg23[%c1_416, %c0_417, %c0_418] : memref<2x64x32xf32, #tpu.memory_space<vmem>>, vector<1x64x32xf32>
    %533 = vector.shape_cast %532 : vector<1x64x32xf32> to vector<64x32xf32>
    %cst_419 = arith.constant dense<0.000000e+00> : vector<16x32xf32>
    %534 = tpu.matmul %531, %533, %cst_419 {dimension_numbers = #tpu.dot_dimension_numbers<[1], [0], [0], [1], [0, 0, 1, 1], [], []>} : vector<16x64xf32>, vector<64x32xf32>, vector<16x32xf32> -> vector<16x32xf32>
    %535 = vector.broadcast %317 : vector<1x32xf32> to vector<16x32xf32>
    %536 = arith.addf %534, %535 : vector<16x32xf32>
    %537 = arith.addf %536, %511 : vector<16x32xf32>
    %cst_420 = arith.constant dense<0.000000e+00> : vector<16xf32>
    %538 = vector.multi_reduction <add>, %537, %cst_420 [1] : vector<16x32xf32> to vector<16xf32>
    %539 = vector.shape_cast %538 : vector<16xf32> to vector<16x1xf32>
    %cst_421 = arith.constant 3.200000e+01 : f32
    %540 = vector.broadcast %cst_421 : f32 to vector<16x1xf32>
    %541 = arith.divf %539, %540 : vector<16x1xf32>
    %542 = vector.broadcast %541 : vector<16x1xf32> to vector<16x32xf32>
    %543 = arith.subf %537, %542 : vector<16x32xf32>
    %544 = arith.mulf %543, %543 : vector<16x32xf32>
    %cst_422 = arith.constant dense<0.000000e+00> : vector<16xf32>
    %545 = vector.multi_reduction <add>, %544, %cst_422 [1] : vector<16x32xf32> to vector<16xf32>
    %546 = vector.shape_cast %545 : vector<16xf32> to vector<16x1xf32>
    %cst_423 = arith.constant 3.200000e+01 : f32
    %547 = vector.broadcast %cst_423 : f32 to vector<16x1xf32>
    %548 = arith.divf %546, %547 : vector<16x1xf32>
    %cst_424 = arith.constant 9.99999996E-13 : f32
    %549 = vector.broadcast %cst_424 : f32 to vector<16x1xf32>
    %550 = arith.addf %548, %549 : vector<16x1xf32>
    %551 = math.rsqrt %550 : vector<16x1xf32>
    %552 = vector.broadcast %551 : vector<16x1xf32> to vector<16x32xf32>
    %553 = arith.mulf %543, %552 : vector<16x32xf32>
    %554 = vector.broadcast %319 : vector<1x32xf32> to vector<16x32xf32>
    %555 = arith.mulf %553, %554 : vector<16x32xf32>
    %556 = vector.broadcast %321 : vector<1x32xf32> to vector<16x32xf32>
    %557 = arith.addf %555, %556 : vector<16x32xf32>
    %c0_425 = arith.constant 0 : index
    %c0_426 = arith.constant 0 : index
    %558 = vector.load %arg24[%c0_425, %c0_426] : memref<32x32xf32, #tpu.memory_space<vmem>>, vector<32x32xf32>
    %cst_427 = arith.constant dense<0.000000e+00> : vector<16x32xf32>
    %559 = tpu.matmul %557, %558, %cst_427 {dimension_numbers = #tpu.dot_dimension_numbers<[1], [0], [0], [1], [0, 0, 1, 1], [], []>} : vector<16x32xf32>, vector<32x32xf32>, vector<16x32xf32> -> vector<16x32xf32>
    %c0_428 = arith.constant 0 : index
    %c0_429 = arith.constant 0 : index
    %560 = vector.load %arg25[%c0_428, %c0_429] : memref<1x32xf32, #tpu.memory_space<vmem>>, vector<1x32xf32>
    %561 = vector.broadcast %560 : vector<1x32xf32> to vector<16x32xf32>
    %562 = arith.addf %559, %561 : vector<16x32xf32>
    %563 = math.tanh %562 : vector<16x32xf32>
    %c0_430 = arith.constant 0 : index
    %c0_431 = arith.constant 0 : index
    %564 = vector.load %arg26[%c0_430, %c0_431] : memref<32x128xf32, #tpu.memory_space<vmem>>, vector<32x128xf32>
    %cst_432 = arith.constant dense<0.000000e+00> : vector<16x128xf32>
    %565 = tpu.matmul %563, %564, %cst_432 {dimension_numbers = #tpu.dot_dimension_numbers<[1], [0], [0], [1], [0, 0, 1, 1], [], []>} : vector<16x32xf32>, vector<32x128xf32>, vector<16x128xf32> -> vector<16x128xf32>
    %c0_433 = arith.constant 0 : index
    %c0_434 = arith.constant 0 : index
    %566 = vector.load %arg27[%c0_433, %c0_434] : memref<1x128xf32, #tpu.memory_space<vmem>>, vector<1x128xf32>
    %567 = vector.broadcast %566 : vector<1x128xf32> to vector<16x128xf32>
    %568 = arith.addf %565, %567 : vector<16x128xf32>
    %c0_435 = arith.constant 0 : index
    %c0_436 = arith.constant 0 : index
    %569 = vector.load %arg28[%c0_435, %c0_436] : memref<16x128xf32, #tpu.memory_space<vmem>>, vector<16x128xf32>
    tpu.vector_store %arg28[%c0_435, %c0_436], %568 {strides = array<i32>} : memref<16x128xf32, #tpu.memory_space<vmem>>, vector<16x128xf32>,
    return
  }
}

</mosaic_0001>

<bundles_post_ra>
// kernel: bert_forward.1
= control target key start
LH: loop header
LB: loop body
LE: loop exit
PB: predicated region body
PF: predicated region fallthrough
CT: control target
= control target key end

     0   :  { %vm95_vm0 = vcmask 64512   ;;  %vm179_vm1 = vcmask 130048   ;;  %vm147_vm6 = vcmask 261120   ;;  %v3513_v57 = vmov 32.0   ;;  %s4581_s2 = inlined_call_operand.vmem [shape: f32[8,32], index: 2, kind: input, shape index: {}]   ;;  %s4582_s0 = inlined_call_operand.vmem [shape: f32[2,8], index: 0, kind: input, shape index: {}]   ;;  %s4583_s3 = inlined_call_operand.vmem [shape: f32[1,32], index: 3, kind: input, shape index: {}]   ;;  %s4584_s5 = inlined_call_operand.vmem [shape: f32[1,32], index: 5, kind: input, shape index: {}]   ;;  %s4585_s4 = inlined_call_operand.vmem [shape: f32[32,32], index: 4, kind: input, shape index: {}]   ;;  %s4586_s6 = inlined_call_operand.vmem [shape: f32[16,32], index: 6, kind: input, shape index: {}]   ;;  %s4587_s1 = inlined_call_operand.vmem [shape: f32[16,16], index: 1, kind: input, shape index: {}]   ;;  %s4588_s7 = inlined_call_operand.vmem [shape: f32[1,32], index: 7, kind: input, shape index: {}]   ;;  %s4589_s9 = inlined_call_operand.vmem [shape: f32[1,32], index: 9, kind: input, shape index: {}]   ;;  %s4590_s8 = inlined_call_operand.vmem [shape: f32[32,32], index: 8, kind: input, shape index: {}]   ;;  %s4591_s10 = inlined_call_operand.vmem [shape: f32[8,32], index: 10, kind: input, shape index: {}]   ;;  %s4592_s11 = inlined_call_operand.vmem [shape: f32[1,32], index: 11, kind: input, shape index: {}]   ;;  %s4593_s12 = inlined_call_operand.vmem [shape: f32[1,32], index: 12, kind: input, shape index: {}]   ;;  %s4594_s16 = inlined_call_operand.vmem [shape: f32[2,4,1,8], index: 16, kind: input, shape index: {}]   ;;  %s4595_s13 = inlined_call_operand.vmem [shape: f32[2,4,32,8], index: 13, kind: input, shape index: {}]   ;;  %s4596_s14 = inlined_call_operand.vmem [shape: f32[2,4,32,8], index: 14, kind: input, shape index: {}]   ;;  %s4597_s15 = inlined_call_operand.vmem [shape: f32[2,4,32,8], index: 15, kind: input, shape index: {}]   ;;  %s4598_s17 = inlined_call_operand.vmem [shape: f32[2,4,1,8], index: 17, kind: input, shape index: {}]   ;;  %s4599_s18 = inlined_call_operand.vmem [shape: f32[2,4,1,8], index: 18, kind: input, shape index: {}]   ;;  %s4600_s19 = inlined_call_operand.vmem [shape: f32[2,4,8,32], index: 19, kind: input, shape index: {}]   ;;  %s4601_s20 = inlined_call_operand.vmem [shape: f32[2,6,1,32], index: 20, kind: input, shape index: {}]   ;;  %s4602_s22 = inlined_call_operand.vmem [shape: f32[2,1,64], index: 22, kind: input, shape index: {}]   ;;  %s4603_s21 = inlined_call_operand.vmem [shape: f32[2,32,64], index: 21, kind: input, shape index: {}]   ;;  %s4604_s23 = inlined_call_operand.vmem [shape: f32[2,64,32], index: 23, kind: input, shape index: {}]   ;;  %s4605_s25 = inlined_call_operand.vmem [shape: f32[1,32], index: 25, kind: input, shape index: {}]   ;;  %s4606_s24 = inlined_call_operand.vmem [shape: f32[32,32], index: 24, kind: input, shape index: {}]   ;;  %s4607_s27 = inlined_call_operand.vmem [shape: f32[1,128], index: 27, kind: input, shape index: {}]   ;;  %s4608_s26 = inlined_call_operand.vmem [shape: f32[32,128], index: 26, kind: input, shape index: {}]   ;;  %s4609_s28 = inlined_call_operand.vmem [shape: f32[16,128], index: 28, kind: output, shape index: {}]  }
   0x1   :  { %4614 = sst [smem:[#allocation2_spill]] %s4581_s2 }
   0x2   :  { %4615 = sst [smem:[#allocation3_spill]] %s4582_s0 }
   0x3   :  { %4616 = sst [smem:[#allocation4_spill]] %s4583_s3 }
   0x4   :  { %4617 = sst [smem:[#allocation5_spill]] %s4584_s5 }
   0x5   :  { %4618 = sst [smem:[#allocation6_spill]] %s4585_s4 }
   0x6   :  { %4619 = sst [smem:[#allocation7_spill]] %s4586_s6 }
   0x7   :  { %4620 = sst [smem:[#allocation8_spill]] %s4587_s1 }
   0x8   :  { %4621 = sst [smem:[#allocation9_spill]] %s4588_s7 }
   0x9   :  { %4622 = sst [smem:[#allocation10_spill]] %s4589_s9 }
   0xa   :  { %4623 = sst [smem:[#allocation11_spill]] %s4590_s8 }
   0xb   :  { %4624 = sst [smem:[#allocation12_spill]] %s4591_s10 }
   0xc   :  { %4625 = sst [smem:[#allocation13_spill]] %s4592_s11 }
   0xd   :  { %4626 = sst [smem:[#allocation14_spill]] %s4593_s12 }
   0xe   :  { %s4627_s8 = sld [smem:[#allocation2_spill]] }
   0xf   :  { %s4628_s5 = sld [smem:[#allocation3_spill]] }
  0x10   :  { %s4629_s11 = sld [smem:[#allocation6_spill]] }
  0x11   :  { %s4630_s7 = sld [smem:[#allocation4_spill]] }
  0x12   :  { %s4633_s9 = sld [smem:[#allocation11_spill]] }
  0x13   :  { %s4634_s3 = sld [smem:[#allocation9_spill]] }
  0x14   :  { %v90_v0 = vld [vmem:[%s4627_s8] sm:$0xff]  ;;  %s4635_s12 = sld [smem:[#allocation5_spill]] }
  0x15   :  { %v89_v1 = vld [vmem:[%s4628_s5] sm:$0x3]  ;;  %114 = vmatpush.msra.mxu0 %v90_v0  ;;  %s4631_s5 = sld [smem:[#allocation7_spill]] }
  0x16   :  { %3092 = vmatmul.msk.f32.vlgmr.msra.gmra.mxu0 %vm95_vm0, %v89_v1  ;;  %v142_v2 = vld [vmem:[%s4629_s11 + $0x18] sm:$0xff]  ;;  %v141_v4 = vld [vmem:[%s4629_s11 + $0x10] sm:$0xff]  ;;  %v140_v5 = vld [vmem:[%s4629_s11 + $0x8] sm:$0xff]  ;;  %s4637_s30 = sld [smem:[#allocation12_spill]] }
  0x17   :  { %163 = vmatpush.msra.mxu1 %v142_v2  ;;  %v3361_v3 = vld [vmem:[%s4630_s7] ss:$0 sm:$0xff]  ;;  %s4638_s29 = sld [smem:[#allocation13_spill]] }
  0x18   :  { %v139_v8 = vld [vmem:[%s4629_s11] sm:$0xff]  ;;  %s4632_s11 = sld [smem:[#allocation8_spill]]  ;;  %v214_v28 = vld [vmem:[%s4633_s9 + $0x18] sm:$0xff]  ;;  %v213_v29 = vld [vmem:[%s4633_s9 + $0x10] sm:$0xff] }
  0x19   :  { %164 = vmatpush.msra.mxu1 %v141_v4  ;;  %237 = vmatpush.msra.mxu3 %v214_v28  ;;  %v212_v30 = vld [vmem:[%s4633_s9 + $0x8] sm:$0xff]  ;;  %v211_v31 = vld [vmem:[%s4633_s9] sm:$0xff]  ;;  %s4636_s9 = sld [smem:[#allocation10_spill]] }
  0x1a   :  { %v3363_v33 = vld [vmem:[%s4634_s3] ss:$0 sm:$0xff]  ;;  %v3123_v28 = vld [vmem:[%s4596_s14 + $0x28] sm:$0xff]  ;;  %s4639_s7 = sld [smem:[#allocation14_spill]] }
  0x1b   :  { %165 = vmatpush.msra.mxu1 %v140_v5  ;;  %v174_v10 = vld [vmem:[%s4631_s5 + $0x8] sm:$0xff]  ;;  %v173_v11 = vld [vmem:[%s4631_s5] sm:$0xff]  ;;  %238 = vmatpush.msra.mxu3 %v213_v29 }
  0x1c   :  { %3358 = vmatpush.msra.mxu2 %v174_v10  ;;  %v3362_v40 = vld [vmem:[%s4635_s12] ss:$0 sm:$0xff] }
  0x1d   :  { %166 = vmatpush.msra.mxu1 %v139_v8  ;;  %239 = vmatpush.msra.mxu3 %v212_v30  ;;  %v248_v44 = vld [vmem:[%s4637_s30] sm:$0xff] }
  0x1e   :  { %3359 = vmatpush.msra.mxu2 %v173_v11  ;;  %v172_v13 = vld [vmem:[%s4632_s11 + $0x8] sm:$0xff]  ;;  %v171_v27 = vld [vmem:[%s4632_s11] sm:$0xff] }
  0x1f   :  { %200 = vmatpush.msrb.mxu1 %v174_v10  ;;  %3095 = vmatmul.msk.f32.vlgmr.msra.gmra.mxu2 %vm179_vm1, %v172_v13  ;;  %v3364_v41 = vld [vmem:[%s4636_s9] ss:$0 sm:$0xff]  ;;  %v336_v10 = vld [vmem:[%s4595_s13 + $0x18] sm:$0xff]  ;;  %v335_v13 = vld [vmem:[%s4595_s13 + $0x10] sm:$0xff] }
  0x20   :  { %240 = vmatpush.msra.mxu3 %v211_v31  ;;  %359 = vmatpush.msrb.mxu0 %v336_v10  ;;  %v3122_v30 = vld [vmem:[%s4596_s14 + $0x20] sm:$0xff] }
  0x21   :  { %201 = vmatpush.msrb.mxu1 %v173_v11  ;;  %v375_v11 = vld [vmem:[%s4596_s14 + $0x18] sm:$0xff] }
  0x22   :  { %360 = vmatpush.msrb.mxu0 %v335_v13 }
  0x93   :  { %v116_v6 = vpop.f32.mrf.mxu0 }
  0x94   :  { %v117_v7 = vadd.f32 %v3361_v3, %v116_v6 }
  0x96   :  { %v119_v9 = vsub.f32 0.0, %v117_v7 }
  0x98   :  { %v120_v12 = vmul.f32 1.442695, %v119_v9 }
  0x9a   :  { %3407 = vpow2.f32 %v120_v12  ;;  %v406_v12 = vld [vmem:[%s4597_s15 + $0x18] sm:$0xff] }
  0x9b   :  { %423 = vmatpush.msrb.mxu2 %v406_v12  ;;  %v3844_v12 = vld [vmem:[%s4598_s17 + $0x1] ss:$0 sm:$0xff] }
  0xa0   :  { %v3408_v14 = vpop.eup %3407 }
  0xa1   :  { %v122_v15 = vadd.f32 1.0, %v3408_v14  ;;  %v374_v14 = vld [vmem:[%s4596_s14 + $0x10] sm:$0xff] }
  0xa2   :  { %v206_v36 = vpop.f32.mrf.mxu2 }
  0xa3   :  { %3409 = vrcp.f32 %v122_v15  ;;  %v134_v19 = vand.u32 2147483648, %v122_v15  ;;  %v132_v21 = vand.u32 2147483647, %v122_v15  ;;  %vm128_vm3 = vweird.f32 %v122_v15 }
  0xa4   :  { %v207_v37 = vadd.f32 %v3363_v33, %v206_v36 }
  0xa5   :  { %v135_v23 = vor.u32 1.1754944e-38, %v134_v19  ;;  %vm133_vm5 = vcmp.eq.f32.partialorder %v132_v21, 8.507059e+37  ;;  %v333_v19 = vld [vmem:[%s4595_s13] sm:$0xff] }
  0xa6   :  { %v403_v21 = vld [vmem:[%s4597_s15] sm:$0xff] }
  0xa9   :  { %v3410_v16 = vpop.eup %3409 }
  0xaa   :  { %v124_v17 = vmul.f32 %v3410_v16, %v122_v15  ;;  %vm129_vm2 = vweird.f32 %v3410_v16  ;;  %v405_v15 = vld [vmem:[%s4597_s15 + $0x10] sm:$0xff] }
  0xab   :  { %vm130_vm4 = vmor %vm128_vm3, %vm129_vm2  ;;  %424 = vmatpush.msrb.mxu2 %v405_v15 }
  0xac   :  { %v125_v18 = vsub.f32 1.0, %v124_v17  ;;  %v373_v17 = vld [vmem:[%s4596_s14 + $0x8] sm:$0xff] }
  0xae   :  { %v126_v20 = vmul.f32 %v3410_v16, %v125_v18  ;;  %v404_v18 = vld [vmem:[%s4597_s15 + $0x8] sm:$0xff] }
  0xaf   :  { %425 = vmatpush.msrb.mxu2 %v404_v18 }
  0xb0   :  { %v127_v22 = vadd.f32 %v3410_v16, %v126_v20  ;;  %v372_v20 = vld [vmem:[%s4596_s14] sm:$0xff] }
  0xb1   :  { %426 = vmatpush.msrb.mxu2 %v403_v21 }
  0xb2   :  { %v131_v24 = vsel %vm130_vm4, %v3410_v16, %v127_v22  ;;  %v334_v16 = vld [vmem:[%s4595_s13 + $0x8] sm:$0xff] }
  0xb3   :  { %v136_v25 = vsel %vm133_vm5, %v135_v23, %v131_v24  ;;  %361 = vmatpush.msrb.mxu0 %v334_v16 }
  0xb4   :  { %v138_v26 = vmul.f32 %v136_v25, %v117_v7  ;;  %v3125_v25 = vld [vmem:[%s4596_s14 + $0x38] sm:$0xff] }
  0xb5   :  { %362 = vmatpush.msrb.mxu0 %v333_v19  ;;  %638 = vmatpush.msra.mxu2 %v3125_v25 }
  0xb6   :  { %3093 = vmatmul.msk.f32.vlgmr.msra.gmra.mxu1 %vm147_vm6, %v138_v26  ;;  %v3124_v26 = vld [vmem:[%s4596_s14 + $0x30] sm:$0xff] }
  0xb7   :  { %392 = vmatpush.msra.mxu1 %v375_v11  ;;  %639 = vmatpush.msra.mxu2 %v3124_v26  ;;  %v3115_v11 = vld [vmem:[%s4595_s13 + $0x20] sm:$0xff] }
  0xb9   :  { %393 = vmatpush.msra.mxu1 %v374_v14  ;;  %640 = vmatpush.msra.mxu2 %v3123_v28 }
  0xbb   :  { %394 = vmatpush.msra.mxu1 %v373_v17  ;;  %641 = vmatpush.msra.mxu2 %v3122_v30  ;;  %v3131_v30 = vld [vmem:[%s4597_s15 + $0x30] sm:$0xff] }
  0xbd   :  { %395 = vmatpush.msra.mxu1 %v372_v20 }
  0xbe   :  { %3094 = vmatmul.msk.f32.vlgmr.msrb.gmra.mxu1 %vm179_vm1, %v171_v27 }
 0x133   :  { %v168_v32 = vpop.f32.mrf.mxu1 }
 0x134   :  { %v169_v42 = vadd.f32 %v3362_v40, %v168_v32  ;;  %v3365_v40 = vld [vmem:[%s4638_s29] ss:$0 sm:$0xff] }
 0x136   :  { %v253_v47 = vperm.slane %v169_v42, 0  ;;  %v252_v49 = vrot.slane %v169_v42, 1 }
 0x138   :  { %v254_v53 = vperm.slane %v252_v49, 0 }
 0x13b   :  { %v203_v34 = vpop.f32.mrf.mxu1 }
 0x13c   :  { %v204_v35 = vadd.f32 %v3363_v33, %v203_v34 }
 0x13e   :  { %3411 = vtanh.f32 %v204_v35 }
 0x13f   :  { %3413 = vtanh.f32 %v207_v37 }
 0x140   :  { %3415 = vrcp.f32 %v3513_v57 }
 0x144   :  { %v3412_v38 = vpop.eup %3411 }
 0x145   :  { %3096 = vmatmul.msk.f32.vlgmr.msra.gmra.mxu3 %vm147_vm6, %v3412_v38  ;;  %v3414_v39 = vpop.eup %3413 }
 0x146   :  { %v3416_v58 = vpop.eup %3415 }
 0x147   :  { %v268_v59 = vmul.f32 32.0, %v3416_v58  ;;  %vm272_vm7 = vweird.f32 %v3416_v58 }
 0x149   :  { %v269_v60 = vsub.f32 1.0, %v268_v59 }
 0x14b   :  { %v270_v61 = vmul.f32 %v3416_v58, %v269_v60 }
 0x14d   :  { %3097 = vmatmul.msk.f32.gmra.mxu3 %vm147_vm6, %v3414_v39  ;;  %v271_v62 = vadd.f32 %v3416_v58, %v270_v61  ;;  %v3369_v61 = vld [vmem:[%s4599_s18] ss:$0 sm:$0xff] }
 0x14f   :  { %v3724_v63 = vsel %vm272_vm7, %v3416_v58, %v271_v62 }
 0x1c8   :  { %v242_v43 = vpop.f32.mrf.mxu3 }
 0x1c9   :  { %v243_v45 = vadd.f32 %v3364_v41, %v242_v43  ;;  %v3366_v43 = vld [vmem:[%s4639_s7] ss:$0 sm:$0xff] }
 0x1cb   :  { %v249_v46 = vadd.f32 %v248_v44, %v243_v45 }
 0x1cd   :  { %v257_v48 = vadd.f32 %v253_v47, %v249_v46 }
 0x1cf   :  { %v261_v50 = vsel %vm147_vm6, %v257_v48, 0.0 }
 0x1d0   :  { %v245_v51 = vpop.f32.mrf.mxu3  ;;  %262 = vadd.xlane.f32.xlu0 %v261_v50 }
 0x1d1   :  { %v246_v52 = vadd.f32 %v3364_v41, %v245_v51 }
 0x1d3   :  { %v250_v54 = vadd.f32 %v248_v44, %v246_v52 }
 0x1d5   :  { %v258_v55 = vadd.f32 %v254_v53, %v250_v54  ;;  %v3367_v54 = vld [vmem:[%s4594_s16] ss:$0 sm:$0xff] }
 0x1d7   :  { %v264_v56 = vsel %vm147_vm6, %v258_v55, 0.0 }
 0x1d8   :  { %265 = vadd.xlane.f32.xlu0 %v264_v56 }
 0x243   :  { %v263_v0 = vpop.xlane.xlu0 %262 }
 0x244   :  { %v274_v1 = vmul.f32 %v3724_v63, %v263_v0 }
 0x246   :  { %v3727_v2 = vsub.f32 %v257_v48, %v274_v1 }
 0x248   :  { %v278_v3 = vmul.f32 %v3727_v2, %v3727_v2 }
 0x24a   :  { %v280_v4 = vsel %vm147_vm6, %v278_v3, 0.0 }
 0x24b   :  { %281 = vadd.xlane.f32.xlu1 %v280_v4  ;;  %v266_v5 = vpop.xlane.xlu0 %265 }
 0x24c   :  { %v275_v6 = vmul.f32 %v3724_v63, %v266_v5  ;;  %v3118_v5 = vld [vmem:[%s4595_s13 + $0x38] sm:$0xff] }
 0x24e   :  { %v3733_v7 = vsub.f32 %v258_v55, %v275_v6  ;;  %v3368_v55 = vld [vmem:[%s4598_s17] ss:$0 sm:$0xff] }
 0x250   :  { %v279_v8 = vmul.f32 %v3733_v7, %v3733_v7 }
 0x252   :  { %v283_v9 = vsel %vm147_vm6, %v279_v8, 0.0  ;;  %v3116_v8 = vld [vmem:[%s4595_s13 + $0x28] sm:$0xff] }
 0x253   :  { %284 = vadd.xlane.f32.xlu1 %v283_v9 }
 0x2be   :  { %v282_v22 = vpop.xlane.xlu1 %281 }
 0x2bf   :  { %v286_v23 = vmul.f32 %v282_v22, %v3724_v63 }
 0x2c1   :  { %v288_v24 = vadd.f32 1e-12, %v286_v23 }
 0x2c3   :  { %3417 = vrsqrt.f32 %v288_v24  ;;  %vm296_vm9 = vweird.f32 %v288_v24 }
 0x2c6   :  { %v285_v27 = vpop.xlane.xlu1 %284 }
 0x2c7   :  { %v287_v29 = vmul.f32 %v285_v27, %v3724_v63 }
 0x2c9   :  { %v3418_v31 = vpop.eup %3417  ;;  %v289_v32 = vadd.f32 1e-12, %v287_v29  ;;  %v3132_v29 = vld [vmem:[%s4597_s15 + $0x38] sm:$0xff] }
 0x2ca   :  { %v291_v33 = vmul.f32 %v3418_v31, %v288_v24  ;;  %vm297_vm8 = vweird.f32 %v3418_v31 }
 0x2cb   :  { %3419 = vrsqrt.f32 %v289_v32  ;;  %vm298_vm10 = vmor %vm296_vm9, %vm297_vm8  ;;  %vm306_vm12 = vweird.f32 %v289_v32 }
 0x2cc   :  { %v292_v34 = vmul.f32 %v3418_v31, %v291_v33 }
 0x2ce   :  { %v293_v35 = vmul.f32 0.5, %v292_v34 }
 0x2d0   :  { %v294_v36 = vsub.f32 1.5, %v293_v35 }
 0x2d1   :  { %v3420_v37 = vpop.eup %3419 }
 0x2d2   :  { %v295_v38 = vmul.f32 %v3418_v31, %v294_v36  ;;  %v301_v39 = vmul.f32 %v3420_v37, %v289_v32  ;;  %vm307_vm11 = vweird.f32 %v3420_v37  ;;  %v3129_v32 = vld [vmem:[%s4597_s15 + $0x20] sm:$0xff] }
 0x2d3   :  { %vm308_vm13 = vmor %vm306_vm12, %vm307_vm11 }
 0x2d4   :  { %v299_v41 = vsel %vm298_vm10, %v3418_v31, %v295_v38  ;;  %v302_v42 = vmul.f32 %v3420_v37, %v301_v39  ;;  %v3130_v31 = vld [vmem:[%s4597_s15 + $0x28] sm:$0xff] }
 0x2d5   :  { %v310_v44 = vmul.f32 %v299_v41, %v3727_v2 }
 0x2d6   :  { %v303_v45 = vmul.f32 0.5, %v302_v42 }
 0x2d7   :  { %v315_v46 = vmul.f32 %v3365_v40, %v310_v44 }
 0x2d8   :  { %v304_v47 = vsub.f32 1.5, %v303_v45 }
 0x2d9   :  { %v3795_v48 = vadd.f32 %v3366_v43, %v315_v46 }
 0x2da   :  { %v305_v49 = vmul.f32 %v3420_v37, %v304_v47 }
 0x2db   :  { %3103 = vmatmul.msk.f32.vlgmr.msrb.gmra.mxu0 %vm147_vm6, %v3795_v48  ;;  %3105 = vmatmul.msk.f32.vlgmr.msra.gmra.mxu1 %vm147_vm6, %v3795_v48 }
 0x2dc   :  { %v309_v50 = vsel %vm308_vm13, %v3420_v37, %v305_v49  ;;  %3107 = vmatmul.msk.f32.vlgmr.msrb.gmra.mxu2 %vm147_vm6, %v3795_v48 }
 0x2dd   :  { %v311_v51 = vmul.f32 %v309_v50, %v3733_v7  ;;  %v3117_v7 = vld [vmem:[%s4595_s13 + $0x30] sm:$0xff] }
 0x2df   :  { %v316_v52 = vmul.f32 %v3365_v40, %v311_v51 }
 0x2e1   :  { %v3804_v53 = vadd.f32 %v3366_v43, %v316_v52 }
 0x2e3   :  { %3104 = vmatmul.msk.f32.gmra.mxu0 %vm147_vm6, %v3804_v53  ;;  %3106 = vmatmul.msk.f32.gmra.mxu1 %vm147_vm6, %v3804_v53 }
 0x2e4   :  { %3108 = vmatmul.msk.f32.gmra.mxu2 %vm147_vm6, %v3804_v53 }
 0x2ec   :  { %3127 = vmatmul.msk.f32.vlgmr.msra.gmra.mxu2 %vm147_vm6, %v3795_v48 }
 0x2f4   :  { %3128 = vmatmul.msk.f32.gmra.mxu2 %vm147_vm6, %v3804_v53 }
 0x358   :  { %v364_v56 = vpop.f32.mrf.mxu0  ;;  %v397_v57 = vpop.f32.mrf.mxu1 }
 0x359   :  { %v365_v58 = vadd.f32 %v3367_v54, %v364_v56  ;;  %v398_v59 = vadd.f32 %v3368_v55, %v397_v57 }
 0x35b   :  { %v370_v60 = vmul.f32 0.35355338, %v365_v58  ;;  %3109 = vmatpush.xpose.msk.msrb.mxu3 %vm95_vm0, %v398_v59 }
 0x35e   :  { %3110 = vmatmul.msk.f32.vlgmr.msrb.gmra.mxu3 %vm95_vm0, %v370_v60  ;;  %v3371_v60 = vld [vmem:[%s4594_s16 + $0x1] ss:$0 sm:$0xff] }
 0x35f   :  { %v428_v62 = vpop.f32.mrf.mxu2 }
 0x360   :  { %v429_v0 = vadd.f32 %v3369_v61, %v428_v62  ;;  %v367_v1 = vpop.f32.mrf.mxu0  ;;  %v400_v2 = vpop.f32.mrf.mxu1 }
 0x361   :  { %v368_v3 = vadd.f32 %v3367_v54, %v367_v1  ;;  %v401_v4 = vadd.f32 %v3368_v55, %v400_v2 }
 0x362   :  { %552 = vmatpush.msrb.mxu1 %v429_v0 }
 0x363   :  { %v371_v6 = vmul.f32 0.35355338, %v368_v3  ;;  %3111 = vmatpush.xpose.msk.msra.mxu0 %vm95_vm0, %v401_v4 }
 0x364   :  { %671 = vmatpush.msra.mxu1 %v3132_v29  ;;  %v3148_v29 = vld [vmem:[%s4595_s13 + $0x48] sm:$0xff] }
 0x366   :  { %3112 = vmatmul.msk.f32.vlgmr.msra.gmra.mxu0 %vm95_vm0, %v371_v6  ;;  %672 = vmatpush.msra.mxu1 %v3131_v30  ;;  %v3147_v30 = vld [vmem:[%s4595_s13 + $0x40] sm:$0xff] }
 0x367   :  { %603 = vmatpush.msrb.mxu0 %v3118_v5  ;;  %v431_v9 = vpop.f32.mrf.mxu2  ;;  %v580_v5 = vld [vmem:[%s4600_s19] sm:$0xff] }
 0x368   :  { %v432_v10 = vadd.f32 %v3369_v61, %v431_v9  ;;  %673 = vmatpush.msra.mxu1 %v3130_v31  ;;  %v3157_v31 = vld [vmem:[%s4596_s14 + $0x58] sm:$0xff] }
 0x369   :  { %604 = vmatpush.msrb.mxu0 %v3117_v7  ;;  %v3372_v7 = vld [vmem:[%s4599_s18 + $0x1] ss:$0 sm:$0xff] }
 0x36a   :  { %575 = vmatpush.msra.mxu3 %v432_v10  ;;  %674 = vmatpush.msra.mxu1 %v3129_v32  ;;  %v3156_v32 = vld [vmem:[%s4596_s14 + $0x50] sm:$0xff] }
 0x36b   :  { %605 = vmatpush.msrb.mxu0 %v3116_v8 }
 0x36d   :  { %606 = vmatpush.msrb.mxu0 %v3115_v11 }
 0x36e   :  { %3120 = vmatmul.msk.f32.vlgmr.msrb.gmra.mxu0 %vm147_vm6, %v3795_v48 }
 0x36f   :  { %v643_v13 = vpop.f32.mrf.mxu2 }
 0x370   :  { %v644_v14 = vadd.f32 %v3844_v12, %v643_v13 }
 0x372   :  { %3136 = vmatpush.xpose.msk.msrb.mxu3 %vm95_vm0, %v644_v14 }
 0x376   :  { %3121 = vmatmul.msk.f32.gmra.mxu0 %vm147_vm6, %v3804_v53 }
 0x377   :  { %v646_v55 = vpop.f32.mrf.mxu2 }
 0x378   :  { %v647_v62 = vadd.f32 %v3844_v12, %v646_v55 }
 0x3e1   :  { %v457_v15 = vpop.f32.mrf.mxu3 }
 0x3e2   :  { %v486_v16 = vsel %vm95_vm0, %v457_v15, -inf }
 0x3e3   :  { %487 = vmax.xlane.f32.xlu0 %v486_v16  ;;  %v483_v17 = vpop.f32.mrf.mxu0 }
 0x3e4   :  { %v489_v18 = vsel %vm95_vm0, %v483_v17, -inf }
 0x3e5   :  { %490 = vmax.xlane.f32.xlu2 %v489_v18 }
 0x3eb   :  { %v608_v58 = vpop.f32.mrf.mxu0 }
 0x3ec   :  { %v609_v0 = vadd.f32 %v3371_v60, %v608_v58 }
 0x3ee   :  { %v614_v1 = vmul.f32 0.35355338, %v609_v0  ;;  %v3163_v0 = vld [vmem:[%s4597_s15 + $0x50] sm:$0xff] }
 0x3f3   :  { %v611_v2 = vpop.f32.mrf.mxu0 }
 0x3f4   :  { %v612_v3 = vadd.f32 %v3371_v60, %v611_v2  ;;  %v3161_v2 = vld [vmem:[%s4597_s15 + $0x40] sm:$0xff] }
 0x3f6   :  { %v615_v4 = vmul.f32 0.35355338, %v612_v3  ;;  %v3187_v3 = vld [vmem:[%s4596_s14 + $0x78] sm:$0xff] }
 0x456   :  { %v488_v19 = vpop.xlane.xlu0 %487 }
 0x457   :  { %v492_v20 = vsub.f32 %v457_v15, %v488_v19 }
 0x458   :  { %v491_v21 = vpop.xlane.xlu2 %490 }
 0x459   :  { %v494_v22 = vmul.f32 1.442695, %v492_v20  ;;  %v493_v23 = vsub.f32 %v483_v17, %v491_v21 }
 0x45b   :  { %3421 = vpow2.f32 %v494_v22  ;;  %v496_v24 = vmul.f32 1.442695, %v493_v23 }
 0x45d   :  { %3423 = vpow2.f32 %v496_v24 }
 0x461   :  { %v3422_v25 = vpop.eup %3421 }
 0x462   :  { %v498_v26 = vsel %vm95_vm0, %v3422_v25, 0.0 }
 0x463   :  { %v3424_v27 = vpop.eup %3423  ;;  %499 = vadd.xlane.f32.xlu1 %v498_v26 }
 0x464   :  { %v501_v28 = vsel %vm95_vm0, %v3424_v27, 0.0 }
 0x465   :  { %502 = vadd.xlane.f32.xlu2 %v501_v28  ;;  %v3149_v28 = vld [vmem:[%s4595_s13 + $0x50] sm:$0xff] }
 0x4d6   :  { %v500_v33 = vpop.xlane.xlu1 %499 }
 0x4d7   :  { %3425 = vrcp.f32 %v500_v33  ;;  %v515_v40 = vand.u32 2147483648, %v500_v33  ;;  %v513_v42 = vand.u32 2147483647, %v500_v33  ;;  %vm509_vm15 = vweird.f32 %v500_v33 }
 0x4d8   :  { %v503_v34 = vpop.xlane.xlu2 %502 }
 0x4d9   :  { %3427 = vrcp.f32 %v503_v34  ;;  %v530_v44 = vand.u32 2147483648, %v503_v34  ;;  %v528_v47 = vand.u32 2147483647, %v503_v34  ;;  %v516_v49 = vor.u32 1.1754944e-38, %v515_v40 }
 0x4da   :  { %vm514_vm3 = vcmp.eq.f32.partialorder %v513_v42, 8.507059e+37  ;;  %vm524_vm4 = vweird.f32 %v503_v34 }
 0x4db   :  { %v531_v54 = vor.u32 1.1754944e-38, %v530_v44  ;;  %vm529_vm7 = vcmp.eq.f32.partialorder %v528_v47, 8.507059e+37 }
 0x4dd   :  { %v3426_v35 = vpop.eup %3425 }
 0x4de   :  { %v505_v36 = vmul.f32 %v3426_v35, %v500_v33  ;;  %vm510_vm14 = vweird.f32 %v3426_v35  ;;  %v3155_v33 = vld [vmem:[%s4596_s14 + $0x48] sm:$0xff] }
 0x4df   :  { %v3428_v37 = vpop.eup %3427  ;;  %vm511_vm2 = vmor %vm509_vm15, %vm510_vm14 }
 0x4e0   :  { %v506_v38 = vsub.f32 1.0, %v505_v36  ;;  %v520_v39 = vmul.f32 %v3428_v37, %v503_v34  ;;  %vm525_vm1 = vweird.f32 %v3428_v37 }
 0x4e1   :  { %vm526_vm5 = vmor %vm524_vm4, %vm525_vm1 }
 0x4e2   :  { %v507_v41 = vmul.f32 %v3426_v35, %v506_v38  ;;  %v521_v43 = vsub.f32 1.0, %v520_v39 }
 0x4e4   :  { %v508_v45 = vadd.f32 %v3426_v35, %v507_v41  ;;  %v522_v46 = vmul.f32 %v3428_v37, %v521_v43 }
 0x4e6   :  { %v512_v50 = vsel %vm511_vm2, %v3426_v35, %v508_v45  ;;  %v523_v51 = vadd.f32 %v3428_v37, %v522_v46  ;;  %v3154_v35 = vld [vmem:[%s4596_s14 + $0x40] sm:$0xff] }
 0x4e7   :  { %v517_v52 = vsel %vm514_vm3, %v516_v49, %v512_v50 }
 0x4e8   :  { %v527_v56 = vsel %vm526_vm5, %v3428_v37, %v523_v51  ;;  %v518_v57 = vmul.f32 %v3422_v25, %v517_v52 }
 0x4e9   :  { %v532_v59 = vsel %vm529_vm7, %v531_v54, %v527_v56 }
 0x4ea   :  { %3113 = vmatmul.msk.f32.vlgmr.msrb.gmra.mxu1 %vm95_vm0, %v518_v57  ;;  %v533_v61 = vmul.f32 %v3424_v27, %v532_v59  ;;  %v3150_v27 = vld [vmem:[%s4595_s13 + $0x58] sm:$0xff] }
 0x4ec   :  { %3114 = vmatmul.msk.f32.vlgmr.msra.gmra.mxu3 %vm95_vm0, %v533_v61  ;;  %v3142_v61 = vld [vmem:[%s4600_s19 + $0x8] sm:$0xff] }
 0x4ed   :  { %3138 = vmatpush.xpose.msk.msra.mxu3 %vm95_vm0, %v647_v62  ;;  %851 = vmatpush.msrb.mxu1 %v3142_v61  ;;  %v3164_v62 = vld [vmem:[%s4597_s15 + $0x58] sm:$0xff] }
 0x4f2   :  { %3134 = vmatmul.msk.f32.vlgmr.msra.gmra.mxu1 %vm147_vm6, %v3795_v48 }
 0x4f3   :  { %978 = vmatpush.msra.mxu1 %v3164_v62 }
 0x4f4   :  { %3137 = vmatmul.msk.f32.vlgmr.msrb.gmra.mxu3 %vm95_vm0, %v614_v1  ;;  %v3162_v1 = vld [vmem:[%s4597_s15 + $0x48] sm:$0xff] }
 0x4f5   :  { %880 = vmatpush.msrb.mxu3 %v580_v5  ;;  %979 = vmatpush.msra.mxu1 %v3163_v0  ;;  %v3186_v5 = vld [vmem:[%s4596_s14 + $0x70] sm:$0xff] }
 0x4f7   :  { %980 = vmatpush.msra.mxu1 %v3162_v1 }
 0x4f9   :  { %981 = vmatpush.msra.mxu1 %v3161_v2 }
 0x4fa   :  { %3135 = vmatmul.msk.f32.gmra.mxu1 %vm147_vm6, %v3804_v53 }
 0x4fc   :  { %3139 = vmatmul.msk.f32.vlgmr.msra.gmra.mxu3 %vm95_vm0, %v615_v4 }
 0x567   :  { %v554_v6 = vpop.f32.mrf.mxu1 }
 0x568   :  { %3145 = vmatmul.msk.f32.vlgmr.msrb.gmra.mxu3 %vm95_vm0, %v554_v6  ;;  %v3185_v6 = vld [vmem:[%s4596_s14 + $0x68] sm:$0xff] }
 0x56f   :  { %v577_v8 = vpop.f32.mrf.mxu3  ;;  %v676_v9 = vpop.f32.mrf.mxu1 }
 0x570   :  { %v677_v10 = vadd.f32 %v3372_v7, %v676_v9  ;;  %3146 = vmatmul.msk.f32.gmra.mxu3 %vm95_vm0, %v577_v8 }
 0x572   :  { %800 = vmatpush.msra.mxu0 %v677_v10  ;;  %v3373_v10 = vld [vmem:[%s4594_s16 + $0x2] ss:$0 sm:$0xff] }
 0x574   :  { %910 = vmatpush.msrb.mxu0 %v3150_v27  ;;  %v3375_v27 = vld [vmem:[%s4599_s18 + $0x2] ss:$0 sm:$0xff] }
 0x576   :  { %911 = vmatpush.msrb.mxu0 %v3149_v28 }
 0x577   :  { %v679_v11 = vpop.f32.mrf.mxu1  ;;  %v705_v12 = vpop.f32.mrf.mxu3 }
 0x578   :  { %v680_v13 = vadd.f32 %v3372_v7, %v679_v11  ;;  %v734_v14 = vsel %vm95_vm0, %v705_v12, -inf  ;;  %912 = vmatpush.msrb.mxu0 %v3148_v29  ;;  %v3184_v7 = vld [vmem:[%s4596_s14 + $0x60] sm:$0xff] }
 0x579   :  { %735 = vmax.xlane.f32.xlu0 %v734_v14  ;;  %v3374_v11 = vld [vmem:[%s4598_s17 + $0x2] ss:$0 sm:$0xff] }
 0x57a   :  { %823 = vmatpush.msrb.mxu2 %v680_v13  ;;  %913 = vmatpush.msrb.mxu0 %v3147_v30 }
 0x57c   :  { %945 = vmatpush.msra.mxu2 %v3157_v31 }
 0x57e   :  { %946 = vmatpush.msra.mxu2 %v3156_v32 }
 0x57f   :  { %v731_v15 = vpop.f32.mrf.mxu3 }
 0x580   :  { %v737_v16 = vsel %vm95_vm0, %v731_v15, -inf  ;;  %947 = vmatpush.msra.mxu2 %v3155_v33 }
 0x581   :  { %738 = vmax.xlane.f32.xlu2 %v737_v16 }
 0x582   :  { %948 = vmatpush.msra.mxu2 %v3154_v35  ;;  %v3990_v35 = vld [vmem:[%s4598_s17 + $0x3] ss:$0 sm:$0xff] }
 0x5ec   :  { %v736_v17 = vpop.xlane.xlu0 %735 }
 0x5ed   :  { %v740_v18 = vsub.f32 %v705_v12, %v736_v17 }
 0x5ef   :  { %v742_v19 = vmul.f32 1.442695, %v740_v18 }
 0x5f1   :  { %3429 = vpow2.f32 %v742_v19 }
 0x5f4   :  { %v739_v20 = vpop.xlane.xlu2 %738 }
 0x5f5   :  { %v741_v21 = vsub.f32 %v731_v15, %v739_v20 }
 0x5f7   :  { %v3430_v22 = vpop.eup %3429  ;;  %v744_v23 = vmul.f32 1.442695, %v741_v21  ;;  %v3974_v21 = vpop.f32.mrf.mxu3 }
 0x5f8   :  { %v746_v24 = vsel %vm95_vm0, %v3430_v22, 0.0 }
 0x5f9   :  { %3431 = vpow2.f32 %v744_v23  ;;  %747 = vadd.xlane.f32.xlu2 %v746_v24  ;;  %v3174_v23 = vld [vmem:[%s4600_s19 + $0x10] sm:$0xff] }
 0x5ff   :  { %v3432_v25 = vpop.eup %3431  ;;  %v885_v24 = vpop.f32.mrf.mxu3 }
 0x600   :  { %v749_v26 = vsel %vm95_vm0, %v3432_v25, 0.0 }
 0x601   :  { %750 = vadd.xlane.f32.xlu1 %v749_v26 }
 0x66c   :  { %v748_v34 = vpop.xlane.xlu2 %747 }
 0x66d   :  { %3433 = vrcp.f32 %v748_v34  ;;  %v763_v40 = vand.u32 2147483648, %v748_v34  ;;  %v761_v42 = vand.u32 2147483647, %v748_v34  ;;  %vm757_vm9 = vweird.f32 %v748_v34 }
 0x66f   :  { %v764_v45 = vor.u32 1.1754944e-38, %v763_v40  ;;  %vm762_vm11 = vcmp.eq.f32.partialorder %v761_v42, 8.507059e+37 }
 0x673   :  { %v3434_v36 = vpop.eup %3433 }
 0x674   :  { %v753_v37 = vmul.f32 %v3434_v36, %v748_v34  ;;  %v751_v38 = vpop.xlane.xlu1 %750  ;;  %vm758_vm8 = vweird.f32 %v3434_v36 }
 0x675   :  { %3435 = vrcp.f32 %v751_v38  ;;  %vm759_vm10 = vmor %vm757_vm9, %vm758_vm8  ;;  %v778_v52 = vand.u32 2147483648, %v751_v38  ;;  %v776_v55 = vand.u32 2147483647, %v751_v38  ;;  %vm772_vm13 = vweird.f32 %v751_v38 }
 0x676   :  { %v754_v39 = vsub.f32 1.0, %v753_v37 }
 0x677   :  { %v779_v57 = vor.u32 1.1754944e-38, %v778_v52  ;;  %vm777_vm15 = vcmp.eq.f32.partialorder %v776_v55, 8.507059e+37  ;;  %v3178_v52 = vld [vmem:[%s4595_s13 + $0x68] sm:$0xff]  ;;  %v3194_v55 = vld [vmem:[%s4597_s15 + $0x78] sm:$0xff] }
 0x678   :  { %v755_v41 = vmul.f32 %v3434_v36, %v754_v39 }
 0x67a   :  { %v756_v43 = vadd.f32 %v3434_v36, %v755_v41 }
 0x67b   :  { %v3436_v44 = vpop.eup %3435 }
 0x67c   :  { %v760_v46 = vsel %vm759_vm10, %v3434_v36, %v756_v43  ;;  %v768_v47 = vmul.f32 %v3436_v44, %v751_v38  ;;  %vm773_vm12 = vweird.f32 %v3436_v44 }
 0x67d   :  { %v765_v49 = vsel %vm762_vm11, %v764_v45, %v760_v46  ;;  %vm774_vm14 = vmor %vm772_vm13, %vm773_vm12 }
 0x67e   :  { %v769_v50 = vsub.f32 1.0, %v768_v47  ;;  %v766_v51 = vmul.f32 %v3430_v22, %v765_v49 }
 0x680   :  { %v770_v54 = vmul.f32 %v3436_v44, %v769_v50  ;;  %3140 = vmatmul.msk.f32.vlgmr.msra.gmra.mxu0 %vm95_vm0, %v766_v51  ;;  %v3180_v50 = vld [vmem:[%s4595_s13 + $0x78] sm:$0xff]  ;;  %v3179_v51 = vld [vmem:[%s4595_s13 + $0x70] sm:$0xff] }
 0x682   :  { %v771_v56 = vadd.f32 %v3436_v44, %v770_v54  ;;  %v3177_v54 = vld [vmem:[%s4595_s13 + $0x60] sm:$0xff] }
 0x684   :  { %v775_v58 = vsel %vm774_vm14, %v3436_v44, %v771_v56  ;;  %v3193_v56 = vld [vmem:[%s4597_s15 + $0x70] sm:$0xff] }
 0x685   :  { %v780_v59 = vsel %vm777_vm15, %v779_v57, %v775_v58  ;;  %v3192_v57 = vld [vmem:[%s4597_s15 + $0x68] sm:$0xff]  ;;  %v3191_v58 = vld [vmem:[%s4597_s15 + $0x60] sm:$0xff] }
 0x686   :  { %v781_v60 = vmul.f32 %v3432_v25, %v780_v59 }
 0x688   :  { %3141 = vmatmul.msk.f32.vlgmr.msrb.gmra.mxu2 %vm95_vm0, %v781_v60  ;;  %3152 = vmatmul.msk.f32.vlgmr.msrb.gmra.mxu0 %vm147_vm6, %v3795_v48 }
 0x690   :  { %3153 = vmatmul.msk.f32.gmra.mxu0 %vm147_vm6, %v3804_v53  ;;  %3159 = vmatmul.msk.f32.vlgmr.msra.gmra.mxu2 %vm147_vm6, %v3795_v48 }
 0x698   :  { %3160 = vmatmul.msk.f32.gmra.mxu2 %vm147_vm6, %v3804_v53 }
 0x6fd   :  { %v802_v4 = vpop.f32.mrf.mxu0 }
 0x6fe   :  { %3143 = vmatmul.msk.f32.vlgmr.msrb.gmra.mxu1 %vm95_vm0, %v802_v4 }
 0x6ff   :  { %1225 = vmatpush.msrb.mxu1 %v3187_v3 }
 0x701   :  { %1226 = vmatpush.msrb.mxu1 %v3186_v5 }
 0x703   :  { %1227 = vmatpush.msrb.mxu1 %v3185_v6 }
 0x705   :  { %1228 = vmatpush.msrb.mxu1 %v3184_v7  ;;  %v915_v9 = vpop.f32.mrf.mxu0 }
 0x706   :  { %v916_v12 = vadd.f32 %v3373_v10, %v915_v9 }
 0x708   :  { %v921_v15 = vmul.f32 0.35355338, %v916_v12 }
 0x70b   :  { %v825_v8 = vpop.f32.mrf.mxu2 }
 0x70c   :  { %3144 = vmatmul.msk.f32.gmra.mxu1 %vm95_vm0, %v825_v8 }
 0x70d   :  { %v918_v16 = vpop.f32.mrf.mxu0 }
 0x70e   :  { %v919_v17 = vadd.f32 %v3373_v10, %v918_v16 }
 0x710   :  { %v922_v20 = vmul.f32 0.35355338, %v919_v17 }
 0x713   :  { %v950_v13 = vpop.f32.mrf.mxu2 }
 0x714   :  { %v951_v14 = vadd.f32 %v3374_v11, %v950_v13  ;;  %3166 = vmatmul.msk.f32.vlgmr.msra.gmra.mxu1 %vm147_vm6, %v3795_v48 }
 0x716   :  { %3168 = vmatpush.xpose.msk.msra.mxu3 %vm95_vm0, %v951_v14 }
 0x719   :  { %3169 = vmatmul.msk.f32.vlgmr.msra.gmra.mxu3 %vm95_vm0, %v921_v15 }
 0x71b   :  { %v953_v18 = vpop.f32.mrf.mxu2 }
 0x71c   :  { %v954_v19 = vadd.f32 %v3374_v11, %v953_v18  ;;  %3167 = vmatmul.msk.f32.gmra.mxu1 %vm147_vm6, %v3804_v53 }
 0x71e   :  { %3170 = vmatpush.xpose.msk.msra.mxu0 %vm95_vm0, %v954_v19 }
 0x721   :  { %3171 = vmatmul.msk.f32.vlgmr.msra.gmra.mxu0 %vm95_vm0, %v922_v20 }
 0x722   :  { %1158 = vmatpush.msrb.mxu0 %v3174_v23 }
 0x724   :  { %3189 = vmatmul.msk.f32.vlgmr.msrb.gmra.mxu1 %vm147_vm6, %v3795_v48 }
 0x72c   :  { %3190 = vmatmul.msk.f32.gmra.mxu1 %vm147_vm6, %v3804_v53 }
 0x77b   :  { %v3976_v22 = vpop.f32.mrf.mxu1 }
 0x789   :  { %v856_v25 = vpop.f32.mrf.mxu1 }
 0x78a   :  { %v3981_v26 = vadd.f32 %v885_v24, %v856_v25 }
 0x791   :  { %v983_v28 = vpop.f32.mrf.mxu1 }
 0x792   :  { %v984_v29 = vadd.f32 %v3375_v27, %v983_v28  ;;  %v3378_v28 = vld [vmem:[%s4599_s18 + $0x3] ss:$0 sm:$0xff] }
 0x794   :  { %1107 = vmatpush.msrb.mxu2 %v984_v29 }
 0x796   :  { %1190 = vmatpush.msra.mxu2 %v3180_v50 }
 0x798   :  { %1191 = vmatpush.msra.mxu2 %v3179_v51 }
 0x799   :  { %v986_v30 = vpop.f32.mrf.mxu1 }
 0x79a   :  { %v987_v31 = vadd.f32 %v3375_v27, %v986_v30  ;;  %1192 = vmatpush.msra.mxu2 %v3178_v52  ;;  %v3377_v27 = vld [vmem:[%s4594_s16 + $0x3] ss:$0 sm:$0xff] }
 0x79c   :  { %v1012_v32 = vpop.f32.mrf.mxu3  ;;  %1130 = vmatpush.msrb.mxu3 %v987_v31  ;;  %1193 = vmatpush.msra.mxu2 %v3177_v54 }
 0x79d   :  { %v1041_v33 = vsel %vm95_vm0, %v1012_v32, -inf }
 0x79e   :  { %v1038_v34 = vpop.f32.mrf.mxu0  ;;  %1042 = vmax.xlane.f32.xlu0 %v1041_v33  ;;  %1258 = vmatpush.msra.mxu3 %v3194_v55 }
 0x79f   :  { %v1044_v36 = vsel %vm95_vm0, %v1038_v34, -inf }
 0x7a0   :  { %1045 = vmax.xlane.f32.xlu1 %v1044_v36  ;;  %1259 = vmatpush.msra.mxu3 %v3193_v56 }
 0x7a1   :  { %v1230_v37 = vpop.f32.mrf.mxu1 }
 0x7a2   :  { %v1231_v38 = vadd.f32 %v3990_v35, %v1230_v37  ;;  %1260 = vmatpush.msra.mxu3 %v3192_v57 }
 0x7a4   :  { %3198 = vmatpush.xpose.msk.msra.mxu0 %vm95_vm0, %v1231_v38  ;;  %1261 = vmatpush.msra.mxu3 %v3191_v58 }
 0x7a9   :  { %v1233_v12 = vpop.f32.mrf.mxu1 }
 0x7aa   :  { %v1234_v19 = vadd.f32 %v3990_v35, %v1233_v12 }
 0x811   :  { %v1043_v39 = vpop.xlane.xlu0 %1042 }
 0x812   :  { %v1047_v40 = vsub.f32 %v1012_v32, %v1043_v39  ;;  %v883_v39 = vadd.f32 %v3974_v21, %v3976_v22 }
 0x813   :  { %v1046_v41 = vpop.xlane.xlu1 %1045 }
 0x814   :  { %v1049_v42 = vmul.f32 1.442695, %v1047_v40  ;;  %v1048_v43 = vsub.f32 %v1038_v34, %v1046_v41 }
 0x816   :  { %3437 = vpow2.f32 %v1049_v42  ;;  %v1051_v44 = vmul.f32 1.442695, %v1048_v43 }
 0x818   :  { %3439 = vpow2.f32 %v1051_v44 }
 0x81c   :  { %v3438_v45 = vpop.eup %3437 }
 0x81d   :  { %v1053_v46 = vsel %vm95_vm0, %v3438_v45, 0.0 }
 0x81e   :  { %v3440_v47 = vpop.eup %3439  ;;  %1054 = vadd.xlane.f32.xlu2 %v1053_v46 }
 0x81f   :  { %v1056_v49 = vsel %vm95_vm0, %v3440_v47, 0.0 }
 0x820   :  { %1057 = vadd.xlane.f32.xlu0 %v1056_v49 }
 0x891   :  { %v1055_v59 = vpop.xlane.xlu2 %1054 }
 0x892   :  { %3441 = vrcp.f32 %v1055_v59  ;;  %v1070_v3 = vand.u32 2147483648, %v1055_v59  ;;  %v1068_v5 = vand.u32 2147483647, %v1055_v59  ;;  %vm1064_vm2 = vweird.f32 %v1055_v59 }
 0x893   :  { %v1058_v60 = vpop.xlane.xlu0 %1057 }
 0x894   :  { %3443 = vrcp.f32 %v1058_v60  ;;  %v1085_v7 = vand.u32 2147483648, %v1058_v60  ;;  %v1083_v10 = vand.u32 2147483647, %v1058_v60  ;;  %v1071_v11 = vor.u32 1.1754944e-38, %v1070_v3 }
 0x895   :  { %vm1069_vm5 = vcmp.eq.f32.partialorder %v1068_v5, 8.507059e+37  ;;  %vm1079_vm7 = vweird.f32 %v1058_v60 }
 0x896   :  { %v1086_v16 = vor.u32 1.1754944e-38, %v1085_v7  ;;  %vm1084_vm9 = vcmp.eq.f32.partialorder %v1083_v10, 8.507059e+37 }
 0x898   :  { %v3442_v61 = vpop.eup %3441 }
 0x899   :  { %v1060_v62 = vmul.f32 %v3442_v61, %v1055_v59  ;;  %vm1065_vm1 = vweird.f32 %v3442_v61 }
 0x89a   :  { %v3444_v0 = vpop.eup %3443  ;;  %vm1066_vm4 = vmor %vm1064_vm2, %vm1065_vm1 }
 0x89b   :  { %v1061_v1 = vsub.f32 1.0, %v1060_v62  ;;  %v1075_v2 = vmul.f32 %v3444_v0, %v1058_v60  ;;  %vm1080_vm3 = vweird.f32 %v3444_v0 }
 0x89c   :  { %vm1081_vm8 = vmor %vm1079_vm7, %vm1080_vm3 }
 0x89d   :  { %v1062_v4 = vmul.f32 %v3442_v61, %v1061_v1  ;;  %v1076_v6 = vsub.f32 1.0, %v1075_v2 }
 0x89f   :  { %v1063_v8 = vadd.f32 %v3442_v61, %v1062_v4  ;;  %v1077_v9 = vmul.f32 %v3444_v0, %v1076_v6 }
 0x8a1   :  { %v1067_v13 = vsel %vm1066_vm4, %v3442_v61, %v1063_v8  ;;  %v1078_v14 = vadd.f32 %v3444_v0, %v1077_v9 }
 0x8a2   :  { %v1072_v15 = vsel %vm1069_vm5, %v1071_v11, %v1067_v13 }
 0x8a3   :  { %v1082_v17 = vsel %vm1081_vm8, %v3444_v0, %v1078_v14  ;;  %v1073_v18 = vmul.f32 %v3438_v45, %v1072_v15 }
 0x8a4   :  { %v1087_v20 = vsel %vm1084_vm9, %v1086_v16, %v1082_v17 }
 0x8a5   :  { %3172 = vmatmul.msk.f32.vlgmr.msrb.gmra.mxu2 %vm95_vm0, %v1073_v18  ;;  %v1088_v23 = vmul.f32 %v3440_v47, %v1087_v20  ;;  %v3204_v18 = vld [vmem:[%s4600_s19 + $0x18] sm:$0xff] }
 0x8a6   :  { %3200 = vmatpush.xpose.msk.msrb.mxu2 %vm95_vm0, %v1234_v19 }
 0x8a7   :  { %3173 = vmatmul.msk.f32.vlgmr.msrb.gmra.mxu3 %vm95_vm0, %v1088_v23  ;;  %v3379_v23 = vld [vmem:[%s4601_s20] ss:$0 sm:$0xff] }
 0x8ad   :  { %3182 = vmatmul.msk.f32.vlgmr.msra.gmra.mxu2 %vm147_vm6, %v3795_v48 }
 0x8af   :  { %3196 = vmatmul.msk.f32.vlgmr.msra.gmra.mxu3 %vm147_vm6, %v3795_v48 }
 0x8b5   :  { %3183 = vmatmul.msk.f32.gmra.mxu2 %vm147_vm6, %v3804_v53 }
 0x8b7   :  { %3197 = vmatmul.msk.f32.gmra.mxu3 %vm147_vm6, %v3804_v53 }
 0x928   :  { %v1109_v24 = vpop.f32.mrf.mxu2 }
 0x929   :  { %3175 = vmatmul.msk.f32.vlgmr.msrb.gmra.mxu0 %vm95_vm0, %v1109_v24 }
 0x92a   :  { %v1132_v25 = vpop.f32.mrf.mxu3  ;;  %1438 = vmatpush.msrb.mxu0 %v3204_v18  ;;  %v1564_v18 = vld [vmem:[%s4604_s23] sm:$0xff] }
 0x930   :  { %v1195_v29 = vpop.f32.mrf.mxu2 }
 0x931   :  { %3176 = vmatmul.msk.f32.gmra.mxu0 %vm95_vm0, %v1132_v25  ;;  %v1196_v31 = vadd.f32 %v3377_v27, %v1195_v29 }
 0x932   :  { %v1263_v30 = vpop.f32.mrf.mxu3 }
 0x933   :  { %v1264_v32 = vadd.f32 %v3378_v28, %v1263_v30  ;;  %v1201_v33 = vmul.f32 0.35355338, %v1196_v31 }
 0x935   :  { %1387 = vmatpush.msra.mxu1 %v1264_v32 }
 0x938   :  { %v1198_v34 = vpop.f32.mrf.mxu2 }
 0x939   :  { %v1199_v35 = vadd.f32 %v3377_v27, %v1198_v34  ;;  %3199 = vmatmul.msk.f32.vlgmr.msra.gmra.mxu0 %vm95_vm0, %v1201_v33 }
 0x93a   :  { %v1266_v36 = vpop.f32.mrf.mxu3 }
 0x93b   :  { %v1202_v37 = vmul.f32 0.35355338, %v1199_v35  ;;  %v1267_v38 = vadd.f32 %v3378_v28, %v1266_v36 }
 0x93d   :  { %3201 = vmatmul.msk.f32.vlgmr.msrb.gmra.mxu2 %vm95_vm0, %v1202_v37  ;;  %1410 = vmatpush.msrb.mxu3 %v1267_v38 }
 0x9a6   :  { %v1160_v40 = vpop.f32.mrf.mxu0 }
 0x9a7   :  { %v4045_v41 = vadd.f32 %v1160_v40, %v883_v39 }
 0x9ae   :  { %v1163_v42 = vpop.f32.mrf.mxu0 }
 0x9af   :  { %v4048_v43 = vadd.f32 %v1163_v42, %v3981_v26 }
 0x9b6   :  { %v1292_v44 = vpop.f32.mrf.mxu0 }
 0x9b7   :  { %v1321_v45 = vsel %vm95_vm0, %v1292_v44, -inf }
 0x9b8   :  { %1322 = vmax.xlane.f32.xlu1 %v1321_v45  ;;  %v1510_v45 = vld [vmem:[%s4603_s21 + $0x8] sm:$0xff] }
 0x9c0   :  { %v1318_v46 = vpop.f32.mrf.mxu2 }
 0x9c1   :  { %v1324_v47 = vsel %vm95_vm0, %v1318_v46, -inf }
 0x9c2   :  { %1325 = vmax.xlane.f32.xlu2 %v1324_v47 }
 0xa2b   :  { %v1323_v49 = vpop.xlane.xlu1 %1322 }
 0xa2c   :  { %v1327_v50 = vsub.f32 %v1292_v44, %v1323_v49  ;;  %v1511_v44 = vld [vmem:[%s4603_s21 + $0x10] sm:$0xff] }
 0xa2e   :  { %v1329_v51 = vmul.f32 1.442695, %v1327_v50 }
 0xa30   :  { %3445 = vpow2.f32 %v1329_v51 }
 0xa35   :  { %v1326_v21 = vpop.xlane.xlu2 %1325 }
 0xa36   :  { %v3446_v22 = vpop.eup %3445  ;;  %v1328_v52 = vsub.f32 %v1318_v46, %v1326_v21  ;;  %v1509_v46 = vld [vmem:[%s4603_s21] sm:$0xff] }
 0xa37   :  { %v1333_v54 = vsel %vm95_vm0, %v3446_v22, 0.0 }
 0xa38   :  { %v1331_v55 = vmul.f32 1.442695, %v1328_v52  ;;  %1334 = vadd.xlane.f32.xlu0 %v1333_v54 }
 0xa3a   :  { %3447 = vpow2.f32 %v1331_v55 }
 0xa40   :  { %v3448_v26 = vpop.eup %3447 }
 0xa41   :  { %v1336_v56 = vsel %vm95_vm0, %v3448_v26, 0.0 }
 0xa42   :  { %1337 = vadd.xlane.f32.xlu1 %v1336_v56 }
 0xaab   :  { %v1335_v57 = vpop.xlane.xlu0 %1334 }
 0xaac   :  { %3449 = vrcp.f32 %v1335_v57  ;;  %v1350_v62 = vand.u32 2147483648, %v1335_v57  ;;  %v1348_v1 = vand.u32 2147483647, %v1335_v57  ;;  %vm1344_vm11 = vweird.f32 %v1335_v57 }
 0xaae   :  { %v1351_v3 = vor.u32 1.1754944e-38, %v1350_v62  ;;  %vm1349_vm13 = vcmp.eq.f32.partialorder %v1348_v1, 8.507059e+37 }
 0xab2   :  { %v3450_v58 = vpop.eup %3449 }
 0xab3   :  { %v1340_v59 = vmul.f32 %v3450_v58, %v1335_v57  ;;  %vm1345_vm10 = vweird.f32 %v3450_v58 }
 0xab4   :  { %vm1346_vm12 = vmor %vm1344_vm11, %vm1345_vm10  ;;  %vm1575_vm10 = vcmask 523264  }
 0xab5   :  { %v1341_v60 = vsub.f32 1.0, %v1340_v59  ;;  %v1338_v61 = vpop.xlane.xlu1 %1337 }
 0xab6   :  { %3451 = vrcp.f32 %v1338_v61  ;;  %v1365_v10 = vand.u32 2147483648, %v1338_v61  ;;  %v1363_v12 = vand.u32 2147483647, %v1338_v61  ;;  %vm1359_vm15 = vweird.f32 %v1338_v61 }
 0xab7   :  { %v1342_v0 = vmul.f32 %v3450_v58, %v1341_v60 }
 0xab8   :  { %v1366_v14 = vor.u32 1.1754944e-38, %v1365_v10  ;;  %vm1364_vm2 = vcmp.eq.f32.partialorder %v1363_v12, 8.507059e+37  ;;  %v1570_v12 = vld [vmem:[%s4604_s23 + $0x30] sm:$0xff] }
 0xab9   :  { %v1343_v2 = vadd.f32 %v3450_v58, %v1342_v0 }
 0xabb   :  { %v1347_v4 = vsel %vm1346_vm12, %v3450_v58, %v1343_v2  ;;  %v3380_v58 = vld [vmem:[%s4601_s20 + $0x1] ss:$0 sm:$0xff] }
 0xabc   :  { %v3452_v5 = vpop.eup %3451  ;;  %v1352_v6 = vsel %vm1349_vm13, %v1351_v3, %v1347_v4 }
 0xabd   :  { %v1355_v7 = vmul.f32 %v3452_v5, %v1338_v61  ;;  %v1353_v8 = vmul.f32 %v3446_v22, %v1352_v6  ;;  %vm1360_vm14 = vweird.f32 %v3452_v5  ;;  %v3381_v61 = vld [vmem:[%s4601_s20 + $0x2] ss:$0 sm:$0xff] }
 0xabe   :  { %vm1361_vm1 = vmor %vm1359_vm15, %vm1360_vm14 }
 0xabf   :  { %v1356_v9 = vsub.f32 1.0, %v1355_v7  ;;  %3202 = vmatmul.msk.f32.vlgmr.msra.gmra.mxu1 %vm95_vm0, %v1353_v8 }
 0xac1   :  { %v1357_v11 = vmul.f32 %v3452_v5, %v1356_v9 }
 0xac3   :  { %v1358_v13 = vadd.f32 %v3452_v5, %v1357_v11  ;;  %v1571_v11 = vld [vmem:[%s4604_s23 + $0x38] sm:$0xff] }
 0xac4   :  { %1590 = vmatpush.msrb.mxu1 %v1571_v11 }
 0xac5   :  { %v1362_v15 = vsel %vm1361_vm1, %v3452_v5, %v1358_v13  ;;  %v1569_v13 = vld [vmem:[%s4604_s23 + $0x28] sm:$0xff] }
 0xac6   :  { %v1367_v16 = vsel %vm1364_vm2, %v1366_v14, %v1362_v15  ;;  %1591 = vmatpush.msrb.mxu1 %v1570_v12  ;;  %v1568_v14 = vld [vmem:[%s4604_s23 + $0x20] sm:$0xff]  ;;  %v1567_v15 = vld [vmem:[%s4604_s23 + $0x18] sm:$0xff] }
 0xac7   :  { %v1368_v17 = vmul.f32 %v3448_v26, %v1367_v16  ;;  %v1566_v16 = vld [vmem:[%s4604_s23 + $0x10] sm:$0xff] }
 0xac8   :  { %1592 = vmatpush.msrb.mxu1 %v1569_v13 }
 0xac9   :  { %3203 = vmatmul.msk.f32.vlgmr.msrb.gmra.mxu3 %vm95_vm0, %v1368_v17  ;;  %v1565_v17 = vld [vmem:[%s4604_s23 + $0x8] sm:$0xff] }
 0xaca   :  { %1593 = vmatpush.msrb.mxu1 %v1568_v14 }
 0xacc   :  { %1594 = vmatpush.msrb.mxu1 %v1567_v15 }
 0xace   :  { %1595 = vmatpush.msrb.mxu1 %v1566_v16  ;;  %v3248_v16 = vld [vmem:[%s4595_s13 + $0xb8] sm:$0xff] }
 0xad0   :  { %1596 = vmatpush.msrb.mxu1 %v1565_v17  ;;  %v3247_v17 = vld [vmem:[%s4595_s13 + $0xb0] sm:$0xff] }
 0xad2   :  { %1597 = vmatpush.msrb.mxu1 %v1564_v18 }
 0xb3c   :  { %v1389_v19 = vpop.f32.mrf.mxu1 }
 0xb3d   :  { %3205 = vmatmul.msk.f32.vlgmr.msrb.gmra.mxu0 %vm95_vm0, %v1389_v19  ;;  %v3382_v19 = vld [vmem:[%s4602_s22] ss:$0 sm:$0xff] }
 0xb4c   :  { %v1412_v20 = vpop.f32.mrf.mxu3 }
 0xb4d   :  { %3206 = vmatmul.msk.f32.gmra.mxu0 %vm95_vm0, %v1412_v20 }
 0xbba   :  { %v1440_v24 = vpop.f32.mrf.mxu0 }
 0xbbb   :  { %v1446_v25 = vadd.f32 %v1440_v24, %v4045_v41 }
 0xbbd   :  { %v1451_v27 = vadd.f32 %v3379_v23, %v1446_v25 }
 0xbbf   :  { %v1453_v28 = vadd.f32 %v1451_v27, %v3795_v48 }
 0xbc1   :  { %v1455_v29 = vsel %vm147_vm6, %v1453_v28, 0.0 }
 0xbc2   :  { %1456 = vadd.xlane.f32.xlu2 %v1455_v29 }
 0xbca   :  { %v1443_v30 = vpop.f32.mrf.mxu0 }
 0xbcb   :  { %v1447_v31 = vadd.f32 %v1443_v30, %v4048_v43 }
 0xbcd   :  { %v1452_v32 = vadd.f32 %v3379_v23, %v1447_v31 }
 0xbcf   :  { %v1454_v33 = vadd.f32 %v1452_v32, %v3804_v53  ;;  %v1512_v53 = vld [vmem:[%s4603_s21 + $0x18] sm:$0xff] }
 0xbd0   :  { %1535 = vmatpush.msra.mxu2 %v1512_v53  ;;  %v3383_v53 = vld [vmem:[%s4601_s20 + $0x3] ss:$0 sm:$0xff] }
 0xbd1   :  { %v1458_v34 = vsel %vm147_vm6, %v1454_v33, 0.0 }
 0xbd2   :  { %1459 = vadd.xlane.f32.xlu0 %v1458_v34  ;;  %1536 = vmatpush.msra.mxu2 %v1511_v44 }
 0xbd4   :  { %1537 = vmatpush.msra.mxu2 %v1510_v45 }
 0xbd6   :  { %1538 = vmatpush.msra.mxu2 %v1509_v46 }
 0xc35   :  { %v1457_v35 = vpop.xlane.xlu2 %1456 }
 0xc36   :  { %v1461_v36 = vmul.f32 %v1457_v35, %v3724_v63 }
 0xc38   :  { %v1463_v37 = vsub.f32 %v1453_v28, %v1461_v36 }
 0xc3a   :  { %v1465_v38 = vmul.f32 %v1463_v37, %v1463_v37 }
 0xc3c   :  { %v1467_v39 = vsel %vm147_vm6, %v1465_v38, 0.0 }
 0xc3d   :  { %1468 = vadd.xlane.f32.xlu1 %v1467_v39 }
 0xc45   :  { %v1460_v48 = vpop.xlane.xlu0 %1459 }
 0xc46   :  { %v1462_v40 = vmul.f32 %v1460_v48, %v3724_v63 }
 0xc48   :  { %v1464_v41 = vsub.f32 %v1454_v33, %v1462_v40 }
 0xc4a   :  { %v1466_v42 = vmul.f32 %v1464_v41, %v1464_v41 }
 0xc4c   :  { %v1470_v43 = vsel %vm147_vm6, %v1466_v42, 0.0 }
 0xc4d   :  { %1471 = vadd.xlane.f32.xlu2 %v1470_v43 }
 0xcb0   :  { %v1469_v47 = vpop.xlane.xlu1 %1468 }
 0xcb1   :  { %v1473_v49 = vmul.f32 %v1469_v47, %v3724_v63 }
 0xcb3   :  { %v1475_v50 = vadd.f32 1e-12, %v1473_v49 }
 0xcb5   :  { %3453 = vrsqrt.f32 %v1475_v50  ;;  %vm1483_vm4 = vweird.f32 %v1475_v50 }
 0xcbb   :  { %v3454_v51 = vpop.eup %3453 }
 0xcbc   :  { %v1478_v21 = vmul.f32 %v3454_v51, %v1475_v50  ;;  %vm1484_vm3 = vweird.f32 %v3454_v51 }
 0xcbd   :  { %vm1485_vm5 = vmor %vm1483_vm4, %vm1484_vm3 }
 0xcbe   :  { %v1479_v22 = vmul.f32 %v3454_v51, %v1478_v21 }
 0xcc0   :  { %v1480_v52 = vmul.f32 0.5, %v1479_v22  ;;  %v1472_v54 = vpop.xlane.xlu2 %1471 }
 0xcc1   :  { %v1474_v55 = vmul.f32 %v1472_v54, %v3724_v63 }
 0xcc2   :  { %v1481_v26 = vsub.f32 1.5, %v1480_v52 }
 0xcc3   :  { %v1476_v56 = vadd.f32 1e-12, %v1474_v55 }
 0xcc4   :  { %v1482_v57 = vmul.f32 %v3454_v51, %v1481_v26 }
 0xcc5   :  { %3455 = vrsqrt.f32 %v1476_v56  ;;  %vm1493_vm8 = vweird.f32 %v1476_v56 }
 0xcc6   :  { %v1486_v59 = vsel %vm1485_vm5, %v3454_v51, %v1482_v57 }
 0xcc7   :  { %v1497_v60 = vmul.f32 %v1486_v59, %v1463_v37 }
 0xcc9   :  { %v1502_v62 = vmul.f32 %v3380_v58, %v1497_v60 }
 0xccb   :  { %v3456_v0 = vpop.eup %3455  ;;  %v4094_v1 = vadd.f32 %v3381_v61, %v1502_v62  ;;  %v3227_v62 = vld [vmem:[%s4596_s14 + $0x98] sm:$0xff] }
 0xccc   :  { %v1488_v2 = vmul.f32 %v3456_v0, %v1476_v56  ;;  %vm1494_vm7 = vweird.f32 %v3456_v0  ;;  %1736 = vmatpush.msra.mxu0 %v3227_v62 }
 0xccd   :  { %3207 = vmatmul.msk.f32.vlgmr.msra.gmra.mxu2 %vm147_vm6, %v4094_v1  ;;  %vm1495_vm9 = vmor %vm1493_vm8, %vm1494_vm7 }
 0xcce   :  { %v1489_v3 = vmul.f32 %v3456_v0, %v1488_v2  ;;  %v3226_v2 = vld [vmem:[%s4596_s14 + $0x90] sm:$0xff] }
 0xccf   :  { %1737 = vmatpush.msra.mxu0 %v3226_v2 }
 0xcd0   :  { %v1490_v4 = vmul.f32 0.5, %v1489_v3  ;;  %v3233_v3 = vld [vmem:[%s4597_s15 + $0x90] sm:$0xff] }
 0xcd2   :  { %v1491_v5 = vsub.f32 1.5, %v1490_v4  ;;  %v3218_v4 = vld [vmem:[%s4595_s13 + $0x88] sm:$0xff] }
 0xcd4   :  { %v1492_v6 = vmul.f32 %v3456_v0, %v1491_v5  ;;  %v3225_v5 = vld [vmem:[%s4596_s14 + $0x88] sm:$0xff] }
 0xcd5   :  { %1738 = vmatpush.msra.mxu0 %v3225_v5 }
 0xcd6   :  { %v1496_v7 = vsel %vm1495_vm9, %v3456_v0, %v1492_v6  ;;  %v3234_v0 = vld [vmem:[%s4597_s15 + $0x98] sm:$0xff]  ;;  %v3232_v6 = vld [vmem:[%s4597_s15 + $0x88] sm:$0xff] }
 0xcd7   :  { %v1498_v8 = vmul.f32 %v1496_v7, %v1464_v41  ;;  %1769 = vmatpush.msrb.mxu2 %v3234_v0  ;;  %v3217_v7 = vld [vmem:[%s4595_s13 + $0x80] sm:$0xff] }
 0xcd9   :  { %v1503_v9 = vmul.f32 %v3380_v58, %v1498_v8  ;;  %1770 = vmatpush.msrb.mxu2 %v3233_v3  ;;  %v3224_v8 = vld [vmem:[%s4596_s14 + $0x80] sm:$0xff] }
 0xcda   :  { %1739 = vmatpush.msra.mxu0 %v3224_v8 }
 0xcdb   :  { %v1508_v10 = vadd.f32 %v3381_v61, %v1503_v9  ;;  %v3220_v61 = vld [vmem:[%s4595_s13 + $0x98] sm:$0xff]  ;;  %1771 = vmatpush.msrb.mxu2 %v3232_v6  ;;  %v3231_v9 = vld [vmem:[%s4597_s15 + $0x80] sm:$0xff] }
 0xcdc   :  { %1701 = vmatpush.msra.mxu3 %v3220_v61 }
 0xcdd   :  { %3208 = vmatmul.msk.f32.gmra.mxu2 %vm147_vm6, %v1508_v10 }
 0xcde   :  { %1772 = vmatpush.msrb.mxu2 %v3231_v9 }
 0xce0   :  { %1950 = vmatpush.msra.mxu2 %v3248_v16 }
 0xce2   :  { %1951 = vmatpush.msra.mxu2 %v3247_v17  ;;  %v3262_v17 = vld [vmem:[%s4597_s15 + $0xb8] sm:$0xff] }
 0xd50   :  { %v1540_v20 = vpop.f32.mrf.mxu2 }
 0xd51   :  { %v1541_v23 = vadd.f32 %v3382_v19, %v1540_v20  ;;  %v3246_v20 = vld [vmem:[%s4595_s13 + $0xa8] sm:$0xff] }
 0xd52   :  { %1952 = vmatpush.msra.mxu2 %v3246_v20  ;;  %v3259_v20 = vld [vmem:[%s4597_s15 + $0xa0] sm:$0xff] }
 0xd53   :  { %v1548_v24 = vmul.f32 0.044715, %v1541_v23  ;;  %v1546_v34 = vmul.f32 0.5, %v1541_v23 }
 0xd55   :  { %v1550_v25 = vmul.f32 %v1548_v24, %v1541_v23 }
 0xd57   :  { %v1552_v27 = vmul.f32 %v1550_v25, %v1541_v23  ;;  %v3245_v25 = vld [vmem:[%s4595_s13 + $0xa0] sm:$0xff] }
 0xd58   :  { %1953 = vmatpush.msra.mxu2 %v3245_v25 }
 0xd59   :  { %v1554_v28 = vadd.f32 %v1552_v27, %v1541_v23 }
 0xd5b   :  { %v1556_v29 = vmul.f32 0.7978846, %v1554_v28 }
 0xd5d   :  { %3457 = vtanh.f32 %v1556_v29  ;;  %v3384_v29 = vld [vmem:[%s4601_s20 + $0x4] ss:$0 sm:$0xff] }
 0xd60   :  { %v1543_v30 = vpop.f32.mrf.mxu2 }
 0xd61   :  { %v1544_v31 = vadd.f32 %v3382_v19, %v1543_v30 }
 0xd63   :  { %v3458_v32 = vpop.eup %3457  ;;  %v1549_v33 = vmul.f32 0.044715, %v1544_v31  ;;  %v1547_v41 = vmul.f32 0.5, %v1544_v31 }
 0xd64   :  { %v1560_v35 = vadd.f32 1.0, %v3458_v32 }
 0xd65   :  { %v1551_v36 = vmul.f32 %v1549_v33, %v1544_v31 }
 0xd66   :  { %v1562_v37 = vmul.f32 %v1560_v35, %v1546_v34 }
 0xd67   :  { %v1553_v38 = vmul.f32 %v1551_v36, %v1544_v31 }
 0xd68   :  { %3209 = vmatmul.msk.f32.vlgmr.msrb.gmra.mxu1 %vm1575_vm10, %v1562_v37 }
 0xd69   :  { %v1555_v39 = vadd.f32 %v1553_v38, %v1544_v31  ;;  %v3385_v31 = vld [vmem:[%s4601_s20 + $0x5] ss:$0 sm:$0xff] }
 0xd6b   :  { %v1557_v48 = vmul.f32 0.7978846, %v1555_v39 }
 0xd6d   :  { %3459 = vtanh.f32 %v1557_v48 }
 0xd73   :  { %v3460_v40 = vpop.eup %3459 }
 0xd74   :  { %v1561_v42 = vadd.f32 1.0, %v3460_v40 }
 0xd76   :  { %v1563_v43 = vmul.f32 %v1561_v42, %v1547_v41 }
 0xd78   :  { %3210 = vmatmul.msk.f32.gmra.mxu1 %vm1575_vm10, %v1563_v43 }
 0xde5   :  { %v1599_v44 = vpop.f32.mrf.mxu1 }
 0xde6   :  { %v1600_v45 = vadd.f32 %v3383_v53, %v1599_v44 }
 0xde8   :  { %v1605_v46 = vadd.f32 %v1600_v45, %v4094_v1  ;;  %v3219_v1 = vld [vmem:[%s4595_s13 + $0x90] sm:$0xff] }
 0xde9   :  { %1702 = vmatpush.msra.mxu3 %v3219_v1 }
 0xdea   :  { %v1607_v47 = vsel %vm147_vm6, %v1605_v46, 0.0 }
 0xdeb   :  { %1608 = vadd.xlane.f32.xlu0 %v1607_v47  ;;  %1703 = vmatpush.msra.mxu3 %v3218_v4  ;;  %v3388_v47 = vld [vmem:[%s4599_s18 + $0x4] ss:$0 sm:$0xff]  ;;  %v4253_v4 = vld [vmem:[%s4598_s17 + $0x5] ss:$0 sm:$0xff] }
 0xded   :  { %1704 = vmatpush.msra.mxu3 %v3217_v7 }
 0xdf5   :  { %v1602_v49 = vpop.f32.mrf.mxu1 }
 0xdf6   :  { %v1603_v50 = vadd.f32 %v3383_v53, %v1602_v49  ;;  %v3386_v53 = vld [vmem:[%s4598_s17 + $0x4] ss:$0 sm:$0xff] }
 0xdf8   :  { %v1606_v51 = vadd.f32 %v1603_v50, %v1508_v10 }
 0xdfa   :  { %v1610_v21 = vsel %vm147_vm6, %v1606_v51, 0.0 }
 0xdfb   :  { %1611 = vadd.xlane.f32.xlu1 %v1610_v21 }
 0xe5e   :  { %v1609_v22 = vpop.xlane.xlu0 %1608 }
 0xe5f   :  { %v1613_v52 = vmul.f32 %v1609_v22, %v3724_v63 }
 0xe61   :  { %v1615_v54 = vsub.f32 %v1605_v46, %v1613_v52  ;;  %v3387_v46 = vld [vmem:[%s4594_s16 + $0x4] ss:$0 sm:$0xff] }
 0xe63   :  { %v1617_v55 = vmul.f32 %v1615_v54, %v1615_v54 }
 0xe65   :  { %v1619_v26 = vsel %vm147_vm6, %v1617_v55, 0.0  ;;  %v3255_v55 = vld [vmem:[%s4596_s14 + $0xb8] sm:$0xff] }
 0xe66   :  { %1620 = vadd.xlane.f32.xlu2 %v1619_v26  ;;  %v3254_v26 = vld [vmem:[%s4596_s14 + $0xb0] sm:$0xff] }
 0xe6e   :  { %v1612_v56 = vpop.xlane.xlu1 %1611 }
 0xe6f   :  { %v1614_v57 = vmul.f32 %v1612_v56, %v3724_v63  ;;  %v3253_v56 = vld [vmem:[%s4596_s14 + $0xa8] sm:$0xff] }
 0xe71   :  { %v4137_v58 = vsub.f32 %v1606_v51, %v1614_v57 }
 0xe73   :  { %v1618_v59 = vmul.f32 %v4137_v58, %v4137_v58 }
 0xe75   :  { %v1622_v60 = vsel %vm147_vm6, %v1618_v59, 0.0 }
 0xe76   :  { %1623 = vadd.xlane.f32.xlu0 %v1622_v60  ;;  %v3252_v60 = vld [vmem:[%s4596_s14 + $0xa0] sm:$0xff] }
 0xed9   :  { %v1621_v10 = vpop.xlane.xlu2 %1620 }
 0xeda   :  { %v1625_v11 = vmul.f32 %v1621_v10, %v3724_v63 }
 0xedc   :  { %v1627_v12 = vadd.f32 1e-12, %v1625_v11 }
 0xede   :  { %3461 = vrsqrt.f32 %v1627_v12  ;;  %vm1635_vm12 = vweird.f32 %v1627_v12 }
 0xee4   :  { %v3462_v13 = vpop.eup %3461 }
 0xee5   :  { %v1630_v14 = vmul.f32 %v3462_v13, %v1627_v12  ;;  %vm1636_vm11 = vweird.f32 %v3462_v13 }
 0xee6   :  { %vm1637_vm13 = vmor %vm1635_vm12, %vm1636_vm11 }
 0xee7   :  { %v1631_v15 = vmul.f32 %v3462_v13, %v1630_v14 }
 0xee9   :  { %v1632_v18 = vmul.f32 0.5, %v1631_v15  ;;  %v1624_v19 = vpop.xlane.xlu0 %1623 }
 0xeea   :  { %v1626_v23 = vmul.f32 %v1624_v19, %v3724_v63  ;;  %v3260_v19 = vld [vmem:[%s4597_s15 + $0xa8] sm:$0xff] }
 0xeeb   :  { %v1633_v24 = vsub.f32 1.5, %v1632_v18  ;;  %v3261_v18 = vld [vmem:[%s4597_s15 + $0xb0] sm:$0xff] }
 0xeec   :  { %v1628_v27 = vadd.f32 1e-12, %v1626_v23 }
 0xeed   :  { %v1634_v28 = vmul.f32 %v3462_v13, %v1633_v24 }
 0xeee   :  { %3463 = vrsqrt.f32 %v1628_v27  ;;  %vm1645_vm15 = vweird.f32 %v1628_v27 }
 0xeef   :  { %v1638_v30 = vsel %vm1637_vm13, %v3462_v13, %v1634_v28 }
 0xef0   :  { %v1649_v32 = vmul.f32 %v1638_v30, %v1615_v54 }
 0xef2   :  { %v1654_v33 = vmul.f32 %v3384_v29, %v1649_v32 }
 0xef4   :  { %v3464_v34 = vpop.eup %3463  ;;  %v4198_v35 = vadd.f32 %v3385_v31, %v1654_v33 }
 0xef5   :  { %v1640_v36 = vmul.f32 %v3464_v34, %v1628_v27  ;;  %vm1646_vm14 = vweird.f32 %v3464_v34 }
 0xef6   :  { %3222 = vmatmul.msk.f32.vlgmr.msra.gmra.mxu3 %vm147_vm6, %v4198_v35  ;;  %3229 = vmatmul.msk.f32.vlgmr.msra.gmra.mxu0 %vm147_vm6, %v4198_v35  ;;  %vm1647_vm1 = vmor %vm1645_vm15, %vm1646_vm14 }
 0xef7   :  { %v1641_v37 = vmul.f32 %v3464_v34, %v1640_v36  ;;  %3236 = vmatmul.msk.f32.vlgmr.msrb.gmra.mxu2 %vm147_vm6, %v4198_v35 }
 0xef9   :  { %v1642_v38 = vmul.f32 0.5, %v1641_v37 }
 0xefb   :  { %v1643_v39 = vsub.f32 1.5, %v1642_v38 }
 0xefd   :  { %v1644_v48 = vmul.f32 %v3464_v34, %v1643_v39 }
 0xeff   :  { %v1648_v40 = vsel %vm1647_vm1, %v3464_v34, %v1644_v48 }
 0xf00   :  { %v1650_v41 = vmul.f32 %v1648_v40, %v4137_v58 }
 0xf02   :  { %v1655_v42 = vmul.f32 %v3384_v29, %v1650_v41 }
 0xf04   :  { %v4207_v43 = vadd.f32 %v3385_v31, %v1655_v42 }
 0xf06   :  { %3223 = vmatmul.msk.f32.gmra.mxu3 %vm147_vm6, %v4207_v43  ;;  %3230 = vmatmul.msk.f32.gmra.mxu0 %vm147_vm6, %v4207_v43 }
 0xf07   :  { %3237 = vmatmul.msk.f32.gmra.mxu2 %vm147_vm6, %v4207_v43 }
 0xf0f   :  { %3250 = vmatmul.msk.f32.vlgmr.msra.gmra.mxu2 %vm147_vm6, %v4198_v35 }
 0xf17   :  { %3251 = vmatmul.msk.f32.gmra.mxu2 %vm147_vm6, %v4207_v43 }
 0xf73   :  { %v1741_v44 = vpop.f32.mrf.mxu0 }
 0xf74   :  { %v1742_v45 = vadd.f32 %v3386_v53, %v1741_v44 }
 0xf76   :  { %3238 = vmatpush.xpose.msk.msrb.mxu3 %vm95_vm0, %v1742_v45 }
 0xf79   :  { %v1706_v49 = vpop.f32.mrf.mxu3 }
 0xf7a   :  { %v1707_v50 = vadd.f32 %v3387_v46, %v1706_v49  ;;  %v1774_v51 = vpop.f32.mrf.mxu2 }
 0xf7b   :  { %v1775_v21 = vadd.f32 %v3388_v47, %v1774_v51 }
 0xf7c   :  { %v1712_v22 = vmul.f32 0.35355338, %v1707_v50  ;;  %v3389_v50 = vld [vmem:[%s4594_s16 + $0x5] ss:$0 sm:$0xff] }
 0xf7d   :  { %1898 = vmatpush.msra.mxu3 %v1775_v21 }
 0xf7e   :  { %3239 = vmatmul.msk.f32.vlgmr.msrb.gmra.mxu3 %vm95_vm0, %v1712_v22 }
 0xf7f   :  { %2018 = vmatpush.msrb.mxu3 %v3262_v17  ;;  %v3278_v17 = vld [vmem:[%s4595_s13 + $0xc8] sm:$0xff] }
 0xf81   :  { %2019 = vmatpush.msrb.mxu3 %v3261_v18  ;;  %v3277_v18 = vld [vmem:[%s4595_s13 + $0xc0] sm:$0xff] }
 0xf83   :  { %v1744_v52 = vpop.f32.mrf.mxu0  ;;  %2020 = vmatpush.msrb.mxu3 %v3260_v19  ;;  %v3287_v19 = vld [vmem:[%s4596_s14 + $0xd8] sm:$0xff] }
 0xf84   :  { %v1745_v54 = vadd.f32 %v3386_v53, %v1744_v52 }
 0xf85   :  { %2021 = vmatpush.msrb.mxu3 %v3259_v20  ;;  %v3286_v20 = vld [vmem:[%s4596_s14 + $0xd0] sm:$0xff] }
 0xf86   :  { %3240 = vmatpush.xpose.msk.msra.mxu1 %vm95_vm0, %v1745_v54 }
 0xf89   :  { %v1709_v57 = vpop.f32.mrf.mxu3 }
 0xf8a   :  { %1985 = vmatpush.msrb.mxu1 %v3255_v55  ;;  %v1710_v58 = vadd.f32 %v3387_v46, %v1709_v57  ;;  %v1777_v59 = vpop.f32.mrf.mxu2 }
 0xf8b   :  { %v1778_v61 = vadd.f32 %v3388_v47, %v1777_v59  ;;  %v3391_v59 = vld [vmem:[%s4599_s18 + $0x5] ss:$0 sm:$0xff] }
 0xf8c   :  { %1986 = vmatpush.msrb.mxu1 %v3254_v26  ;;  %v1713_v62 = vmul.f32 0.35355338, %v1710_v58 }
 0xf8d   :  { %1921 = vmatpush.msrb.mxu0 %v1778_v61 }
 0xf8e   :  { %1987 = vmatpush.msrb.mxu1 %v3253_v56  ;;  %v3244_v56 = vld [vmem:[%s4600_s19 + $0x20] sm:$0xff] }
 0xf8f   :  { %3241 = vmatmul.msk.f32.vlgmr.msra.gmra.mxu1 %vm95_vm0, %v1713_v62 }
 0xf90   :  { %1988 = vmatpush.msrb.mxu1 %v3252_v60 }
 0xf92   :  { %v1955_v47 = vpop.f32.mrf.mxu2 }
 0xf93   :  { %v1956_v22 = vadd.f32 %v3389_v50, %v1955_v47 }
 0xf95   :  { %v1961_v52 = vmul.f32 0.35355338, %v1956_v22  ;;  %v3293_v22 = vld [vmem:[%s4597_s15 + $0xd0] sm:$0xff] }
 0xf97   :  { %3257 = vmatmul.msk.f32.vlgmr.msrb.gmra.mxu1 %vm147_vm6, %v4198_v35 }
 0xf9a   :  { %v1958_v54 = vpop.f32.mrf.mxu2 }
 0xf9b   :  { %v1959_v55 = vadd.f32 %v3389_v50, %v1958_v54  ;;  %v3291_v54 = vld [vmem:[%s4597_s15 + $0xc0] sm:$0xff] }
 0xf9d   :  { %v1962_v26 = vmul.f32 0.35355338, %v1959_v55  ;;  %v3317_v55 = vld [vmem:[%s4596_s14 + $0xf8] sm:$0xff] }
 0xf9f   :  { %3258 = vmatmul.msk.f32.gmra.mxu1 %vm147_vm6, %v4207_v43 }
0x1001   :  { %v1803_v0 = vpop.f32.mrf.mxu3 }
0x1002   :  { %v1832_v1 = vsel %vm95_vm0, %v1803_v0, -inf }
0x1003   :  { %1833 = vmax.xlane.f32.xlu0 %v1832_v1 }
0x100c   :  { %v1829_v2 = vpop.f32.mrf.mxu1 }
0x100d   :  { %v1835_v3 = vsel %vm95_vm0, %v1829_v2, -inf }
0x100e   :  { %1836 = vmax.xlane.f32.xlu1 %v1835_v3 }
0x1014   :  { %v1990_v5 = vpop.f32.mrf.mxu1 }
0x1015   :  { %v1991_v6 = vadd.f32 %v4253_v4, %v1990_v5 }
0x1017   :  { %3266 = vmatpush.xpose.msk.msra.mxu0 %vm95_vm0, %v1991_v6 }
0x101c   :  { %v1993_v45 = vpop.f32.mrf.mxu1 }
0x101d   :  { %v1994_v21 = vadd.f32 %v4253_v4, %v1993_v45 }
0x1076   :  { %v1834_v7 = vpop.xlane.xlu0 %1833 }
0x1077   :  { %v1838_v8 = vsub.f32 %v1803_v0, %v1834_v7 }
0x1079   :  { %v1840_v9 = vmul.f32 1.442695, %v1838_v8 }
0x107b   :  { %3465 = vpow2.f32 %v1840_v9 }
0x1081   :  { %v1837_v10 = vpop.xlane.xlu1 %1836  ;;  %v3466_v11 = vpop.eup %3465 }
0x1082   :  { %v1839_v12 = vsub.f32 %v1829_v2, %v1837_v10  ;;  %v1844_v13 = vsel %vm95_vm0, %v3466_v11, 0.0 }
0x1083   :  { %1845 = vadd.xlane.f32.xlu1 %v1844_v13 }
0x1084   :  { %v1842_v14 = vmul.f32 1.442695, %v1839_v12 }
0x1086   :  { %3467 = vpow2.f32 %v1842_v14 }
0x108c   :  { %v3468_v15 = vpop.eup %3467 }
0x108d   :  { %v1847_v16 = vsel %vm95_vm0, %v3468_v15, 0.0 }
0x108e   :  { %1848 = vadd.xlane.f32.xlu2 %v1847_v16  ;;  %v3279_v16 = vld [vmem:[%s4595_s13 + $0xd0] sm:$0xff] }
0x10f6   :  { %v1846_v23 = vpop.xlane.xlu1 %1845 }
0x10f7   :  { %3469 = vrcp.f32 %v1846_v23  ;;  %v1861_v29 = vand.u32 2147483648, %v1846_v23  ;;  %v1859_v31 = vand.u32 2147483647, %v1846_v23  ;;  %vm1855_vm3 = vweird.f32 %v1846_v23 }
0x10f9   :  { %v1862_v33 = vor.u32 1.1754944e-38, %v1861_v29  ;;  %vm1860_vm5 = vcmp.eq.f32.partialorder %v1859_v31, 8.507059e+37 }
0x10fd   :  { %v3470_v24 = vpop.eup %3469 }
0x10fe   :  { %v1851_v25 = vmul.f32 %v3470_v24, %v1846_v23  ;;  %vm1856_vm2 = vweird.f32 %v3470_v24  ;;  %v3285_v23 = vld [vmem:[%s4596_s14 + $0xc8] sm:$0xff] }
0x10ff   :  { %vm1857_vm4 = vmor %vm1855_vm3, %vm1856_vm2 }
0x1100   :  { %v1852_v27 = vsub.f32 1.0, %v1851_v25  ;;  %v3284_v25 = vld [vmem:[%s4596_s14 + $0xc0] sm:$0xff] }
0x1101   :  { %v1849_v28 = vpop.xlane.xlu2 %1848 }
0x1102   :  { %3471 = vrcp.f32 %v1849_v28  ;;  %v1853_v30 = vmul.f32 %v3470_v24, %v1852_v27  ;;  %v1876_v40 = vand.u32 2147483648, %v1849_v28  ;;  %v1874_v42 = vand.u32 2147483647, %v1849_v28 }
0x1103   :  { %vm1870_vm8 = vweird.f32 %v1849_v28 }
0x1104   :  { %v1854_v32 = vadd.f32 %v3470_v24, %v1853_v30  ;;  %v1877_v44 = vor.u32 1.1754944e-38, %v1876_v40  ;;  %vm1875_vm11 = vcmp.eq.f32.partialorder %v1874_v42, 8.507059e+37 }
0x1106   :  { %v1858_v34 = vsel %vm1857_vm4, %v3470_v24, %v1854_v32 }
0x1107   :  { %v1863_v37 = vsel %vm1860_vm5, %v1862_v33, %v1858_v34 }
0x1108   :  { %v3472_v36 = vpop.eup %3471  ;;  %v1864_v39 = vmul.f32 %v3466_v11, %v1863_v37 }
0x1109   :  { %v1866_v38 = vmul.f32 %v3472_v36, %v1849_v28  ;;  %vm1871_vm7 = vweird.f32 %v3472_v36 }
0x110a   :  { %3242 = vmatmul.msk.f32.vlgmr.msra.gmra.mxu3 %vm95_vm0, %v1864_v39  ;;  %vm1872_vm9 = vmor %vm1870_vm8, %vm1871_vm7 }
0x110b   :  { %v1867_v48 = vsub.f32 1.0, %v1866_v38 }
0x110d   :  { %v1868_v41 = vmul.f32 %v3472_v36, %v1867_v48 }
0x110f   :  { %v1869_v53 = vadd.f32 %v3472_v36, %v1868_v41 }
0x1111   :  { %v1873_v46 = vsel %vm1872_vm9, %v3472_v36, %v1869_v53 }
0x1112   :  { %v1878_v49 = vsel %vm1875_vm11, %v1877_v44, %v1873_v46  ;;  %3264 = vmatmul.msk.f32.vlgmr.msrb.gmra.mxu3 %vm147_vm6, %v4198_v35 }
0x1113   :  { %v1879_v51 = vmul.f32 %v3468_v15, %v1878_v49  ;;  %v3280_v15 = vld [vmem:[%s4595_s13 + $0xd8] sm:$0xff] }
0x1115   :  { %3243 = vmatmul.msk.f32.vlgmr.msrb.gmra.mxu0 %vm95_vm0, %v1879_v51  ;;  %v3272_v51 = vld [vmem:[%s4600_s19 + $0x28] sm:$0xff] }
0x1116   :  { %3268 = vmatpush.xpose.msk.msrb.mxu0 %vm95_vm0, %v1994_v21  ;;  %2198 = vmatpush.msra.mxu3 %v3272_v51  ;;  %v3294_v21 = vld [vmem:[%s4597_s15 + $0xd8] sm:$0xff] }
0x1118   :  { %2325 = vmatpush.msrb.mxu3 %v3294_v21 }
0x111a   :  { %3265 = vmatmul.msk.f32.gmra.mxu3 %vm147_vm6, %v4207_v43 }
0x111b   :  { %2326 = vmatpush.msrb.mxu3 %v3293_v22 }
0x111d   :  { %3267 = vmatmul.msk.f32.vlgmr.msra.gmra.mxu0 %vm95_vm0, %v1961_v52  ;;  %v3292_v52 = vld [vmem:[%s4597_s15 + $0xc8] sm:$0xff] }
0x111e   :  { %2227 = vmatpush.msra.mxu0 %v3244_v56  ;;  %2327 = vmatpush.msrb.mxu3 %v3292_v52  ;;  %v3316_v56 = vld [vmem:[%s4596_s14 + $0xf0] sm:$0xff] }
0x1120   :  { %2328 = vmatpush.msrb.mxu3 %v3291_v54 }
0x1125   :  { %3269 = vmatmul.msk.f32.vlgmr.msrb.gmra.mxu0 %vm95_vm0, %v1962_v26 }
0x118d   :  { %v1900_v57 = vpop.f32.mrf.mxu3 }
0x118e   :  { %3275 = vmatmul.msk.f32.vlgmr.msra.gmra.mxu0 %vm95_vm0, %v1900_v57 }
0x1192   :  { %v1923_v58 = vpop.f32.mrf.mxu0 }
0x1195   :  { %v2023_v60 = vpop.f32.mrf.mxu3 }
0x1196   :  { %v2024_v61 = vadd.f32 %v3391_v59, %v2023_v60  ;;  %3276 = vmatmul.msk.f32.gmra.mxu0 %vm95_vm0, %v1923_v58  ;;  %v3315_v58 = vld [vmem:[%s4596_s14 + $0xe8] sm:$0xff]  ;;  %v3392_v60 = vld [vmem:[%s4594_s16 + $0x6] ss:$0 sm:$0xff] }
0x1198   :  { %2147 = vmatpush.msrb.mxu2 %v2024_v61  ;;  %v3393_v61 = vld [vmem:[%s4598_s17 + $0x6] ss:$0 sm:$0xff] }
0x119a   :  { %v2052_v62 = vpop.f32.mrf.mxu0  ;;  %2257 = vmatpush.msra.mxu2 %v3280_v15 }
0x119b   :  { %v2081_v0 = vsel %vm95_vm0, %v2052_v62, -inf }
0x119c   :  { %2082 = vmax.xlane.f32.xlu2 %v2081_v0  ;;  %2258 = vmatpush.msra.mxu2 %v3279_v16 }
0x119d   :  { %v2026_v1 = vpop.f32.mrf.mxu3 }
0x119e   :  { %v2027_v2 = vadd.f32 %v3391_v59, %v2026_v1  ;;  %2259 = vmatpush.msra.mxu2 %v3278_v17  ;;  %v3314_v59 = vld [vmem:[%s4596_s14 + $0xe0] sm:$0xff] }
0x119f   :  { %v3394_v17 = vld [vmem:[%s4599_s18 + $0x6] ss:$0 sm:$0xff] }
0x11a0   :  { %2170 = vmatpush.msra.mxu1 %v2027_v2  ;;  %2260 = vmatpush.msra.mxu2 %v3277_v18 }
0x11a2   :  { %v2078_v3 = vpop.f32.mrf.mxu0  ;;  %2292 = vmatpush.msrb.mxu1 %v3287_v19 }
0x11a3   :  { %v2084_v4 = vsel %vm95_vm0, %v2078_v3, -inf }
0x11a4   :  { %2085 = vmax.xlane.f32.xlu0 %v2084_v4  ;;  %2293 = vmatpush.msrb.mxu1 %v3286_v20 }
0x11a6   :  { %2294 = vmatpush.msrb.mxu1 %v3285_v23 }
0x11a8   :  { %2295 = vmatpush.msrb.mxu1 %v3284_v25 }
0x120f   :  { %v2083_v5 = vpop.xlane.xlu2 %2082 }
0x1210   :  { %v2087_v6 = vsub.f32 %v2052_v62, %v2083_v5 }
0x1212   :  { %v2089_v7 = vmul.f32 1.442695, %v2087_v6 }
0x1214   :  { %3473 = vpow2.f32 %v2089_v7 }
0x1217   :  { %v2086_v8 = vpop.xlane.xlu0 %2085 }
0x1218   :  { %v2088_v9 = vsub.f32 %v2078_v3, %v2086_v8 }
0x121a   :  { %v3474_v10 = vpop.eup %3473  ;;  %v2091_v11 = vmul.f32 1.442695, %v2088_v9  ;;  %v4377_v9 = vpop.f32.mrf.mxu0 }
0x121b   :  { %v2093_v12 = vsel %vm95_vm0, %v3474_v10, 0.0 }
0x121c   :  { %3475 = vpow2.f32 %v2091_v11  ;;  %2094 = vadd.xlane.f32.xlu1 %v2093_v12  ;;  %v3304_v12 = vld [vmem:[%s4600_s19 + $0x30] sm:$0xff] }
0x1222   :  { %v3476_v13 = vpop.eup %3475  ;;  %v2232_v11 = vpop.f32.mrf.mxu0 }
0x1223   :  { %v2096_v14 = vsel %vm95_vm0, %v3476_v13, 0.0 }
0x1224   :  { %2097 = vadd.xlane.f32.xlu2 %v2096_v14 }
0x128f   :  { %v2095_v24 = vpop.xlane.xlu1 %2094 }
0x1290   :  { %3477 = vrcp.f32 %v2095_v24  ;;  %v2110_v31 = vand.u32 2147483648, %v2095_v24  ;;  %v2108_v33 = vand.u32 2147483647, %v2095_v24  ;;  %vm2104_vm13 = vweird.f32 %v2095_v24 }
0x1292   :  { %v2111_v37 = vor.u32 1.1754944e-38, %v2110_v31  ;;  %vm2109_vm15 = vcmp.eq.f32.partialorder %v2108_v33, 8.507059e+37 }
0x1296   :  { %v3478_v27 = vpop.eup %3477 }
0x1297   :  { %v2100_v28 = vmul.f32 %v3478_v27, %v2095_v24  ;;  %v2098_v29 = vpop.xlane.xlu2 %2097  ;;  %vm2105_vm12 = vweird.f32 %v3478_v27 }
0x1298   :  { %3479 = vrcp.f32 %v2098_v29  ;;  %vm2106_vm14 = vmor %vm2104_vm13, %vm2105_vm12  ;;  %v2125_v42 = vand.u32 2147483648, %v2098_v29  ;;  %v2123_v44 = vand.u32 2147483647, %v2098_v29  ;;  %vm2119_vm2 = vweird.f32 %v2098_v29 }
0x1299   :  { %v2101_v30 = vsub.f32 1.0, %v2100_v28 }
0x129a   :  { %v2126_v46 = vor.u32 1.1754944e-38, %v2125_v42  ;;  %vm2124_vm4 = vcmp.eq.f32.partialorder %v2123_v44, 8.507059e+37  ;;  %v3308_v42 = vld [vmem:[%s4595_s13 + $0xe8] sm:$0xff] }
0x129b   :  { %v2102_v32 = vmul.f32 %v3478_v27, %v2101_v30 }
0x129d   :  { %v2103_v34 = vadd.f32 %v3478_v27, %v2102_v32 }
0x129e   :  { %v3480_v36 = vpop.eup %3479 }
0x129f   :  { %v2107_v38 = vsel %vm2106_vm14, %v3478_v27, %v2103_v34  ;;  %v2115_v39 = vmul.f32 %v3480_v36, %v2098_v29  ;;  %vm2120_vm1 = vweird.f32 %v3480_v36  ;;  %v3395_v27 = vld [vmem:[%s4598_s17 + $0x7] ss:$0 sm:$0xff] }
0x12a0   :  { %v2112_v48 = vsel %vm2109_vm15, %v2111_v37, %v2107_v38  ;;  %vm2121_vm3 = vmor %vm2119_vm2, %vm2120_vm1 }
0x12a1   :  { %v2116_v40 = vsub.f32 1.0, %v2115_v39  ;;  %v2113_v41 = vmul.f32 %v3474_v10, %v2112_v48 }
0x12a3   :  { %v2117_v53 = vmul.f32 %v3480_v36, %v2116_v40  ;;  %3270 = vmatmul.msk.f32.vlgmr.msrb.gmra.mxu2 %vm95_vm0, %v2113_v41  ;;  %v3310_v40 = vld [vmem:[%s4595_s13 + $0xf8] sm:$0xff]  ;;  %v3309_v41 = vld [vmem:[%s4595_s13 + $0xf0] sm:$0xff] }
0x12a5   :  { %v2118_v45 = vadd.f32 %v3480_v36, %v2117_v53  ;;  %v3307_v53 = vld [vmem:[%s4595_s13 + $0xe0] sm:$0xff] }
0x12a7   :  { %v2122_v47 = vsel %vm2121_vm3, %v3480_v36, %v2118_v45  ;;  %v3324_v45 = vld [vmem:[%s4597_s15 + $0xf8] sm:$0xff] }
0x12a8   :  { %v2127_v49 = vsel %vm2124_vm4, %v2126_v46, %v2122_v47  ;;  %v3323_v46 = vld [vmem:[%s4597_s15 + $0xf0] sm:$0xff]  ;;  %v3322_v47 = vld [vmem:[%s4597_s15 + $0xe8] sm:$0xff] }
0x12a9   :  { %v2128_v50 = vmul.f32 %v3476_v13, %v2127_v49  ;;  %v3321_v49 = vld [vmem:[%s4597_s15 + $0xe0] sm:$0xff] }
0x12ab   :  { %3271 = vmatmul.msk.f32.vlgmr.msra.gmra.mxu1 %vm95_vm0, %v2128_v50  ;;  %3282 = vmatmul.msk.f32.vlgmr.msra.gmra.mxu2 %vm147_vm6, %v4198_v35 }
0x12b3   :  { %3283 = vmatmul.msk.f32.gmra.mxu2 %vm147_vm6, %v4207_v43  ;;  %3289 = vmatmul.msk.f32.vlgmr.msrb.gmra.mxu1 %vm147_vm6, %v4198_v35 }
0x12bb   :  { %3290 = vmatmul.msk.f32.gmra.mxu1 %vm147_vm6, %v4207_v43 }
0x1326   :  { %v2149_v26 = vpop.f32.mrf.mxu2 }
0x1327   :  { %3273 = vmatmul.msk.f32.vlgmr.msra.gmra.mxu3 %vm95_vm0, %v2149_v26 }
0x1328   :  { %v2172_v57 = vpop.f32.mrf.mxu1  ;;  %2572 = vmatpush.msra.mxu3 %v3317_v55 }
0x132a   :  { %2573 = vmatpush.msra.mxu3 %v3316_v56 }
0x132c   :  { %2574 = vmatpush.msra.mxu3 %v3315_v58 }
0x132e   :  { %v2262_v62 = vpop.f32.mrf.mxu2  ;;  %2575 = vmatpush.msra.mxu3 %v3314_v59 }
0x132f   :  { %3274 = vmatmul.msk.f32.gmra.mxu3 %vm95_vm0, %v2172_v57  ;;  %v2263_v0 = vadd.f32 %v3392_v60, %v2262_v62 }
0x1330   :  { %v2297_v1 = vpop.f32.mrf.mxu1 }
0x1331   :  { %v2298_v2 = vadd.f32 %v3393_v61, %v2297_v1  ;;  %v2268_v3 = vmul.f32 0.35355338, %v2263_v0 }
0x1333   :  { %3298 = vmatpush.xpose.msk.msrb.mxu0 %vm95_vm0, %v2298_v2 }
0x1336   :  { %v2265_v4 = vpop.f32.mrf.mxu2  ;;  %3299 = vmatmul.msk.f32.vlgmr.msrb.gmra.mxu0 %vm95_vm0, %v2268_v3 }
0x1337   :  { %3296 = vmatmul.msk.f32.vlgmr.msrb.gmra.mxu3 %vm147_vm6, %v4198_v35  ;;  %v2266_v5 = vadd.f32 %v3392_v60, %v2265_v4 }
0x1338   :  { %v2300_v6 = vpop.f32.mrf.mxu1 }
0x1339   :  { %v2301_v7 = vadd.f32 %v3393_v61, %v2300_v6  ;;  %v2269_v8 = vmul.f32 0.35355338, %v2266_v5 }
0x133b   :  { %3300 = vmatpush.xpose.msk.msrb.mxu2 %vm95_vm0, %v2301_v7 }
0x133e   :  { %3301 = vmatmul.msk.f32.vlgmr.msrb.gmra.mxu2 %vm95_vm0, %v2269_v8 }
0x133f   :  { %3297 = vmatmul.msk.f32.gmra.mxu3 %vm147_vm6, %v4207_v43  ;;  %2505 = vmatpush.msra.mxu2 %v3304_v12 }
0x1347   :  { %3319 = vmatmul.msk.f32.vlgmr.msra.gmra.mxu3 %vm147_vm6, %v4198_v35 }
0x134f   :  { %3320 = vmatmul.msk.f32.gmra.mxu3 %vm147_vm6, %v4207_v43 }
0x13aa   :  { %v4379_v10 = vpop.f32.mrf.mxu3 }
0x13b2   :  { %v2203_v13 = vpop.f32.mrf.mxu3 }
0x13b3   :  { %v4384_v14 = vadd.f32 %v2232_v11, %v2203_v13  ;;  %v2359_v15 = vpop.f32.mrf.mxu0 }
0x13b4   :  { %v2388_v16 = vsel %vm95_vm0, %v2359_v15, -inf }
0x13b5   :  { %2389 = vmax.xlane.f32.xlu0 %v2388_v16 }
0x13ba   :  { %v2330_v18 = vpop.f32.mrf.mxu3 }
0x13bb   :  { %v2331_v19 = vadd.f32 %v3394_v17, %v2330_v18 }
0x13bd   :  { %2454 = vmatpush.msra.mxu1 %v2331_v19 }
0x13bf   :  { %2537 = vmatpush.msrb.mxu1 %v3310_v40 }
0x13c1   :  { %v2385_v20 = vpop.f32.mrf.mxu2  ;;  %2538 = vmatpush.msrb.mxu1 %v3309_v41 }
0x13c2   :  { %v2333_v23 = vpop.f32.mrf.mxu3  ;;  %v2391_v24 = vsel %vm95_vm0, %v2385_v20, -inf }
0x13c3   :  { %v2334_v25 = vadd.f32 %v3394_v17, %v2333_v23  ;;  %2392 = vmax.xlane.f32.xlu1 %v2391_v24  ;;  %2539 = vmatpush.msrb.mxu1 %v3308_v42  ;;  %v3397_v23 = vld [vmem:[%s4599_s18 + $0x7] ss:$0 sm:$0xff] }
0x13c5   :  { %2477 = vmatpush.msra.mxu0 %v2334_v25  ;;  %2540 = vmatpush.msrb.mxu1 %v3307_v53 }
0x13c7   :  { %2605 = vmatpush.msrb.mxu0 %v3324_v45 }
0x13c9   :  { %2606 = vmatpush.msrb.mxu0 %v3323_v46 }
0x13ca   :  { %v2577_v28 = vpop.f32.mrf.mxu3 }
0x13cb   :  { %v2578_v29 = vadd.f32 %v3395_v27, %v2577_v28  ;;  %2607 = vmatpush.msrb.mxu0 %v3322_v47 }
0x13cd   :  { %3328 = vmatpush.xpose.msk.msrb.mxu2 %vm95_vm0, %v2578_v29  ;;  %2608 = vmatpush.msrb.mxu0 %v3321_v49 }
0x13d2   :  { %v2580_v57 = vpop.f32.mrf.mxu3 }
0x13d3   :  { %v2581_v61 = vadd.f32 %v3395_v27, %v2580_v57 }
0x1428   :  { %v2390_v30 = vpop.xlane.xlu0 %2389 }
0x1429   :  { %v2394_v31 = vsub.f32 %v2359_v15, %v2390_v30  ;;  %v3396_v15 = vld [vmem:[%s4594_s16 + $0x7] ss:$0 sm:$0xff]  ;;  %v2230_v30 = vadd.f32 %v4377_v9, %v4379_v10 }
0x142b   :  { %v2396_v32 = vmul.f32 1.442695, %v2394_v31 }
0x142d   :  { %3481 = vpow2.f32 %v2396_v32 }
0x1433   :  { %v3482_v33 = vpop.eup %3481 }
0x1434   :  { %v2400_v34 = vsel %vm95_vm0, %v3482_v33, 0.0 }
0x1435   :  { %2401 = vadd.xlane.f32.xlu2 %v2400_v34 }
0x1436   :  { %v2393_v36 = vpop.xlane.xlu1 %2392 }
0x1437   :  { %v2395_v37 = vsub.f32 %v2385_v20, %v2393_v36 }
0x1439   :  { %v2398_v38 = vmul.f32 1.442695, %v2395_v37 }
0x143b   :  { %3483 = vpow2.f32 %v2398_v38 }
0x1441   :  { %v3484_v39 = vpop.eup %3483 }
0x1442   :  { %v2403_v48 = vsel %vm95_vm0, %v3484_v39, 0.0 }
0x1443   :  { %2404 = vadd.xlane.f32.xlu0 %v2403_v48 }
0x14a8   :  { %v2402_v44 = vpop.xlane.xlu2 %2401 }
0x14a9   :  { %3485 = vrcp.f32 %v2402_v44  ;;  %v2417_v22 = vand.u32 2147483648, %v2402_v44  ;;  %v2415_v54 = vand.u32 2147483647, %v2402_v44  ;;  %vm2411_vm7 = vweird.f32 %v2402_v44 }
0x14ab   :  { %v2418_v56 = vor.u32 1.1754944e-38, %v2417_v22  ;;  %vm2416_vm9 = vcmp.eq.f32.partialorder %v2415_v54, 8.507059e+37 }
0x14af   :  { %v3486_v50 = vpop.eup %3485 }
0x14b0   :  { %v2407_v51 = vmul.f32 %v3486_v50, %v2402_v44  ;;  %vm2412_vm5 = vweird.f32 %v3486_v50 }
0x14b1   :  { %vm2413_vm8 = vmor %vm2411_vm7, %vm2412_vm5 }
0x14b2   :  { %v2408_v21 = vsub.f32 1.0, %v2407_v51 }
0x14b4   :  { %v2409_v52 = vmul.f32 %v3486_v50, %v2408_v21 }
0x14b6   :  { %v2410_v55 = vadd.f32 %v3486_v50, %v2409_v52  ;;  %v2405_v26 = vpop.xlane.xlu0 %2404 }
0x14b7   :  { %3487 = vrcp.f32 %v2405_v26  ;;  %v2432_v2 = vand.u32 2147483648, %v2405_v26  ;;  %v2430_v4 = vand.u32 2147483647, %v2405_v26  ;;  %vm2426_vm12 = vweird.f32 %v2405_v26 }
0x14b8   :  { %v2414_v58 = vsel %vm2413_vm8, %v3486_v50, %v2410_v55 }
0x14b9   :  { %v2419_v59 = vsel %vm2416_vm9, %v2418_v56, %v2414_v58  ;;  %v2433_v6 = vor.u32 1.1754944e-38, %v2432_v2  ;;  %vm2431_vm14 = vcmp.eq.f32.partialorder %v2430_v4, 8.507059e+37 }
0x14ba   :  { %v2420_v60 = vmul.f32 %v3482_v33, %v2419_v59 }
0x14bc   :  { %3302 = vmatmul.msk.f32.vlgmr.msra.gmra.mxu1 %vm95_vm0, %v2420_v60 }
0x14bd   :  { %v3488_v62 = vpop.eup %3487  ;;  %3330 = vmatpush.xpose.msk.msra.mxu1 %vm95_vm0, %v2581_v61 }
0x14be   :  { %v2422_v0 = vmul.f32 %v3488_v62, %v2405_v26  ;;  %vm2427_vm11 = vweird.f32 %v3488_v62 }
0x14bf   :  { %vm2428_vm13 = vmor %vm2426_vm12, %vm2427_vm11 }
0x14c0   :  { %v2423_v1 = vsub.f32 1.0, %v2422_v0 }
0x14c2   :  { %v2424_v3 = vmul.f32 %v3488_v62, %v2423_v1 }
0x14c4   :  { %v2425_v5 = vadd.f32 %v3488_v62, %v2424_v3  ;;  %3312 = vmatmul.msk.f32.vlgmr.msrb.gmra.mxu1 %vm147_vm6, %v4198_v35 }
0x14c6   :  { %v2429_v7 = vsel %vm2428_vm13, %v3488_v62, %v2425_v5 }
0x14c7   :  { %v2434_v8 = vsel %vm2431_vm14, %v2433_v6, %v2429_v7  ;;  %v3334_v6 = vld [vmem:[%s4600_s19 + $0x38] sm:$0xff] }
0x14c8   :  { %v2435_v11 = vmul.f32 %v3484_v39, %v2434_v8 }
0x14ca   :  { %3303 = vmatmul.msk.f32.vlgmr.msra.gmra.mxu0 %vm95_vm0, %v2435_v11  ;;  %v3398_v11 = vld [vmem:[%s4601_s20 + $0x6] ss:$0 sm:$0xff] }
0x14cc   :  { %3313 = vmatmul.msk.f32.gmra.mxu1 %vm147_vm6, %v4207_v43 }
0x14d2   :  { %3326 = vmatmul.msk.f32.vlgmr.msrb.gmra.mxu0 %vm147_vm6, %v4198_v35 }
0x14da   :  { %3327 = vmatmul.msk.f32.gmra.mxu0 %vm147_vm6, %v4207_v43 }
0x1539   :  { %v2456_v12 = vpop.f32.mrf.mxu1 }
0x153a   :  { %3305 = vmatmul.msk.f32.vlgmr.msra.gmra.mxu2 %vm95_vm0, %v2456_v12 }
0x153b   :  { %2785 = vmatpush.msra.mxu2 %v3334_v6  ;;  %v3344_v6 = vld [vmem:[%s4604_s23 + $0x40] sm:$0xff] }
0x1541   :  { %v2542_v13 = vpop.f32.mrf.mxu1 }
0x1542   :  { %v2543_v18 = vadd.f32 %v3396_v15, %v2542_v13 }
0x1544   :  { %v2548_v24 = vmul.f32 0.35355338, %v2543_v18 }
0x1547   :  { %v2479_v16 = vpop.f32.mrf.mxu0 }
0x1548   :  { %3306 = vmatmul.msk.f32.gmra.mxu2 %vm95_vm0, %v2479_v16 }
0x1549   :  { %v2545_v17 = vpop.f32.mrf.mxu1 }
0x154a   :  { %v2546_v19 = vadd.f32 %v3396_v15, %v2545_v17 }
0x154c   :  { %v2549_v20 = vmul.f32 0.35355338, %v2546_v19 }
0x154e   :  { %3331 = vmatmul.msk.f32.vlgmr.msra.gmra.mxu1 %vm95_vm0, %v2549_v20 }
0x154f   :  { %v2610_v25 = vpop.f32.mrf.mxu0 }
0x1550   :  { %v2611_v27 = vadd.f32 %v3397_v23, %v2610_v25  ;;  %3329 = vmatmul.msk.f32.vlgmr.msrb.gmra.mxu2 %vm95_vm0, %v2548_v24 }
0x1552   :  { %2734 = vmatpush.msrb.mxu3 %v2611_v27 }
0x1557   :  { %v2613_v28 = vpop.f32.mrf.mxu0 }
0x1558   :  { %v2614_v29 = vadd.f32 %v3397_v23, %v2613_v28 }
0x155a   :  { %2757 = vmatpush.msra.mxu0 %v2614_v29 }
0x15bd   :  { %v2507_v31 = vpop.f32.mrf.mxu2 }
0x15be   :  { %v4444_v32 = vadd.f32 %v2507_v31, %v2230_v30 }
0x15cb   :  { %v2510_v33 = vpop.f32.mrf.mxu2  ;;  %v2665_v34 = vpop.f32.mrf.mxu1 }
0x15cc   :  { %v4447_v36 = vadd.f32 %v2510_v33, %v4384_v14  ;;  %v2671_v37 = vsel %vm95_vm0, %v2665_v34, -inf }
0x15cd   :  { %2672 = vmax.xlane.f32.xlu2 %v2671_v37  ;;  %v3338_v37 = vld [vmem:[%s4603_s21 + $0x28] sm:$0xff] }
0x15d3   :  { %v2639_v38 = vpop.f32.mrf.mxu2 }
0x15d4   :  { %v2668_v39 = vsel %vm95_vm0, %v2639_v38, -inf }
0x15d5   :  { %2669 = vmax.xlane.f32.xlu1 %v2668_v39 }
0x1640   :  { %v2673_v48 = vpop.xlane.xlu2 %2672 }
0x1641   :  { %v2675_v40 = vsub.f32 %v2665_v34, %v2673_v48 }
0x1643   :  { %v2678_v41 = vmul.f32 1.442695, %v2675_v40 }
0x1645   :  { %3489 = vpow2.f32 %v2678_v41 }
0x1648   :  { %v2670_v9 = vpop.xlane.xlu1 %2669 }
0x1649   :  { %v2674_v10 = vsub.f32 %v2639_v38, %v2670_v9  ;;  %v3337_v38 = vld [vmem:[%s4603_s21 + $0x20] sm:$0xff] }
0x164b   :  { %v3490_v42 = vpop.eup %3489  ;;  %v2676_v53 = vmul.f32 1.442695, %v2674_v10 }
0x164c   :  { %v2683_v44 = vsel %vm95_vm0, %v3490_v42, 0.0 }
0x164d   :  { %3491 = vpow2.f32 %v2676_v53  ;;  %2684 = vadd.xlane.f32.xlu1 %v2683_v44 }
0x1653   :  { %v3492_v14 = vpop.eup %3491 }
0x1654   :  { %v2680_v45 = vsel %vm95_vm0, %v3492_v14, 0.0 }
0x1655   :  { %2681 = vadd.xlane.f32.xlu0 %v2680_v45 }
0x16c0   :  { %v2685_v46 = vpop.xlane.xlu1 %2684 }
0x16c1   :  { %3493 = vrcp.f32 %v2685_v46  ;;  %v2712_v21 = vand.u32 2147483648, %v2685_v46  ;;  %v2710_v52 = vand.u32 2147483647, %v2685_v46  ;;  %vm2706_vm1 = vweird.f32 %v2685_v46 }
0x16c3   :  { %v2713_v26 = vor.u32 1.1754944e-38, %v2712_v21  ;;  %vm2711_vm3 = vcmp.eq.f32.partialorder %v2710_v52, 8.507059e+37 }
0x16c7   :  { %v3494_v47 = vpop.eup %3493 }
0x16c8   :  { %v2702_v49 = vmul.f32 %v3494_v47, %v2685_v46  ;;  %v2682_v50 = vpop.xlane.xlu0 %2681  ;;  %vm2707_vm15 = vweird.f32 %v3494_v47 }
0x16c9   :  { %3495 = vrcp.f32 %v2682_v50  ;;  %vm2708_vm2 = vmor %vm2706_vm1, %vm2707_vm15  ;;  %v2697_v61 = vand.u32 2147483648, %v2682_v50  ;;  %v2695_v0 = vand.u32 2147483647, %v2682_v50  ;;  %vm2691_vm5 = vweird.f32 %v2682_v50 }
0x16ca   :  { %v2703_v51 = vsub.f32 1.0, %v2702_v49 }
0x16cb   :  { %v2698_v2 = vor.u32 1.1754944e-38, %v2697_v61  ;;  %vm2696_vm8 = vcmp.eq.f32.partialorder %v2695_v0, 8.507059e+37  ;;  %v3350_v0 = vld [vmem:[%s4604_s23 + $0x70] sm:$0xff] }
0x16cc   :  { %v2704_v22 = vmul.f32 %v3494_v47, %v2703_v51 }
0x16ce   :  { %v2705_v54 = vadd.f32 %v3494_v47, %v2704_v22  ;;  %v3400_v22 = vld [vmem:[%s4601_s20 + $0x8] ss:$0 sm:$0xff] }
0x16cf   :  { %v3496_v55 = vpop.eup %3495 }
0x16d0   :  { %v2709_v56 = vsel %vm2708_vm2, %v3494_v47, %v2705_v54  ;;  %v2687_v57 = vmul.f32 %v3496_v55, %v2682_v50  ;;  %vm2692_vm4 = vweird.f32 %v3496_v55  ;;  %v3399_v50 = vld [vmem:[%s4601_s20 + $0x7] ss:$0 sm:$0xff] }
0x16d1   :  { %v2714_v58 = vsel %vm2711_vm3, %v2713_v26, %v2709_v56  ;;  %vm2693_vm7 = vmor %vm2691_vm5, %vm2692_vm4 }
0x16d2   :  { %v2715_v59 = vmul.f32 %v3490_v42, %v2714_v58  ;;  %v2688_v60 = vsub.f32 1.0, %v2687_v57 }
0x16d4   :  { %v2689_v62 = vmul.f32 %v3496_v55, %v2688_v60  ;;  %3333 = vmatmul.msk.f32.vlgmr.msra.gmra.mxu0 %vm95_vm0, %v2715_v59 }
0x16d6   :  { %v2690_v1 = vadd.f32 %v3496_v55, %v2689_v62  ;;  %v3351_v62 = vld [vmem:[%s4604_s23 + $0x78] sm:$0xff] }
0x16d7   :  { %2939 = vmatpush.msra.mxu3 %v3351_v62 }
0x16d8   :  { %v2694_v3 = vsel %vm2693_vm7, %v3496_v55, %v2690_v1  ;;  %v3349_v1 = vld [vmem:[%s4604_s23 + $0x68] sm:$0xff] }
0x16d9   :  { %v2699_v4 = vsel %vm2696_vm8, %v2698_v2, %v2694_v3  ;;  %2940 = vmatpush.msra.mxu3 %v3350_v0  ;;  %v3348_v2 = vld [vmem:[%s4604_s23 + $0x60] sm:$0xff]  ;;  %v3347_v3 = vld [vmem:[%s4604_s23 + $0x58] sm:$0xff] }
0x16da   :  { %v2700_v5 = vmul.f32 %v3492_v14, %v2699_v4  ;;  %v3346_v4 = vld [vmem:[%s4604_s23 + $0x50] sm:$0xff] }
0x16db   :  { %2941 = vmatpush.msra.mxu3 %v3349_v1 }
0x16dc   :  { %3332 = vmatmul.msk.f32.vlgmr.msrb.gmra.mxu3 %vm95_vm0, %v2700_v5  ;;  %v3345_v5 = vld [vmem:[%s4604_s23 + $0x48] sm:$0xff] }
0x16dd   :  { %2942 = vmatpush.msra.mxu3 %v3348_v2 }
0x16df   :  { %2943 = vmatpush.msra.mxu3 %v3347_v3 }
0x16e1   :  { %2944 = vmatpush.msra.mxu3 %v3346_v4  ;;  %v3403_v4 = vld [vmem:[%s4601_s20 + $0xa] ss:$0 sm:$0xff] }
0x16e3   :  { %2945 = vmatpush.msra.mxu3 %v3345_v5 }
0x16e5   :  { %2946 = vmatpush.msra.mxu3 %v3344_v6 }
0x1751   :  { %v2759_v8 = vpop.f32.mrf.mxu0 }
0x175f   :  { %v2736_v7 = vpop.f32.mrf.mxu3 }
0x1760   :  { %3335 = vmatmul.msk.f32.vlgmr.msra.gmra.mxu2 %vm95_vm0, %v2736_v7  ;;  %v3401_v7 = vld [vmem:[%s4602_s22 + $0x1] ss:$0 sm:$0xff] }
0x1768   :  { %3336 = vmatmul.msk.f32.gmra.mxu2 %vm95_vm0, %v2759_v8 }
0x17e3   :  { %v2787_v12 = vpop.f32.mrf.mxu2 }
0x17e4   :  { %v2793_v13 = vadd.f32 %v2787_v12, %v4444_v32 }
0x17e6   :  { %v2798_v15 = vadd.f32 %v3398_v11, %v2793_v13 }
0x17e8   :  { %v2800_v16 = vadd.f32 %v2798_v15, %v4198_v35 }
0x17ea   :  { %v2802_v17 = vsel %vm147_vm6, %v2800_v16, 0.0 }
0x17eb   :  { %2803 = vadd.xlane.f32.xlu2 %v2802_v17  ;;  %v2790_v18 = vpop.f32.mrf.mxu2 }
0x17ec   :  { %v2794_v19 = vadd.f32 %v2790_v18, %v4447_v36  ;;  %v3339_v36 = vld [vmem:[%s4603_s21 + $0x30] sm:$0xff] }
0x17ee   :  { %v2799_v20 = vadd.f32 %v3398_v11, %v2794_v19 }
0x17f0   :  { %v2801_v23 = vadd.f32 %v2799_v20, %v4207_v43  ;;  %v3340_v43 = vld [vmem:[%s4603_s21 + $0x38] sm:$0xff] }
0x17f1   :  { %2884 = vmatpush.msrb.mxu1 %v3340_v43  ;;  %v3402_v43 = vld [vmem:[%s4601_s20 + $0x9] ss:$0 sm:$0xff] }
0x17f2   :  { %v2805_v24 = vsel %vm147_vm6, %v2801_v23, 0.0 }
0x17f3   :  { %2806 = vadd.xlane.f32.xlu0 %v2805_v24  ;;  %2885 = vmatpush.msrb.mxu1 %v3339_v36 }
0x17f5   :  { %2886 = vmatpush.msrb.mxu1 %v3338_v37 }
0x17f7   :  { %2887 = vmatpush.msrb.mxu1 %v3337_v38 }
0x185e   :  { %v2804_v25 = vpop.xlane.xlu2 %2803 }
0x185f   :  { %v2808_v27 = vmul.f32 %v2804_v25, %v3724_v63 }
0x1861   :  { %v2810_v28 = vsub.f32 %v2800_v16, %v2808_v27 }
0x1863   :  { %v2812_v29 = vmul.f32 %v2810_v28, %v2810_v28 }
0x1865   :  { %v2814_v30 = vsel %vm147_vm6, %v2812_v29, 0.0 }
0x1866   :  { %2815 = vadd.xlane.f32.xlu1 %v2814_v30  ;;  %v2807_v35 = vpop.xlane.xlu0 %2806 }
0x1867   :  { %v2809_v31 = vmul.f32 %v2807_v35, %v3724_v63 }
0x1869   :  { %v2811_v32 = vsub.f32 %v2801_v23, %v2809_v31 }
0x186b   :  { %v2813_v33 = vmul.f32 %v2811_v32, %v2811_v32 }
0x186d   :  { %v2817_v34 = vsel %vm147_vm6, %v2813_v33, 0.0 }
0x186e   :  { %2818 = vadd.xlane.f32.xlu2 %v2817_v34 }
0x18d9   :  { %v2816_v39 = vpop.xlane.xlu1 %2815 }
0x18da   :  { %v2820_v48 = vmul.f32 %v2816_v39, %v3724_v63 }
0x18dc   :  { %v2822_v40 = vadd.f32 1e-12, %v2820_v48 }
0x18de   :  { %3497 = vrsqrt.f32 %v2822_v40  ;;  %vm2830_vm9 = vweird.f32 %v2822_v40 }
0x18e1   :  { %v2819_v41 = vpop.xlane.xlu2 %2818 }
0x18e2   :  { %v2821_v9 = vmul.f32 %v2819_v41, %v3724_v63 }
0x18e4   :  { %v3498_v10 = vpop.eup %3497  ;;  %v2823_v42 = vadd.f32 1e-12, %v2821_v9 }
0x18e5   :  { %v2825_v53 = vmul.f32 %v3498_v10, %v2822_v40  ;;  %vm2831_vm0 = vweird.f32 %v3498_v10 }
0x18e6   :  { %3499 = vrsqrt.f32 %v2823_v42  ;;  %vm2832_vm11 = vmor %vm2830_vm9, %vm2831_vm0  ;;  %vm2840_vm13 = vweird.f32 %v2823_v42 }
0x18e7   :  { %v2826_v44 = vmul.f32 %v3498_v10, %v2825_v53 }
0x18e9   :  { %v2827_v14 = vmul.f32 0.5, %v2826_v44 }
0x18eb   :  { %v2828_v45 = vsub.f32 1.5, %v2827_v14 }
0x18ec   :  { %v3500_v46 = vpop.eup %3499 }
0x18ed   :  { %v2829_v47 = vmul.f32 %v3498_v10, %v2828_v45  ;;  %v2835_v49 = vmul.f32 %v3500_v46, %v2823_v42  ;;  %vm2841_vm12 = vweird.f32 %v3500_v46 }
0x18ee   :  { %vm2842_vm14 = vmor %vm2840_vm13, %vm2841_vm12 }
0x18ef   :  { %v2833_v51 = vsel %vm2832_vm11, %v3498_v10, %v2829_v47  ;;  %v2836_v21 = vmul.f32 %v3500_v46, %v2835_v49 }
0x18f0   :  { %v2844_v52 = vmul.f32 %v2833_v51, %v2810_v28  ;;  %v3013_v51 = vld [vmem:[%s4606_s24 + $0x18] sm:$0xff] }
0x18f1   :  { %v2837_v54 = vmul.f32 0.5, %v2836_v21  ;;  %3036 = vmatpush.msrb.mxu0 %v3013_v51  ;;  %v3012_v21 = vld [vmem:[%s4606_s24 + $0x10] sm:$0xff] }
0x18f2   :  { %v2849_v55 = vmul.f32 %v3399_v50, %v2844_v52  ;;  %v3010_v52 = vld [vmem:[%s4606_s24] sm:$0xff] }
0x18f3   :  { %v2838_v26 = vsub.f32 1.5, %v2837_v54  ;;  %3037 = vmatpush.msrb.mxu0 %v3012_v21 }
0x18f4   :  { %v2854_v56 = vadd.f32 %v3400_v22, %v2849_v55 }
0x18f5   :  { %v2839_v57 = vmul.f32 %v3500_v46, %v2838_v26 }
0x18f6   :  { %3342 = vmatmul.msk.f32.vlgmr.msrb.gmra.mxu1 %vm147_vm6, %v2854_v56 }
0x18f7   :  { %v2843_v58 = vsel %vm2842_vm14, %v3500_v46, %v2839_v57 }
0x18f8   :  { %v2845_v59 = vmul.f32 %v2843_v58, %v2811_v32 }
0x18fa   :  { %v2850_v60 = vmul.f32 %v3399_v50, %v2845_v59 }
0x18fc   :  { %v2855_v61 = vadd.f32 %v3400_v22, %v2850_v60  ;;  %v3011_v22 = vld [vmem:[%s4606_s24 + $0x8] sm:$0xff] }
0x18fd   :  { %3038 = vmatpush.msrb.mxu0 %v3011_v22 }
0x18fe   :  { %3343 = vmatmul.msk.f32.gmra.mxu1 %vm147_vm6, %v2855_v61 }
0x18ff   :  { %3039 = vmatpush.msrb.mxu0 %v3010_v52 }
0x1973   :  { %v2889_v8 = vpop.f32.mrf.mxu1 }
0x1974   :  { %v2890_v11 = vadd.f32 %v3401_v7, %v2889_v8 }
0x1976   :  { %v2897_v12 = vmul.f32 0.044715, %v2890_v11  ;;  %v2895_v29 = vmul.f32 0.5, %v2890_v11 }
0x1978   :  { %v2899_v13 = vmul.f32 %v2897_v12, %v2890_v11 }
0x197a   :  { %v2901_v15 = vmul.f32 %v2899_v13, %v2890_v11 }
0x197b   :  { %v2892_v16 = vpop.f32.mrf.mxu1 }
0x197c   :  { %v2903_v17 = vadd.f32 %v2901_v15, %v2890_v11  ;;  %v2893_v18 = vadd.f32 %v3401_v7, %v2892_v16 }
0x197e   :  { %v2905_v19 = vmul.f32 0.7978846, %v2903_v17  ;;  %v2898_v20 = vmul.f32 0.044715, %v2893_v18  ;;  %v2896_v32 = vmul.f32 0.5, %v2893_v18 }
0x1980   :  { %3501 = vtanh.f32 %v2905_v19  ;;  %v2900_v23 = vmul.f32 %v2898_v20, %v2893_v18  ;;  %v3052_v20 = vld [vmem:[%s4608_s26 + $0x18] sm:$0xff] }
0x1981   :  { %3075 = vmatpush.msrb.mxu2 %v3052_v20 }
0x1982   :  { %v2902_v24 = vmul.f32 %v2900_v23, %v2893_v18  ;;  %v3051_v23 = vld [vmem:[%s4608_s26 + $0x10] sm:$0xff] }
0x1983   :  { %3076 = vmatpush.msrb.mxu2 %v3051_v23 }
0x1984   :  { %v2904_v25 = vadd.f32 %v2902_v24, %v2893_v18  ;;  %v3050_v24 = vld [vmem:[%s4608_s26 + $0x8] sm:$0xff] }
0x1985   :  { %3077 = vmatpush.msrb.mxu2 %v3050_v24 }
0x1986   :  { %v3502_v27 = vpop.eup %3501  ;;  %v2906_v28 = vmul.f32 0.7978846, %v2904_v25  ;;  %v3049_v25 = vld [vmem:[%s4608_s26] sm:$0xff] }
0x1987   :  { %v2909_v30 = vadd.f32 1.0, %v3502_v27  ;;  %3078 = vmatpush.msrb.mxu2 %v3049_v25  ;;  %v3405_v27 = vld [vmem:[%s4605_s25] ss:$0 sm:$0xff] }
0x1988   :  { %3503 = vtanh.f32 %v2906_v28 }
0x1989   :  { %v2911_v35 = vmul.f32 %v2909_v30, %v2895_v29 }
0x198b   :  { %3352 = vmatmul.msk.f32.vlgmr.msra.gmra.mxu3 %vm1575_vm10, %v2911_v35 }
0x198e   :  { %v3504_v31 = vpop.eup %3503 }
0x198f   :  { %v2910_v33 = vadd.f32 1.0, %v3504_v31 }
0x1991   :  { %v2912_v34 = vmul.f32 %v2910_v33, %v2896_v32  ;;  %v3406_v33 = vld [vmem:[%s4607_s27] ss:$0 sm:$0xff] }
0x1993   :  { %3353 = vmatmul.msk.f32.gmra.mxu3 %vm1575_vm10, %v2912_v34 }
0x1a0e   :  { %v2948_v36 = vpop.f32.mrf.mxu3 }
0x1a0f   :  { %v2949_v37 = vadd.f32 %v3402_v43, %v2948_v36 }
0x1a11   :  { %v2954_v38 = vadd.f32 %v2949_v37, %v2854_v56 }
0x1a13   :  { %v2956_v39 = vsel %vm147_vm6, %v2954_v38, 0.0 }
0x1a14   :  { %2957 = vadd.xlane.f32.xlu0 %v2956_v39 }
0x1a16   :  { %v2951_v48 = vpop.f32.mrf.mxu3 }
0x1a17   :  { %v2952_v40 = vadd.f32 %v3402_v43, %v2951_v48 }
0x1a19   :  { %v2955_v41 = vadd.f32 %v2952_v40, %v2855_v61 }
0x1a1b   :  { %v2959_v9 = vsel %vm147_vm6, %v2955_v41, 0.0 }
0x1a1c   :  { %2960 = vadd.xlane.f32.xlu1 %v2959_v9 }
0x1a87   :  { %v2958_v10 = vpop.xlane.xlu0 %2957 }
0x1a88   :  { %v2962_v42 = vmul.f32 %v2958_v10, %v3724_v63 }
0x1a8a   :  { %v2964_v53 = vsub.f32 %v2954_v38, %v2962_v42 }
0x1a8c   :  { %v2966_v44 = vmul.f32 %v2964_v53, %v2964_v53 }
0x1a8e   :  { %v2968_v14 = vsel %vm147_vm6, %v2966_v44, 0.0 }
0x1a8f   :  { %v2961_v45 = vpop.xlane.xlu1 %2960  ;;  %2969 = vadd.xlane.f32.xlu2 %v2968_v14 }
0x1a90   :  { %v2963_v46 = vmul.f32 %v2961_v45, %v3724_v63 }
0x1a92   :  { %v2965_v47 = vsub.f32 %v2955_v41, %v2963_v46 }
0x1a94   :  { %v2967_v49 = vmul.f32 %v2965_v47, %v2965_v47 }
0x1a96   :  { %v2971_v50 = vsel %vm147_vm6, %v2967_v49, 0.0 }
0x1a97   :  { %2972 = vadd.xlane.f32.xlu0 %v2971_v50 }
0x1b02   :  { %v2970_v54 = vpop.xlane.xlu2 %2969 }
0x1b03   :  { %v2974_v55 = vmul.f32 %v2970_v54, %v3724_v63 }
0x1b05   :  { %v2976_v26 = vadd.f32 1e-12, %v2974_v55 }
0x1b07   :  { %3505 = vrsqrt.f32 %v2976_v26  ;;  %vm2984_vm15 = vweird.f32 %v2976_v26 }
0x1b0a   :  { %v2973_v56 = vpop.xlane.xlu0 %2972 }
0x1b0b   :  { %v2975_v57 = vmul.f32 %v2973_v56, %v3724_v63  ;;  %v3404_v63 = vld [vmem:[%s4601_s20 + $0xb] ss:$0 sm:$0xff] }
0x1b0d   :  { %v3506_v58 = vpop.eup %3505  ;;  %v2977_v59 = vadd.f32 1e-12, %v2975_v57 }
0x1b0e   :  { %v2979_v60 = vmul.f32 %v3506_v58, %v2976_v26  ;;  %vm2985_vm10 = vweird.f32 %v3506_v58 }
0x1b0f   :  { %3507 = vrsqrt.f32 %v2977_v59  ;;  %vm2986_vm1 = vmor %vm2984_vm15, %vm2985_vm10  ;;  %vm2994_vm3 = vweird.f32 %v2977_v59 }
0x1b10   :  { %v2980_v61 = vmul.f32 %v3506_v58, %v2979_v60 }
0x1b12   :  { %v2981_v62 = vmul.f32 0.5, %v2980_v61 }
0x1b14   :  { %v2982_v0 = vsub.f32 1.5, %v2981_v62 }
0x1b15   :  { %v3508_v1 = vpop.eup %3507 }
0x1b16   :  { %v2983_v2 = vmul.f32 %v3506_v58, %v2982_v0  ;;  %v2989_v3 = vmul.f32 %v3508_v1, %v2977_v59  ;;  %vm2995_vm2 = vweird.f32 %v3508_v1 }
0x1b17   :  { %vm2996_vm4 = vmor %vm2994_vm3, %vm2995_vm2 }
0x1b18   :  { %v2987_v5 = vsel %vm2986_vm1, %v3506_v58, %v2983_v2  ;;  %v2990_v6 = vmul.f32 %v3508_v1, %v2989_v3 }
0x1b19   :  { %v2998_v7 = vmul.f32 %v2987_v5, %v2964_v53 }
0x1b1a   :  { %v2991_v8 = vmul.f32 0.5, %v2990_v6 }
0x1b1b   :  { %v3003_v11 = vmul.f32 %v3403_v4, %v2998_v7 }
0x1b1c   :  { %v2992_v12 = vsub.f32 1.5, %v2991_v8 }
0x1b1d   :  { %v3008_v13 = vadd.f32 %v3404_v63, %v3003_v11 }
0x1b1e   :  { %v2993_v15 = vmul.f32 %v3508_v1, %v2992_v12 }
0x1b1f   :  { %3354 = vmatmul.msk.f32.vlgmr.msrb.gmra.mxu0 %vm147_vm6, %v3008_v13 }
0x1b20   :  { %v2997_v16 = vsel %vm2996_vm4, %v3508_v1, %v2993_v15 }
0x1b21   :  { %v2999_v17 = vmul.f32 %v2997_v16, %v2965_v47 }
0x1b23   :  { %v3004_v18 = vmul.f32 %v3403_v4, %v2999_v17 }
0x1b25   :  { %v3009_v19 = vadd.f32 %v3404_v63, %v3004_v18 }
0x1b27   :  { %3355 = vmatmul.msk.f32.gmra.mxu0 %vm147_vm6, %v3009_v19 }
0x1b9c   :  { %v3041_v28 = vpop.f32.mrf.mxu0 }
0x1b9d   :  { %v3042_v29 = vadd.f32 %v3405_v27, %v3041_v28 }
0x1b9f   :  { %3509 = vtanh.f32 %v3042_v29 }
0x1ba4   :  { %v3044_v30 = vpop.f32.mrf.mxu0 }
0x1ba5   :  { %v3510_v35 = vpop.eup %3509  ;;  %v3045_v31 = vadd.f32 %v3405_v27, %v3044_v30 }
0x1ba6   :  { %3356 = vmatmul.msk.f32.vlgmr.msrb.gmra.mxu2 %vm147_vm6, %v3510_v35 }
0x1ba7   :  { %3511 = vtanh.f32 %v3045_v31 }
0x1bad   :  { %v3512_v32 = vpop.eup %3511 }
0x1bae   :  { %3357 = vmatmul.msk.f32.gmra.mxu2 %vm147_vm6, %v3512_v32 }
0x1c29   :  { %v3080_v34 = vpop.f32.mrf.mxu2 }
0x1c2a   :  { %v3081_v43 = vadd.f32 %v3406_v33, %v3080_v34 }
0x1c2c   :  { %3086 = vst [vmem:[%s4609_s28] sm:$0xff] %v3081_v43 }
0x1c31   :  { %v3083_v36 = vpop.f32.mrf.mxu2 }
0x1c32   :  { %v3084_v37 = vadd.f32 %v3406_v33, %v3083_v36 }
0x1c34   :  { %3087 = vst [vmem:[%s4609_s28 + $0x8] sm:$0xff] %v3084_v37 }

</bundles_post_ra>
